<compile_context>
chip_gen: v7x
topology: tpu7x:2x2x1
jax: 0.10.0
libtpu: 0.0.40
codegen_flags: <defaults>
</compile_context>

<pallas_src>
import functools
import math

import jax
import jax.numpy as jnp
from jax.experimental import pallas as pl
from jax.experimental.pallas import tpu as pltpu


def _round_up(x, m):
    return ((x + m - 1) // m) * m


# ----------------------------------------------------------------------------
# Pallas kernel 1: matmul with fused bias (+ optional ReLU) epilogue.
#   - bf16 operands on the MXU, f32 accumulation
#   - K handled as a single full stripe per (i, j) tile (no K grid axis / scratch)
# ----------------------------------------------------------------------------
def _matmul_bias_kernel(a_ref, b_ref, bias_ref, o_ref, *, relu):
    acc = jnp.dot(a_ref[...], b_ref[...], preferred_element_type=jnp.float32)
    acc = acc + bias_ref[...]                       # (1, tn) broadcasts over rows
    if relu:
        acc = jnp.maximum(acc, 0.0)
    o_ref[...] = acc                                # lane-dense 128-wide store


def pallas_matmul_bias(a, b, bias, *, relu=False, tm_target=512, tn=128):
    """(a @ b + bias), optional ReLU.  a:(M,K) f32/bf16, b:(K,N), bias:(N,)."""
    M, K = a.shape
    K2, N = b.shape
    assert K == K2
    Kp = _round_up(K, 16)            # bf16 sublane quantum only (18 -> 32, not 128)
    Np = _round_up(N, tn)
    tm = min(tm_target, _round_up(M, 16))
    Mp = _round_up(M, tm)

    a_p = jnp.pad(a.astype(jnp.bfloat16), ((0, Mp - M), (0, Kp - K)))
    b_p = jnp.pad(b.astype(jnp.bfloat16), ((0, Kp - K), (0, Np - N)))
    bias_p = jnp.pad(bias.astype(jnp.float32), (0, Np - N)).reshape(1, Np)

    kernel = functools.partial(_matmul_bias_kernel, relu=relu)
    out = pl.pallas_call(
        kernel,
        out_shape=jax.ShapeDtypeStruct((Mp, Np), jnp.float32),
        grid_spec=pltpu.PrefetchScalarGridSpec(
            num_scalar_prefetch=0,
            grid=(Mp // tm, Np // tn),
            in_specs=[pl.BlockSpec((tm, Kp), lambda i, j: (i, 0)),
                      pl.BlockSpec((Kp, tn), lambda i, j: (0, j)),
                      pl.BlockSpec((1, tn), lambda i, j: (0, j))],
            out_specs=pl.BlockSpec((tm, tn), lambda i, j: (i, j))),
        compiler_params=pltpu.CompilerParams(
            dimension_semantics=("parallel", "parallel")),
    )(a_p, b_p, bias_p)
    return out[:M, :N]


# ----------------------------------------------------------------------------
# Conv2d (NHWC) = transpose-free im2col + Pallas matmul (bias/ReLU fused)
# ----------------------------------------------------------------------------
def conv2d_nhwc(x, w, b, *, stride=1, padding=1, relu=False):
    """x: (B,H,W,Cin) NHWC, w: (Cout,Cin,kh,kw) torch OIHW, b: (Cout,)."""
    B, H, W, Cin = x.shape
    Cout, _, kh, kw = w.shape
    x16 = x.astype(jnp.bfloat16)
    xp = jnp.pad(x16, ((0, 0), (padding, padding), (padding, padding), (0, 0)))
    Ho = (H + 2 * padding - kh) // stride + 1
    Wo = (W + 2 * padding - kw) // stride + 1
    taps = []
    for i in range(kh):
        for j in range(kw):
            hs = slice(i, i + stride * (Ho - 1) + 1, stride)
            ws = slice(j, j + stride * (Wo - 1) + 1, stride)
            taps.append(xp[:, hs, ws, :])            # (B,Ho,Wo,Cin)
    # tap/channel axis is last -> reshape is contiguous, no im2col transpose.
    col = jnp.concatenate(taps, axis=-1).reshape(B * Ho * Wo, kh * kw * Cin)
    wmat = jnp.transpose(w, (2, 3, 1, 0)).reshape(kh * kw * Cin, Cout)
    out = pallas_matmul_bias(col, wmat, b, relu=relu)      # (B*Ho*Wo, Cout) f32
    return out.reshape(B, Ho, Wo, Cout)


def conv2d_nhwc_small(x, w, b, *, stride=1, padding=1):
    """Tiny-Cout (2-channel flow head) conv: keep it off the 128-wide MXU path."""
    out = jax.lax.conv_general_dilated(
        x.astype(jnp.float32), jnp.transpose(w, (2, 3, 1, 0)),   # HWIO
        window_strides=(stride, stride),
        padding=[(padding, padding), (padding, padding)],
        dimension_numbers=("NHWC", "HWIO", "NHWC"))
    return out + b[None, None, None, :]


def _wb(p):
    return p["w"], p["b"]


# ----------------------------------------------------------------------------
# Pallas kernel 2: fused compute_loss (robust_l1 + SSIM map + weighted mean),
# tiled over rows with a resident scalar accumulator output.
# ----------------------------------------------------------------------------
def _loss_kernel(ref_ref, warp_ref, mux_ref, muy_ref, pxx_ref, pyy_ref, pxy_ref,
                 o_ref, *, lam0, lam1, inv_n, total_rows, tile_rows):
    C1 = 0.01 ** 2
    C2 = 0.03 ** 2
    eps2 = 0.001 ** 2
    x = ref_ref[...]
    y = warp_ref[...]
    mux = mux_ref[...]
    muy = muy_ref[...]
    sig_x = pxx_ref[...] - mux * mux
    sig_y = pyy_ref[...] - muy * muy
    sig_xy = pxy_ref[...] - mux * muy
    rl1 = jnp.sqrt((x - y) * (x - y) + eps2)
    ssim_n = (2.0 * mux * muy + C1) * (2.0 * sig_xy + C2)
    ssim_d = (mux * mux + muy * muy + C1) * (sig_x + sig_y + C2)
    ssim = jnp.clip((1.0 - ssim_n / ssim_d) * 0.5, 0.0, 1.0)
    per_pix = lam0 * rl1 + lam1 * ssim
    # mask rows that only exist because of tile padding
    row0 = pl.program_id(0) * tile_rows
    rows = row0 + jax.lax.broadcasted_iota(jnp.int32, per_pix.shape, 0)
    per_pix = jnp.where(rows < total_rows, per_pix, 0.0)
    partial = jnp.sum(per_pix, axis=1, keepdims=True)
    partial = jnp.sum(partial, axis=0, keepdims=True) * inv_n   # (1,1)

    @pl.when(pl.program_id(0) == 0)
    def _():
        o_ref[...] = jnp.zeros_like(o_ref)

    o_ref[...] += jnp.broadcast_to(partial, o_ref.shape)


def _box3_reflect(x):
    """ReflectionPad2d(1) + AvgPool2d(3, stride=1) (monodepth2 SSIM pooling)."""
    B, C, H, W = x.shape
    xp = jnp.pad(x, ((0, 0), (0, 0), (1, 1), (1, 1)), mode="reflect")
    s = jnp.zeros_like(x)
    for i in range(3):
        for j in range(3):
            s = s + xp[:, :, i:i + H, j:j + W]
    return s / 9.0


def pallas_compute_loss(ref, warp, lam0, lam1, *, tile_rows_target=256):
    """loss = mean( lam0 * robust_l1(ref, warp) + lam1 * SSIM_dissim(ref, warp) )."""
    B, C, H, W = ref.shape
    mux = _box3_reflect(ref)
    muy = _box3_reflect(warp)
    pxx = _box3_reflect(ref * ref)
    pyy = _box3_reflect(warp * warp)
    pxy = _box3_reflect(ref * warp)

    R = B * C * H
    tile_rows = min(tile_rows_target, _round_up(R, 8))
    Rp = _round_up(R, tile_rows)

    def r2(a):
        a = a.reshape(R, W).astype(jnp.float32)
        return jnp.pad(a, ((0, Rp - R), (0, 0)))

    kernel = functools.partial(
        _loss_kernel, lam0=float(lam0), lam1=float(lam1),
        inv_n=1.0 / float(B * C * H * W), total_rows=R, tile_rows=tile_rows)
    in_spec = pl.BlockSpec((tile_rows, W), lambda i: (i, 0))
    out = pl.pallas_call(
        kernel,
        out_shape=jax.ShapeDtypeStruct((8, 128), jnp.float32),
        grid_spec=pltpu.PrefetchScalarGridSpec(
            num_scalar_prefetch=0,
            grid=(Rp // tile_rows,),
            in_specs=[in_spec] * 7,
            out_specs=pl.BlockSpec((8, 128), lambda i: (0, 0))),
        compiler_params=pltpu.CompilerParams(
            dimension_semantics=("arbitrary",)),
    )(r2(ref), r2(warp), r2(mux), r2(muy), r2(pxx), r2(pyy), r2(pxy))
    return out[0, 0]


# ----------------------------------------------------------------------------
# Pallas kernel 3: nonlinear (flow smoothness) constraint, gridded over planes.
# ----------------------------------------------------------------------------
def _smooth_kernel(f_ref, o_ref, *, inv_counts):
    f = f_ref[0]                                   # (H, W) plane
    dx = f[:, 1:] - f[:, :-1]
    dy = f[1:, :] - f[:-1, :]
    dxx = dx[:, 1:] - dx[:, :-1]
    dxy = dx[1:, :] - dx[:-1, :]
    dyx = dy[:, 1:] - dy[:, :-1]
    dyy = dy[1:, :] - dy[:-1, :]

    def s(a):
        t = jnp.sum(jnp.abs(a), axis=1, keepdims=True)
        return jnp.sum(t, axis=0, keepdims=True)

    total = (s(dx) * inv_counts[0] + s(dy) * inv_counts[1]
             + s(dxx) * inv_counts[2] + s(dxy) * inv_counts[3]
             + s(dyx) * inv_counts[4] + s(dyy) * inv_counts[5])

    @pl.when(pl.program_id(0) == 0)
    def _():
        o_ref[...] = jnp.zeros_like(o_ref)

    o_ref[...] += jnp.broadcast_to(total, o_ref.shape)


def pallas_nonlinear_constraint(flow):
    """mean|dflow| (1st order) + mean|d2flow| (2nd order), torch gradient semantics."""
    B, C, H, W = flow.shape
    P = B * C
    f = flow.reshape(P, H, W).astype(jnp.float32)
    counts = (P * H * (W - 1), P * (H - 1) * W,
              P * H * (W - 2), P * (H - 1) * (W - 1),
              P * (H - 1) * (W - 1), P * (H - 2) * W)
    inv_counts = tuple(1.0 / float(n) for n in counts)
    kernel = functools.partial(_smooth_kernel, inv_counts=inv_counts)
    out = pl.pallas_call(
        kernel,
        out_shape=jax.ShapeDtypeStruct((8, 128), jnp.float32),
        grid_spec=pltpu.PrefetchScalarGridSpec(
            num_scalar_prefetch=0,
            grid=(P,),
            in_specs=[pl.BlockSpec((1, H, W), lambda p: (p, 0, 0))],
            out_specs=pl.BlockSpec((8, 128), lambda p: (0, 0))),
        compiler_params=pltpu.CompilerParams(
            dimension_semantics=("arbitrary",)),
    )(f)
    return out[0, 0]


# ----------------------------------------------------------------------------
# Spatial sampling glue (torch semantics, align_corners=False) in plain JAX
# ----------------------------------------------------------------------------
def resize_bilinear(x, oh, ow):
    """NCHW bilinear resize, torch align_corners=False."""
    B, C, H, W = x.shape
    if (oh, ow) == (H, W):
        return x
    sy = jnp.maximum((jnp.arange(oh, dtype=jnp.float32) + 0.5) * (H / oh) - 0.5, 0.0)
    sx = jnp.maximum((jnp.arange(ow, dtype=jnp.float32) + 0.5) * (W / ow) - 0.5, 0.0)
    y0 = jnp.clip(jnp.floor(sy).astype(jnp.int32), 0, H - 1)
    x0 = jnp.clip(jnp.floor(sx).astype(jnp.int32), 0, W - 1)
    y1 = jnp.clip(y0 + 1, 0, H - 1)
    x1 = jnp.clip(x0 + 1, 0, W - 1)
    wy = (sy - y0.astype(jnp.float32))[None, None, :, None]
    wx = (sx - x0.astype(jnp.float32))[None, None, None, :]
    top = x[:, :, y0, :]
    bot = x[:, :, y1, :]
    rows = top * (1.0 - wy) + bot * wy
    left = rows[:, :, :, x0]
    right = rows[:, :, :, x1]
    return left * (1.0 - wx) + right * wx


def resize_bilinear_nhwc(x, oh, ow):
    """NHWC bilinear resize, torch align_corners=False."""
    B, H, W, C = x.shape
    if (oh, ow) == (H, W):
        return x
    sy = jnp.maximum((jnp.arange(oh, dtype=jnp.float32) + 0.5) * (H / oh) - 0.5, 0.0)
    sx = jnp.maximum((jnp.arange(ow, dtype=jnp.float32) + 0.5) * (W / ow) - 0.5, 0.0)
    y0 = jnp.clip(jnp.floor(sy).astype(jnp.int32), 0, H - 1)
    x0 = jnp.clip(jnp.floor(sx).astype(jnp.int32), 0, W - 1)
    y1 = jnp.clip(y0 + 1, 0, H - 1)
    x1 = jnp.clip(x0 + 1, 0, W - 1)
    wy = (sy - y0.astype(jnp.float32))[None, :, None, None]
    wx = (sx - x0.astype(jnp.float32))[None, None, :, None]
    top = x[:, y0, :, :]
    bot = x[:, y1, :, :]
    rows = top * (1.0 - wy) + bot * wy
    left = rows[:, :, x0, :]
    right = rows[:, :, x1, :]
    return left * (1.0 - wx) + right * wx


def grid_sample_bilinear(x, grid):
    """torch F.grid_sample(mode='bilinear', padding_mode='zeros', align_corners=False)."""
    B, C, H, W = x.shape
    gx = grid[..., 0]
    gy = grid[..., 1]
    ix = ((gx + 1.0) * W - 1.0) * 0.5
    iy = ((gy + 1.0) * H - 1.0) * 0.5
    ix0 = jnp.floor(ix)
    iy0 = jnp.floor(iy)
    wx = (ix - ix0)[:, None, :, :]
    wy = (iy - iy0)[:, None, :, :]

    def gather(xi, yi):
        xi_i = xi.astype(jnp.int32)
        yi_i = yi.astype(jnp.int32)
        valid = ((xi_i >= 0) & (xi_i <= W - 1) & (yi_i >= 0) & (yi_i <= H - 1))
        xc = jnp.clip(xi_i, 0, W - 1)
        yc = jnp.clip(yi_i, 0, H - 1)
        v = jax.vmap(lambda img, yy, xx: img[:, yy, xx])(x, yc, xc)  # (B,C,Ho,Wo)
        return v * valid[:, None, :, :].astype(x.dtype)

    v00 = gather(ix0, iy0)
    v01 = gather(ix0 + 1, iy0)
    v10 = gather(ix0, iy0 + 1)
    v11 = gather(ix0 + 1, iy0 + 1)
    return (v00 * (1 - wx) * (1 - wy) + v01 * wx * (1 - wy)
            + v10 * (1 - wx) * wy + v11 * wx * wy)


def affine_grid(theta, size):
    """torch F.affine_grid(theta, size, align_corners=False) -> (B,H,W,2)."""
    B, _, H, W = size
    xs = (2.0 * jnp.arange(W, dtype=jnp.float32) + 1.0) / W - 1.0
    ys = (2.0 * jnp.arange(H, dtype=jnp.float32) + 1.0) / H - 1.0
    yy, xx = jnp.meshgrid(ys, xs, indexing="ij")
    base = jnp.stack([xx, yy, jnp.ones_like(xx)], axis=-1)   # (H,W,3)
    return jnp.einsum("hwk,bik->bhwi", base, theta)


def identity_grid(ref):
    b, _, h, w = ref.shape
    assert h == w, "identity_grid (like the torch original) assumes square images"
    x = jnp.arange(h, dtype=jnp.float32) / h * 2.0 - 1.0
    y = jnp.arange(w, dtype=jnp.float32) / w * 2.0 - 1.0
    xx, yy = jnp.meshgrid(x, y)                 # 'xy' indexing, matches np.meshgrid
    grid = jnp.stack([xx, yy], axis=0)[None]    # (1,2,h,w)
    return jnp.broadcast_to(grid, (b, 2, h, w))


# ----------------------------------------------------------------------------
# Sub-networks (representative small CNNs; all dense conv math goes through Pallas)
# ----------------------------------------------------------------------------
def encoder_forward(p, x):            # x: (B,H,W,Cin) NHWC
    f1 = conv2d_nhwc(x, *_wb(p["conv1"]), stride=2, padding=1, relu=True)
    f2 = conv2d_nhwc(f1, *_wb(p["conv2"]), stride=2, padding=1, relu=True)
    f3 = conv2d_nhwc(f2, *_wb(p["conv3"]), stride=2, padding=1, relu=True)
    return [f1, f2, f3]


def lr_decoder_forward(p, feats):
    pooled = jnp.mean(feats[-1], axis=(1, 2))                # (B, 64)
    out = pallas_matmul_bias(pooled, p["fc_w"], p["fc_b"], relu=False)
    return out.reshape(-1, 2, 3)                             # affine theta


def hr_decoder_forward(p, feats):
    f1, f2, f3 = feats

    def up2(t):
        return resize_bilinear_nhwc(t, t.shape[1] * 2, t.shape[2] * 2)

    x = conv2d_nhwc(f3, *_wb(p["up1"]), relu=True)
    x = up2(x)
    x = jnp.concatenate([x, f2], axis=-1)
    x = conv2d_nhwc(x, *_wb(p["fuse1"]), relu=True)
    flow1 = conv2d_nhwc_small(x, *_wb(p["flow1"]))           # coarse flow (NHWC)
    x = up2(x)
    x = jnp.concatenate([x, f1], axis=-1)
    x = conv2d_nhwc(x, *_wb(p["fuse0"]), relu=True)
    flow0 = conv2d_nhwc_small(x, *_wb(p["flow0"]))           # fine flow (NHWC)
    return [flow0, flow1]


# ----------------------------------------------------------------------------
# Baseline forward
# ----------------------------------------------------------------------------
def linear_constraint(affine):
    identity = jnp.zeros_like(affine).at[:, 0, 0].set(1.0).at[:, 1, 1].set(1.0)
    return jnp.mean(jnp.abs(affine - identity))


def linear_align(params, ref, mov, lin_reso):
    B, _, H, W = ref.shape
    ref_r = resize_bilinear(ref, lin_reso, lin_reso)
    mov_r = resize_bilinear(mov, lin_reso, lin_reso)
    x = jnp.transpose(jnp.concatenate([ref_r, mov_r], axis=1), (0, 2, 3, 1))  # NHWC
    feats = encoder_forward(params["lr_enc"], x)
    affine = lr_decoder_forward(params["lr_dec"], feats)
    agrid = affine_grid(affine, (B, 1, H, W))
    warp1 = grid_sample_bilinear(mov, agrid)
    return warp1, affine, agrid


def nonlinear_align(params, ref, warp1, non_reso):
    B, _, H, W = ref.shape
    if non_reso != H:   # original checks against the fixed full (512) resolution
        ref_r = resize_bilinear(ref, non_reso, non_reso)
        w1_r = resize_bilinear(warp1, non_reso, non_reso)
    else:
        ref_r, w1_r = ref, warp1
    x = jnp.transpose(jnp.concatenate([ref_r, w1_r], axis=1), (0, 2, 3, 1))   # NHWC
    feats = encoder_forward(params["hr_enc"], x)
    flow_list_nhwc = hr_decoder_forward(params["hr_dec"], feats)
    # transpose the *small* pre-resize flows once, then resize in NCHW
    flow_list = [resize_bilinear(jnp.transpose(fl, (0, 3, 1, 2)), H, W)
                 for fl in flow_list_nhwc]
    id_grid = identity_grid(ref)
    warp2_list = []
    for fl in flow_list:
        def_grid = jnp.transpose(fl + id_grid, (0, 2, 3, 1))
        warp2_list.append(grid_sample_bilinear(warp1, def_grid))
    return warp2_list, flow_list


def baseline_forward(params, inputs, *, lambda_list, lin_reso, non_reso):
    ref = inputs[:, :1]
    mov = inputs[:, 1:]
    warp1, affine, agrid = linear_align(params, ref, mov, lin_reso)
    warp2_list, flow_list = nonlinear_align(params, ref, warp1, non_reso)
    id_grid = identity_grid(ref)

    loss1 = pallas_compute_loss(ref, warp1, lambda_list[0], lambda_list[1])
    constraint1 = linear_constraint(affine)
    loss2 = 0.0
    constraint2 = 0.0
    for i in range(len(warp2_list)):
        loss2 = loss2 + pallas_compute_loss(ref, warp2_list[i],
                                            lambda_list[0], lambda_list[1]) * 2.0 ** (-i)
        constraint2 = constraint2 + pallas_nonlinear_constraint(flow_list[i]) * 2.0 ** (-i)
    loss = loss1 + loss2 + lambda_list[2] * constraint1 + lambda_list[3] * constraint2
    composed = flow_list[0] - id_grid + jnp.transpose(agrid, (0, 3, 1, 2))
    return loss, warp1, warp2_list[0], composed


# ----------------------------------------------------------------------------
# Deterministic parameter init
# ----------------------------------------------------------------------------
def init_params(key):
    keys = jax.random.split(key, 12)

    def conv_init(k, cout, cin, ksz, std=None):
        if std is None:
            std = 1.0 / math.sqrt(cin * ksz * ksz)
        w = std * jax.random.normal(k, (cout, cin, ksz, ksz), dtype=jnp.float32)
        return {"w": w, "b": jnp.zeros((cout,), jnp.float32)}

    def enc_init(ks, cin):
        return {"conv1": conv_init(ks[0], 16, cin, 3),
                "conv2": conv_init(ks[1], 32, 16, 3),
                "conv3": conv_init(ks[2], 64, 32, 3)}

    params = {
        "hr_enc": enc_init(keys[0:3], 2),
        "lr_enc": enc_init(keys[3:6], 2),
        "hr_dec": {
            "up1": conv_init(keys[6], 32, 64, 3),
            "fuse1": conv_init(keys[7], 32, 64, 3),
            "flow1": conv_init(keys[8], 2, 32, 3, std=0.01),
            "fuse0": conv_init(keys[9], 16, 48, 3),
            "flow0": conv_init(keys[10], 2, 16, 3, std=0.01),
        },
        "lr_dec": {
            "fc_w": 0.01 * jax.random.normal(keys[11], (64, 6), dtype=jnp.float32),
            "fc_b": jnp.array([1.0, 0.0, 0.0, 0.0, 1.0, 0.0], jnp.float32),
        },
    }
    return params


# ----------------------------------------------------------------------------
if __name__ == "__main__":
    key = jax.random.PRNGKey(0)
    k_in, k_par = jax.random.split(key)

    B, H, W = 2, 32, 32                 # small stand-in for the 512x512 originals
    lambda_list = (1.0, 1.0, 0.1, 0.1)  # args.lambda_list
    lin_reso, non_reso = 16, 32         # args.linear_resolution / nonlinear_resolution

    inputs = jax.random.uniform(k_in, (B, 2, H, W), dtype=jnp.float32)
    params = init_params(k_par)

    fwd = jax.jit(functools.partial(baseline_forward,
                                    lambda_list=lambda_list,
                                    lin_reso=lin_reso,
                                    non_reso=non_reso))
    loss, warp1, warp2_0, composed_flow = fwd(params, inputs)
    jax.block_until_ready((loss, warp1, warp2_0, composed_flow))

    assert warp1.shape == (B, 1, H, W)
    assert warp2_0.shape == (B, 1, H, W)
    assert composed_flow.shape == (B, 2, H, W)
    assert jnp.isfinite(loss)
    print("KERNEL_OK")
</pallas_src>

<mosaic_0001>
module attributes {stable_mosaic.version = 11 : i64} {
  func.func private @main(%arg0: i32) attributes {dimension_semantics = [#tpu.dimension_semantics<core_parallel>], iteration_bounds = array<i64: 2>, tpu.core_type = #tpu.core_type<sc_scalar_subcore>, window_params = []} {
    return
  }
}

module attributes {stable_mosaic.version = 11 : i64} {
  func.func private @main(%arg0: i32) attributes {dimension_semantics = [#tpu.dimension_semantics<core_parallel>], iteration_bounds = array<i64: 2>, tpu.core_type = #tpu.core_type<sc_scalar_subcore>, window_params = []} {
    return
  }
}

module attributes {stable_mosaic.version = 11 : i64} {
  func.func @_matmul_bias_kernel(%arg0: i32, %arg1: i32, %arg2: memref<128x32xbf16, #tpu.memory_space<vmem>>, %arg3: memref<32x128xbf16, #tpu.memory_space<vmem>>, %arg4: memref<1x128xf32, #tpu.memory_space<vmem>>, %arg5: memref<128x128xf32, #tpu.memory_space<vmem>>) attributes {dimension_semantics = [#tpu.dimension_semantics<parallel>, #tpu.dimension_semantics<parallel>], iteration_bounds = array<i64: 1, 1>, scalar_prefetch = 0 : i64, scratch_operands = 0 : i64, tpu.core_type = #tpu.core_type<tc>, window_params = [{transform_indices = @transform_0, window_bounds = array<i64: 128, 32>}, {transform_indices = @transform_1, window_bounds = array<i64: 32, 128>}, {transform_indices = @transform_2, window_bounds = array<i64: 1, 128>}, {transform_indices = @transform_3, window_bounds = array<i64: 128, 128>}]} {
    %c0 = arith.constant 0 : index
    %c0_0 = arith.constant 0 : index
    %0 = vector.load %arg2[%c0, %c0_0] : memref<128x32xbf16, #tpu.memory_space<vmem>>, vector<128x32xbf16>
    %c0_1 = arith.constant 0 : index
    %c0_2 = arith.constant 0 : index
    %1 = vector.load %arg3[%c0_1, %c0_2] : memref<32x128xbf16, #tpu.memory_space<vmem>>, vector<32x128xbf16>
    %cst = arith.constant dense<0.000000e+00> : vector<128x128xf32>
    %2 = tpu.matmul %0, %1, %cst {dimension_numbers = #tpu.dot_dimension_numbers<[1], [0], [0], [1], [0, 0, 1, 1], [], []>} : vector<128x32xbf16>, vector<32x128xbf16>, vector<128x128xf32> -> vector<128x128xf32>
    %c0_3 = arith.constant 0 : index
    %c0_4 = arith.constant 0 : index
    %3 = vector.load %arg4[%c0_3, %c0_4] : memref<1x128xf32, #tpu.memory_space<vmem>>, vector<1x128xf32>
    %4 = vector.broadcast %3 : vector<1x128xf32> to vector<128x128xf32>
    %5 = arith.addf %2, %4 : vector<128x128xf32>
    %cst_5 = arith.constant 0.000000e+00 : f32
    %6 = vector.broadcast %cst_5 : f32 to vector<128x128xf32>
    %7 = arith.maximumf %5, %6 : vector<128x128xf32>
    %c0_6 = arith.constant 0 : index
    %c0_7 = arith.constant 0 : index
    %8 = vector.load %arg5[%c0_6, %c0_7] : memref<128x128xf32, #tpu.memory_space<vmem>>, vector<128x128xf32>
    tpu.vector_store %arg5[%c0_6, %c0_7], %7 {strides = array<i32>} : memref<128x128xf32, #tpu.memory_space<vmem>>, vector<128x128xf32>,
    return
  }
  func.func @transform_0(%arg0: i32, %arg1: i32) -> (i32, i32) {
    %c0_i32 = arith.constant 0 : i32
    %c0_i32_0 = arith.constant 0 : i32
    return %arg0, %c0_i32 : i32, i32
  }
  func.func @transform_1(%arg0: i32, %arg1: i32) -> (i32, i32) {
    %c0_i32 = arith.constant 0 : i32
    %c0_i32_0 = arith.constant 0 : i32
    return %c0_i32, %arg1 : i32, i32
  }
  func.func @transform_2(%arg0: i32, %arg1: i32) -> (i32, i32) {
    %c0_i32 = arith.constant 0 : i32
    %c0_i32_0 = arith.constant 0 : i32
    return %c0_i32, %arg1 : i32, i32
  }
  func.func @transform_3(%arg0: i32, %arg1: i32) -> (i32, i32) {
    %c0_i32 = arith.constant 0 : i32
    return %arg0, %arg1 : i32, i32
  }
}

module attributes {stable_mosaic.version = 11 : i64} {
  func.func @_matmul_bias_kernel(%arg0: i32, %arg1: i32, %arg2: memref<32x144xbf16, #tpu.memory_space<vmem>>, %arg3: memref<144x128xbf16, #tpu.memory_space<vmem>>, %arg4: memref<1x128xf32, #tpu.memory_space<vmem>>, %arg5: memref<32x128xf32, #tpu.memory_space<vmem>>) attributes {dimension_semantics = [#tpu.dimension_semantics<parallel>, #tpu.dimension_semantics<parallel>], iteration_bounds = array<i64: 1, 1>, scalar_prefetch = 0 : i64, scratch_operands = 0 : i64, tpu.core_type = #tpu.core_type<tc>, window_params = [{transform_indices = @transform_0, window_bounds = array<i64: 32, 144>}, {transform_indices = @transform_1, window_bounds = array<i64: 144, 128>}, {transform_indices = @transform_2, window_bounds = array<i64: 1, 128>}, {transform_indices = @transform_3, window_bounds = array<i64: 32, 128>}]} {
    %c0 = arith.constant 0 : index
    %c0_0 = arith.constant 0 : index
    %0 = vector.load %arg2[%c0, %c0_0] : memref<32x144xbf16, #tpu.memory_space<vmem>>, vector<32x144xbf16>
    %c0_1 = arith.constant 0 : index
    %c0_2 = arith.constant 0 : index
    %1 = vector.load %arg3[%c0_1, %c0_2] : memref<144x128xbf16, #tpu.memory_space<vmem>>, vector<144x128xbf16>
    %cst = arith.constant dense<0.000000e+00> : vector<32x128xf32>
    %2 = tpu.matmul %0, %1, %cst {dimension_numbers = #tpu.dot_dimension_numbers<[1], [0], [0], [1], [0, 0, 1, 1], [], []>} : vector<32x144xbf16>, vector<144x128xbf16>, vector<32x128xf32> -> vector<32x128xf32>
    %c0_3 = arith.constant 0 : index
    %c0_4 = arith.constant 0 : index
    %3 = vector.load %arg4[%c0_3, %c0_4] : memref<1x128xf32, #tpu.memory_space<vmem>>, vector<1x128xf32>
    %4 = vector.broadcast %3 : vector<1x128xf32> to vector<32x128xf32>
    %5 = arith.addf %2, %4 : vector<32x128xf32>
    %cst_5 = arith.constant 0.000000e+00 : f32
    %6 = vector.broadcast %cst_5 : f32 to vector<32x128xf32>
    %7 = arith.maximumf %5, %6 : vector<32x128xf32>
    %c0_6 = arith.constant 0 : index
    %c0_7 = arith.constant 0 : index
    %8 = vector.load %arg5[%c0_6, %c0_7] : memref<32x128xf32, #tpu.memory_space<vmem>>, vector<32x128xf32>
    tpu.vector_store %arg5[%c0_6, %c0_7], %7 {strides = array<i32>} : memref<32x128xf32, #tpu.memory_space<vmem>>, vector<32x128xf32>,
    return
  }
  func.func @transform_0(%arg0: i32, %arg1: i32) -> (i32, i32) {
    %c0_i32 = arith.constant 0 : i32
    %c0_i32_0 = arith.constant 0 : i32
    return %arg0, %c0_i32 : i32, i32
  }
  func.func @transform_1(%arg0: i32, %arg1: i32) -> (i32, i32) {
    %c0_i32 = arith.constant 0 : i32
    %c0_i32_0 = arith.constant 0 : i32
    return %c0_i32, %arg1 : i32, i32
  }
  func.func @transform_2(%arg0: i32, %arg1: i32) -> (i32, i32) {
    %c0_i32 = arith.constant 0 : i32
    %c0_i32_0 = arith.constant 0 : i32
    return %c0_i32, %arg1 : i32, i32
  }
  func.func @transform_3(%arg0: i32, %arg1: i32) -> (i32, i32) {
    %c0_i32 = arith.constant 0 : i32
    return %arg0, %arg1 : i32, i32
  }
}

module attributes {stable_mosaic.version = 11 : i64} {
  func.func @_matmul_bias_kernel(%arg0: i32, %arg1: i32, %arg2: memref<16x288xbf16, #tpu.memory_space<vmem>>, %arg3: memref<288x128xbf16, #tpu.memory_space<vmem>>, %arg4: memref<1x128xf32, #tpu.memory_space<vmem>>, %arg5: memref<16x128xf32, #tpu.memory_space<vmem>>) attributes {dimension_semantics = [#tpu.dimension_semantics<parallel>, #tpu.dimension_semantics<parallel>], iteration_bounds = array<i64: 1, 1>, scalar_prefetch = 0 : i64, scratch_operands = 0 : i64, tpu.core_type = #tpu.core_type<tc>, window_params = [{transform_indices = @transform_0, window_bounds = array<i64: 16, 288>}, {transform_indices = @transform_1, window_bounds = array<i64: 288, 128>}, {transform_indices = @transform_2, window_bounds = array<i64: 1, 128>}, {transform_indices = @transform_3, window_bounds = array<i64: 16, 128>}]} {
    %c0 = arith.constant 0 : index
    %c0_0 = arith.constant 0 : index
    %0 = vector.load %arg2[%c0, %c0_0] : memref<16x288xbf16, #tpu.memory_space<vmem>>, vector<16x288xbf16>
    %c0_1 = arith.constant 0 : index
    %c0_2 = arith.constant 0 : index
    %1 = vector.load %arg3[%c0_1, %c0_2] : memref<288x128xbf16, #tpu.memory_space<vmem>>, vector<288x128xbf16>
    %cst = arith.constant dense<0.000000e+00> : vector<16x128xf32>
    %2 = tpu.matmul %0, %1, %cst {dimension_numbers = #tpu.dot_dimension_numbers<[1], [0], [0], [1], [0, 0, 1, 1], [], []>} : vector<16x288xbf16>, vector<288x128xbf16>, vector<16x128xf32> -> vector<16x128xf32>
    %c0_3 = arith.constant 0 : index
    %c0_4 = arith.constant 0 : index
    %3 = vector.load %arg4[%c0_3, %c0_4] : memref<1x128xf32, #tpu.memory_space<vmem>>, vector<1x128xf32>
    %4 = vector.broadcast %3 : vector<1x128xf32> to vector<16x128xf32>
    %5 = arith.addf %2, %4 : vector<16x128xf32>
    %cst_5 = arith.constant 0.000000e+00 : f32
    %6 = vector.broadcast %cst_5 : f32 to vector<16x128xf32>
    %7 = arith.maximumf %5, %6 : vector<16x128xf32>
    %c0_6 = arith.constant 0 : index
    %c0_7 = arith.constant 0 : index
    %8 = vector.load %arg5[%c0_6, %c0_7] : memref<16x128xf32, #tpu.memory_space<vmem>>, vector<16x128xf32>
    tpu.vector_store %arg5[%c0_6, %c0_7], %7 {strides = array<i32>} : memref<16x128xf32, #tpu.memory_space<vmem>>, vector<16x128xf32>,
    return
  }
  func.func @transform_0(%arg0: i32, %arg1: i32) -> (i32, i32) {
    %c0_i32 = arith.constant 0 : i32
    %c0_i32_0 = arith.constant 0 : i32
    return %arg0, %c0_i32 : i32, i32
  }
  func.func @transform_1(%arg0: i32, %arg1: i32) -> (i32, i32) {
    %c0_i32 = arith.constant 0 : i32
    %c0_i32_0 = arith.constant 0 : i32
    return %c0_i32, %arg1 : i32, i32
  }
  func.func @transform_2(%arg0: i32, %arg1: i32) -> (i32, i32) {
    %c0_i32 = arith.constant 0 : i32
    %c0_i32_0 = arith.constant 0 : i32
    return %c0_i32, %arg1 : i32, i32
  }
  func.func @transform_3(%arg0: i32, %arg1: i32) -> (i32, i32) {
    %c0_i32 = arith.constant 0 : i32
    return %arg0, %arg1 : i32, i32
  }
}

module attributes {stable_mosaic.version = 11 : i64} {
  func.func @_matmul_bias_kernel(%arg0: i32, %arg1: i32, %arg2: memref<16x64xbf16, #tpu.memory_space<vmem>>, %arg3: memref<64x128xbf16, #tpu.memory_space<vmem>>, %arg4: memref<1x128xf32, #tpu.memory_space<vmem>>, %arg5: memref<16x128xf32, #tpu.memory_space<vmem>>) attributes {dimension_semantics = [#tpu.dimension_semantics<parallel>, #tpu.dimension_semantics<parallel>], iteration_bounds = array<i64: 1, 1>, scalar_prefetch = 0 : i64, scratch_operands = 0 : i64, tpu.core_type = #tpu.core_type<tc>, window_params = [{transform_indices = @transform_0, window_bounds = array<i64: 16, 64>}, {transform_indices = @transform_1, window_bounds = array<i64: 64, 128>}, {transform_indices = @transform_2, window_bounds = array<i64: 1, 128>}, {transform_indices = @transform_3, window_bounds = array<i64: 16, 128>}]} {
    %c0 = arith.constant 0 : index
    %c0_0 = arith.constant 0 : index
    %0 = vector.load %arg2[%c0, %c0_0] : memref<16x64xbf16, #tpu.memory_space<vmem>>, vector<16x64xbf16>
    %c0_1 = arith.constant 0 : index
    %c0_2 = arith.constant 0 : index
    %1 = vector.load %arg3[%c0_1, %c0_2] : memref<64x128xbf16, #tpu.memory_space<vmem>>, vector<64x128xbf16>
    %cst = arith.constant dense<0.000000e+00> : vector<16x128xf32>
    %2 = tpu.matmul %0, %1, %cst {dimension_numbers = #tpu.dot_dimension_numbers<[1], [0], [0], [1], [0, 0, 1, 1], [], []>} : vector<16x64xbf16>, vector<64x128xbf16>, vector<16x128xf32> -> vector<16x128xf32>
    %c0_3 = arith.constant 0 : index
    %c0_4 = arith.constant 0 : index
    %3 = vector.load %arg4[%c0_3, %c0_4] : memref<1x128xf32, #tpu.memory_space<vmem>>, vector<1x128xf32>
    %4 = vector.broadcast %3 : vector<1x128xf32> to vector<16x128xf32>
    %5 = arith.addf %2, %4 : vector<16x128xf32>
    %c0_5 = arith.constant 0 : index
    %c0_6 = arith.constant 0 : index
    %6 = vector.load %arg5[%c0_5, %c0_6] : memref<16x128xf32, #tpu.memory_space<vmem>>, vector<16x128xf32>
    tpu.vector_store %arg5[%c0_5, %c0_6], %5 {strides = array<i32>} : memref<16x128xf32, #tpu.memory_space<vmem>>, vector<16x128xf32>,
    return
  }
  func.func @transform_0(%arg0: i32, %arg1: i32) -> (i32, i32) {
    %c0_i32 = arith.constant 0 : i32
    %c0_i32_0 = arith.constant 0 : i32
    return %arg0, %c0_i32 : i32, i32
  }
  func.func @transform_1(%arg0: i32, %arg1: i32) -> (i32, i32) {
    %c0_i32 = arith.constant 0 : i32
    %c0_i32_0 = arith.constant 0 : i32
    return %c0_i32, %arg1 : i32, i32
  }
  func.func @transform_2(%arg0: i32, %arg1: i32) -> (i32, i32) {
    %c0_i32 = arith.constant 0 : i32
    %c0_i32_0 = arith.constant 0 : i32
    return %c0_i32, %arg1 : i32, i32
  }
  func.func @transform_3(%arg0: i32, %arg1: i32) -> (i32, i32) {
    %c0_i32 = arith.constant 0 : i32
    return %arg0, %arg1 : i32, i32
  }
}

module attributes {stable_mosaic.version = 11 : i64} {
  func.func @_matmul_bias_kernel(%arg0: i32, %arg1: i32, %arg2: memref<512x32xbf16, #tpu.memory_space<vmem>>, %arg3: memref<32x128xbf16, #tpu.memory_space<vmem>>, %arg4: memref<1x128xf32, #tpu.memory_space<vmem>>, %arg5: memref<512x128xf32, #tpu.memory_space<vmem>>) attributes {dimension_semantics = [#tpu.dimension_semantics<parallel>, #tpu.dimension_semantics<parallel>], iteration_bounds = array<i64: 1, 1>, scalar_prefetch = 0 : i64, scratch_operands = 0 : i64, tpu.core_type = #tpu.core_type<tc>, window_params = [{transform_indices = @transform_0, window_bounds = array<i64: 512, 32>}, {transform_indices = @transform_1, window_bounds = array<i64: 32, 128>}, {transform_indices = @transform_2, window_bounds = array<i64: 1, 128>}, {transform_indices = @transform_3, window_bounds = array<i64: 512, 128>}]} {
    %c0 = arith.constant 0 : index
    %c0_0 = arith.constant 0 : index
    %0 = vector.load %arg2[%c0, %c0_0] : memref<512x32xbf16, #tpu.memory_space<vmem>>, vector<512x32xbf16>
    %c0_1 = arith.constant 0 : index
    %c0_2 = arith.constant 0 : index
    %1 = vector.load %arg3[%c0_1, %c0_2] : memref<32x128xbf16, #tpu.memory_space<vmem>>, vector<32x128xbf16>
    %cst = arith.constant dense<0.000000e+00> : vector<512x128xf32>
    %2 = tpu.matmul %0, %1, %cst {dimension_numbers = #tpu.dot_dimension_numbers<[1], [0], [0], [1], [0, 0, 1, 1], [], []>} : vector<512x32xbf16>, vector<32x128xbf16>, vector<512x128xf32> -> vector<512x128xf32>
    %c0_3 = arith.constant 0 : index
    %c0_4 = arith.constant 0 : index
    %3 = vector.load %arg4[%c0_3, %c0_4] : memref<1x128xf32, #tpu.memory_space<vmem>>, vector<1x128xf32>
    %4 = vector.broadcast %3 : vector<1x128xf32> to vector<512x128xf32>
    %5 = arith.addf %2, %4 : vector<512x128xf32>
    %cst_5 = arith.constant 0.000000e+00 : f32
    %6 = vector.broadcast %cst_5 : f32 to vector<512x128xf32>
    %7 = arith.maximumf %5, %6 : vector<512x128xf32>
    %c0_6 = arith.constant 0 : index
    %c0_7 = arith.constant 0 : index
    %8 = vector.load %arg5[%c0_6, %c0_7] : memref<512x128xf32, #tpu.memory_space<vmem>>, vector<512x128xf32>
    tpu.vector_store %arg5[%c0_6, %c0_7], %7 {strides = array<i32>} : memref<512x128xf32, #tpu.memory_space<vmem>>, vector<512x128xf32>,
    return
  }
  func.func @transform_0(%arg0: i32, %arg1: i32) -> (i32, i32) {
    %c0_i32 = arith.constant 0 : i32
    %c0_i32_0 = arith.constant 0 : i32
    return %arg0, %c0_i32 : i32, i32
  }
  func.func @transform_1(%arg0: i32, %arg1: i32) -> (i32, i32) {
    %c0_i32 = arith.constant 0 : i32
    %c0_i32_0 = arith.constant 0 : i32
    return %c0_i32, %arg1 : i32, i32
  }
  func.func @transform_2(%arg0: i32, %arg1: i32) -> (i32, i32) {
    %c0_i32 = arith.constant 0 : i32
    %c0_i32_0 = arith.constant 0 : i32
    return %c0_i32, %arg1 : i32, i32
  }
  func.func @transform_3(%arg0: i32, %arg1: i32) -> (i32, i32) {
    %c0_i32 = arith.constant 0 : i32
    return %arg0, %arg1 : i32, i32
  }
}

module attributes {stable_mosaic.version = 11 : i64} {
  func.func @_matmul_bias_kernel(%arg0: i32, %arg1: i32, %arg2: memref<128x144xbf16, #tpu.memory_space<vmem>>, %arg3: memref<144x128xbf16, #tpu.memory_space<vmem>>, %arg4: memref<1x128xf32, #tpu.memory_space<vmem>>, %arg5: memref<128x128xf32, #tpu.memory_space<vmem>>) attributes {dimension_semantics = [#tpu.dimension_semantics<parallel>, #tpu.dimension_semantics<parallel>], iteration_bounds = array<i64: 1, 1>, scalar_prefetch = 0 : i64, scratch_operands = 0 : i64, tpu.core_type = #tpu.core_type<tc>, window_params = [{transform_indices = @transform_0, window_bounds = array<i64: 128, 144>}, {transform_indices = @transform_1, window_bounds = array<i64: 144, 128>}, {transform_indices = @transform_2, window_bounds = array<i64: 1, 128>}, {transform_indices = @transform_3, window_bounds = array<i64: 128, 128>}]} {
    %c0 = arith.constant 0 : index
    %c0_0 = arith.constant 0 : index
    %0 = vector.load %arg2[%c0, %c0_0] : memref<128x144xbf16, #tpu.memory_space<vmem>>, vector<128x144xbf16>
    %c0_1 = arith.constant 0 : index
    %c0_2 = arith.constant 0 : index
    %1 = vector.load %arg3[%c0_1, %c0_2] : memref<144x128xbf16, #tpu.memory_space<vmem>>, vector<144x128xbf16>
    %cst = arith.constant dense<0.000000e+00> : vector<128x128xf32>
    %2 = tpu.matmul %0, %1, %cst {dimension_numbers = #tpu.dot_dimension_numbers<[1], [0], [0], [1], [0, 0, 1, 1], [], []>} : vector<128x144xbf16>, vector<144x128xbf16>, vector<128x128xf32> -> vector<128x128xf32>
    %c0_3 = arith.constant 0 : index
    %c0_4 = arith.constant 0 : index
    %3 = vector.load %arg4[%c0_3, %c0_4] : memref<1x128xf32, #tpu.memory_space<vmem>>, vector<1x128xf32>
    %4 = vector.broadcast %3 : vector<1x128xf32> to vector<128x128xf32>
    %5 = arith.addf %2, %4 : vector<128x128xf32>
    %cst_5 = arith.constant 0.000000e+00 : f32
    %6 = vector.broadcast %cst_5 : f32 to vector<128x128xf32>
    %7 = arith.maximumf %5, %6 : vector<128x128xf32>
    %c0_6 = arith.constant 0 : index
    %c0_7 = arith.constant 0 : index
    %8 = vector.load %arg5[%c0_6, %c0_7] : memref<128x128xf32, #tpu.memory_space<vmem>>, vector<128x128xf32>
    tpu.vector_store %arg5[%c0_6, %c0_7], %7 {strides = array<i32>} : memref<128x128xf32, #tpu.memory_space<vmem>>, vector<128x128xf32>,
    return
  }
  func.func @transform_0(%arg0: i32, %arg1: i32) -> (i32, i32) {
    %c0_i32 = arith.constant 0 : i32
    %c0_i32_0 = arith.constant 0 : i32
    return %arg0, %c0_i32 : i32, i32
  }
  func.func @transform_1(%arg0: i32, %arg1: i32) -> (i32, i32) {
    %c0_i32 = arith.constant 0 : i32
    %c0_i32_0 = arith.constant 0 : i32
    return %c0_i32, %arg1 : i32, i32
  }
  func.func @transform_2(%arg0: i32, %arg1: i32) -> (i32, i32) {
    %c0_i32 = arith.constant 0 : i32
    %c0_i32_0 = arith.constant 0 : i32
    return %c0_i32, %arg1 : i32, i32
  }
  func.func @transform_3(%arg0: i32, %arg1: i32) -> (i32, i32) {
    %c0_i32 = arith.constant 0 : i32
    return %arg0, %arg1 : i32, i32
  }
}

module attributes {stable_mosaic.version = 11 : i64} {
  func.func @_matmul_bias_kernel(%arg0: i32, %arg1: i32, %arg2: memref<32x288xbf16, #tpu.memory_space<vmem>>, %arg3: memref<288x128xbf16, #tpu.memory_space<vmem>>, %arg4: memref<1x128xf32, #tpu.memory_space<vmem>>, %arg5: memref<32x128xf32, #tpu.memory_space<vmem>>) attributes {dimension_semantics = [#tpu.dimension_semantics<parallel>, #tpu.dimension_semantics<parallel>], iteration_bounds = array<i64: 1, 1>, scalar_prefetch = 0 : i64, scratch_operands = 0 : i64, tpu.core_type = #tpu.core_type<tc>, window_params = [{transform_indices = @transform_0, window_bounds = array<i64: 32, 288>}, {transform_indices = @transform_1, window_bounds = array<i64: 288, 128>}, {transform_indices = @transform_2, window_bounds = array<i64: 1, 128>}, {transform_indices = @transform_3, window_bounds = array<i64: 32, 128>}]} {
    %c0 = arith.constant 0 : index
    %c0_0 = arith.constant 0 : index
    %0 = vector.load %arg2[%c0, %c0_0] : memref<32x288xbf16, #tpu.memory_space<vmem>>, vector<32x288xbf16>
    %c0_1 = arith.constant 0 : index
    %c0_2 = arith.constant 0 : index
    %1 = vector.load %arg3[%c0_1, %c0_2] : memref<288x128xbf16, #tpu.memory_space<vmem>>, vector<288x128xbf16>
    %cst = arith.constant dense<0.000000e+00> : vector<32x128xf32>
    %2 = tpu.matmul %0, %1, %cst {dimension_numbers = #tpu.dot_dimension_numbers<[1], [0], [0], [1], [0, 0, 1, 1], [], []>} : vector<32x288xbf16>, vector<288x128xbf16>, vector<32x128xf32> -> vector<32x128xf32>
    %c0_3 = arith.constant 0 : index
    %c0_4 = arith.constant 0 : index
    %3 = vector.load %arg4[%c0_3, %c0_4] : memref<1x128xf32, #tpu.memory_space<vmem>>, vector<1x128xf32>
    %4 = vector.broadcast %3 : vector<1x128xf32> to vector<32x128xf32>
    %5 = arith.addf %2, %4 : vector<32x128xf32>
    %cst_5 = arith.constant 0.000000e+00 : f32
    %6 = vector.broadcast %cst_5 : f32 to vector<32x128xf32>
    %7 = arith.maximumf %5, %6 : vector<32x128xf32>
    %c0_6 = arith.constant 0 : index
    %c0_7 = arith.constant 0 : index
    %8 = vector.load %arg5[%c0_6, %c0_7] : memref<32x128xf32, #tpu.memory_space<vmem>>, vector<32x128xf32>
    tpu.vector_store %arg5[%c0_6, %c0_7], %7 {strides = array<i32>} : memref<32x128xf32, #tpu.memory_space<vmem>>, vector<32x128xf32>,
    return
  }
  func.func @transform_0(%arg0: i32, %arg1: i32) -> (i32, i32) {
    %c0_i32 = arith.constant 0 : i32
    %c0_i32_0 = arith.constant 0 : i32
    return %arg0, %c0_i32 : i32, i32
  }
  func.func @transform_1(%arg0: i32, %arg1: i32) -> (i32, i32) {
    %c0_i32 = arith.constant 0 : i32
    %c0_i32_0 = arith.constant 0 : i32
    return %c0_i32, %arg1 : i32, i32
  }
  func.func @transform_2(%arg0: i32, %arg1: i32) -> (i32, i32) {
    %c0_i32 = arith.constant 0 : i32
    %c0_i32_0 = arith.constant 0 : i32
    return %c0_i32, %arg1 : i32, i32
  }
  func.func @transform_3(%arg0: i32, %arg1: i32) -> (i32, i32) {
    %c0_i32 = arith.constant 0 : i32
    return %arg0, %arg1 : i32, i32
  }
}

module attributes {stable_mosaic.version = 11 : i64} {
  func.func @_matmul_bias_kernel(%arg0: i32, %arg1: i32, %arg2: memref<32x576xbf16, #tpu.memory_space<vmem>>, %arg3: memref<576x128xbf16, #tpu.memory_space<vmem>>, %arg4: memref<1x128xf32, #tpu.memory_space<vmem>>, %arg5: memref<32x128xf32, #tpu.memory_space<vmem>>) attributes {dimension_semantics = [#tpu.dimension_semantics<parallel>, #tpu.dimension_semantics<parallel>], iteration_bounds = array<i64: 1, 1>, scalar_prefetch = 0 : i64, scratch_operands = 0 : i64, tpu.core_type = #tpu.core_type<tc>, window_params = [{transform_indices = @transform_0, window_bounds = array<i64: 32, 576>}, {transform_indices = @transform_1, window_bounds = array<i64: 576, 128>}, {transform_indices = @transform_2, window_bounds = array<i64: 1, 128>}, {transform_indices = @transform_3, window_bounds = array<i64: 32, 128>}]} {
    %c0 = arith.constant 0 : index
    %c0_0 = arith.constant 0 : index
    %0 = vector.load %arg2[%c0, %c0_0] : memref<32x576xbf16, #tpu.memory_space<vmem>>, vector<32x576xbf16>
    %c0_1 = arith.constant 0 : index
    %c0_2 = arith.constant 0 : index
    %1 = vector.load %arg3[%c0_1, %c0_2] : memref<576x128xbf16, #tpu.memory_space<vmem>>, vector<576x128xbf16>
    %cst = arith.constant dense<0.000000e+00> : vector<32x128xf32>
    %2 = tpu.matmul %0, %1, %cst {dimension_numbers = #tpu.dot_dimension_numbers<[1], [0], [0], [1], [0, 0, 1, 1], [], []>} : vector<32x576xbf16>, vector<576x128xbf16>, vector<32x128xf32> -> vector<32x128xf32>
    %c0_3 = arith.constant 0 : index
    %c0_4 = arith.constant 0 : index
    %3 = vector.load %arg4[%c0_3, %c0_4] : memref<1x128xf32, #tpu.memory_space<vmem>>, vector<1x128xf32>
    %4 = vector.broadcast %3 : vector<1x128xf32> to vector<32x128xf32>
    %5 = arith.addf %2, %4 : vector<32x128xf32>
    %cst_5 = arith.constant 0.000000e+00 : f32
    %6 = vector.broadcast %cst_5 : f32 to vector<32x128xf32>
    %7 = arith.maximumf %5, %6 : vector<32x128xf32>
    %c0_6 = arith.constant 0 : index
    %c0_7 = arith.constant 0 : index
    %8 = vector.load %arg5[%c0_6, %c0_7] : memref<32x128xf32, #tpu.memory_space<vmem>>, vector<32x128xf32>
    tpu.vector_store %arg5[%c0_6, %c0_7], %7 {strides = array<i32>} : memref<32x128xf32, #tpu.memory_space<vmem>>, vector<32x128xf32>,
    return
  }
  func.func @transform_0(%arg0: i32, %arg1: i32) -> (i32, i32) {
    %c0_i32 = arith.constant 0 : i32
    %c0_i32_0 = arith.constant 0 : i32
    return %arg0, %c0_i32 : i32, i32
  }
  func.func @transform_1(%arg0: i32, %arg1: i32) -> (i32, i32) {
    %c0_i32 = arith.constant 0 : i32
    %c0_i32_0 = arith.constant 0 : i32
    return %c0_i32, %arg1 : i32, i32
  }
  func.func @transform_2(%arg0: i32, %arg1: i32) -> (i32, i32) {
    %c0_i32 = arith.constant 0 : i32
    %c0_i32_0 = arith.constant 0 : i32
    return %c0_i32, %arg1 : i32, i32
  }
  func.func @transform_3(%arg0: i32, %arg1: i32) -> (i32, i32) {
    %c0_i32 = arith.constant 0 : i32
    return %arg0, %arg1 : i32, i32
  }
}

module attributes {stable_mosaic.version = 11 : i64} {
  func.func @_matmul_bias_kernel(%arg0: i32, %arg1: i32, %arg2: memref<128x576xbf16, #tpu.memory_space<vmem>>, %arg3: memref<576x128xbf16, #tpu.memory_space<vmem>>, %arg4: memref<1x128xf32, #tpu.memory_space<vmem>>, %arg5: memref<128x128xf32, #tpu.memory_space<vmem>>) attributes {dimension_semantics = [#tpu.dimension_semantics<parallel>, #tpu.dimension_semantics<parallel>], iteration_bounds = array<i64: 1, 1>, scalar_prefetch = 0 : i64, scratch_operands = 0 : i64, tpu.core_type = #tpu.core_type<tc>, window_params = [{transform_indices = @transform_0, window_bounds = array<i64: 128, 576>}, {transform_indices = @transform_1, window_bounds = array<i64: 576, 128>}, {transform_indices = @transform_2, window_bounds = array<i64: 1, 128>}, {transform_indices = @transform_3, window_bounds = array<i64: 128, 128>}]} {
    %c0 = arith.constant 0 : index
    %c0_0 = arith.constant 0 : index
    %0 = vector.load %arg2[%c0, %c0_0] : memref<128x576xbf16, #tpu.memory_space<vmem>>, vector<128x576xbf16>
    %c0_1 = arith.constant 0 : index
    %c0_2 = arith.constant 0 : index
    %1 = vector.load %arg3[%c0_1, %c0_2] : memref<576x128xbf16, #tpu.memory_space<vmem>>, vector<576x128xbf16>
    %cst = arith.constant dense<0.000000e+00> : vector<128x128xf32>
    %2 = tpu.matmul %0, %1, %cst {dimension_numbers = #tpu.dot_dimension_numbers<[1], [0], [0], [1], [0, 0, 1, 1], [], []>} : vector<128x576xbf16>, vector<576x128xbf16>, vector<128x128xf32> -> vector<128x128xf32>
    %c0_3 = arith.constant 0 : index
    %c0_4 = arith.constant 0 : index
    %3 = vector.load %arg4[%c0_3, %c0_4] : memref<1x128xf32, #tpu.memory_space<vmem>>, vector<1x128xf32>
    %4 = vector.broadcast %3 : vector<1x128xf32> to vector<128x128xf32>
    %5 = arith.addf %2, %4 : vector<128x128xf32>
    %cst_5 = arith.constant 0.000000e+00 : f32
    %6 = vector.broadcast %cst_5 : f32 to vector<128x128xf32>
    %7 = arith.maximumf %5, %6 : vector<128x128xf32>
    %c0_6 = arith.constant 0 : index
    %c0_7 = arith.constant 0 : index
    %8 = vector.load %arg5[%c0_6, %c0_7] : memref<128x128xf32, #tpu.memory_space<vmem>>, vector<128x128xf32>
    tpu.vector_store %arg5[%c0_6, %c0_7], %7 {strides = array<i32>} : memref<128x128xf32, #tpu.memory_space<vmem>>, vector<128x128xf32>,
    return
  }
  func.func @transform_0(%arg0: i32, %arg1: i32) -> (i32, i32) {
    %c0_i32 = arith.constant 0 : i32
    %c0_i32_0 = arith.constant 0 : i32
    return %arg0, %c0_i32 : i32, i32
  }
  func.func @transform_1(%arg0: i32, %arg1: i32) -> (i32, i32) {
    %c0_i32 = arith.constant 0 : i32
    %c0_i32_0 = arith.constant 0 : i32
    return %c0_i32, %arg1 : i32, i32
  }
  func.func @transform_2(%arg0: i32, %arg1: i32) -> (i32, i32) {
    %c0_i32 = arith.constant 0 : i32
    %c0_i32_0 = arith.constant 0 : i32
    return %c0_i32, %arg1 : i32, i32
  }
  func.func @transform_3(%arg0: i32, %arg1: i32) -> (i32, i32) {
    %c0_i32 = arith.constant 0 : i32
    return %arg0, %arg1 : i32, i32
  }
}

module attributes {stable_mosaic.version = 11 : i64} {
  func.func @_matmul_bias_kernel(%arg0: i32, %arg1: i32, %arg2: memref<512x432xbf16, #tpu.memory_space<vmem>>, %arg3: memref<432x128xbf16, #tpu.memory_space<vmem>>, %arg4: memref<1x128xf32, #tpu.memory_space<vmem>>, %arg5: memref<512x128xf32, #tpu.memory_space<vmem>>) attributes {dimension_semantics = [#tpu.dimension_semantics<parallel>, #tpu.dimension_semantics<parallel>], iteration_bounds = array<i64: 1, 1>, scalar_prefetch = 0 : i64, scratch_operands = 0 : i64, tpu.core_type = #tpu.core_type<tc>, window_params = [{transform_indices = @transform_0, window_bounds = array<i64: 512, 432>}, {transform_indices = @transform_1, window_bounds = array<i64: 432, 128>}, {transform_indices = @transform_2, window_bounds = array<i64: 1, 128>}, {transform_indices = @transform_3, window_bounds = array<i64: 512, 128>}]} {
    %c0 = arith.constant 0 : index
    %c0_0 = arith.constant 0 : index
    %0 = vector.load %arg2[%c0, %c0_0] : memref<512x432xbf16, #tpu.memory_space<vmem>>, vector<512x432xbf16>
    %c0_1 = arith.constant 0 : index
    %c0_2 = arith.constant 0 : index
    %1 = vector.load %arg3[%c0_1, %c0_2] : memref<432x128xbf16, #tpu.memory_space<vmem>>, vector<432x128xbf16>
    %cst = arith.constant dense<0.000000e+00> : vector<512x128xf32>
    %2 = tpu.matmul %0, %1, %cst {dimension_numbers = #tpu.dot_dimension_numbers<[1], [0], [0], [1], [0, 0, 1, 1], [], []>} : vector<512x432xbf16>, vector<432x128xbf16>, vector<512x128xf32> -> vector<512x128xf32>
    %c0_3 = arith.constant 0 : index
    %c0_4 = arith.constant 0 : index
    %3 = vector.load %arg4[%c0_3, %c0_4] : memref<1x128xf32, #tpu.memory_space<vmem>>, vector<1x128xf32>
    %4 = vector.broadcast %3 : vector<1x128xf32> to vector<512x128xf32>
    %5 = arith.addf %2, %4 : vector<512x128xf32>
    %cst_5 = arith.constant 0.000000e+00 : f32
    %6 = vector.broadcast %cst_5 : f32 to vector<512x128xf32>
    %7 = arith.maximumf %5, %6 : vector<512x128xf32>
    %c0_6 = arith.constant 0 : index
    %c0_7 = arith.constant 0 : index
    %8 = vector.load %arg5[%c0_6, %c0_7] : memref<512x128xf32, #tpu.memory_space<vmem>>, vector<512x128xf32>
    tpu.vector_store %arg5[%c0_6, %c0_7], %7 {strides = array<i32>} : memref<512x128xf32, #tpu.memory_space<vmem>>, vector<512x128xf32>,
    return
  }
  func.func @transform_0(%arg0: i32, %arg1: i32) -> (i32, i32) {
    %c0_i32 = arith.constant 0 : i32
    %c0_i32_0 = arith.constant 0 : i32
    return %arg0, %c0_i32 : i32, i32
  }
  func.func @transform_1(%arg0: i32, %arg1: i32) -> (i32, i32) {
    %c0_i32 = arith.constant 0 : i32
    %c0_i32_0 = arith.constant 0 : i32
    return %c0_i32, %arg1 : i32, i32
  }
  func.func @transform_2(%arg0: i32, %arg1: i32) -> (i32, i32) {
    %c0_i32 = arith.constant 0 : i32
    %c0_i32_0 = arith.constant 0 : i32
    return %c0_i32, %arg1 : i32, i32
  }
  func.func @transform_3(%arg0: i32, %arg1: i32) -> (i32, i32) {
    %c0_i32 = arith.constant 0 : i32
    return %arg0, %arg1 : i32, i32
  }
}

module attributes {stable_mosaic.version = 11 : i64} {
  func.func @_smooth_kernel(%arg0: i32, %arg1: memref<1x32x32xf32, #tpu.memory_space<vmem>>, %arg2: memref<8x128xf32, #tpu.memory_space<vmem>>) attributes {dimension_semantics = [#tpu.dimension_semantics<arbitrary>], iteration_bounds = array<i64: 4>, scalar_prefetch = 0 : i64, scratch_operands = 0 : i64, tpu.core_type = #tpu.core_type<tc>, window_params = [{transform_indices = @transform_0, window_bounds = array<i64: 1, 32, 32>}, {pipeline_mode = #tpu.pipeline_mode<synchronous>, transform_indices = @transform_1, window_bounds = array<i64: 8, 128>}]} {
    %c0 = arith.constant 0 : index
    %c0_0 = arith.constant 0 : index
    %c0_1 = arith.constant 0 : index
    %0 = vector.load %arg1[%c0, %c0_0, %c0_1] : memref<1x32x32xf32, #tpu.memory_space<vmem>>, vector<1x32x32xf32>
    %1 = vector.shape_cast %0 : vector<1x32x32xf32> to vector<32x32xf32>
    %2 = vector.extract_strided_slice %1 {offsets = [0, 1], sizes = [32, 31], strides = [1, 1]} : vector<32x32xf32> to vector<32x31xf32>
    %3 = vector.extract_strided_slice %1 {offsets = [0, 0], sizes = [32, 31], strides = [1, 1]} : vector<32x32xf32> to vector<32x31xf32>
    %4 = arith.subf %2, %3 : vector<32x31xf32>
    %5 = vector.extract_strided_slice %1 {offsets = [1, 0], sizes = [31, 32], strides = [1, 1]} : vector<32x32xf32> to vector<31x32xf32>
    %6 = vector.extract_strided_slice %1 {offsets = [0, 0], sizes = [31, 32], strides = [1, 1]} : vector<32x32xf32> to vector<31x32xf32>
    %7 = arith.subf %5, %6 : vector<31x32xf32>
    %8 = vector.extract_strided_slice %4 {offsets = [0, 1], sizes = [32, 30], strides = [1, 1]} : vector<32x31xf32> to vector<32x30xf32>
    %9 = vector.extract_strided_slice %4 {offsets = [0, 0], sizes = [32, 30], strides = [1, 1]} : vector<32x31xf32> to vector<32x30xf32>
    %10 = arith.subf %8, %9 : vector<32x30xf32>
    %11 = vector.extract_strided_slice %4 {offsets = [1, 0], sizes = [31, 31], strides = [1, 1]} : vector<32x31xf32> to vector<31x31xf32>
    %12 = vector.extract_strided_slice %4 {offsets = [0, 0], sizes = [31, 31], strides = [1, 1]} : vector<32x31xf32> to vector<31x31xf32>
    %13 = arith.subf %11, %12 : vector<31x31xf32>
    %14 = vector.extract_strided_slice %7 {offsets = [0, 1], sizes = [31, 31], strides = [1, 1]} : vector<31x32xf32> to vector<31x31xf32>
    %15 = vector.extract_strided_slice %7 {offsets = [0, 0], sizes = [31, 31], strides = [1, 1]} : vector<31x32xf32> to vector<31x31xf32>
    %16 = arith.subf %14, %15 : vector<31x31xf32>
    %17 = vector.extract_strided_slice %7 {offsets = [1, 0], sizes = [30, 32], strides = [1, 1]} : vector<31x32xf32> to vector<30x32xf32>
    %18 = vector.extract_strided_slice %7 {offsets = [0, 0], sizes = [30, 32], strides = [1, 1]} : vector<31x32xf32> to vector<30x32xf32>
    %19 = arith.subf %17, %18 : vector<30x32xf32>
    %20 = math.absf %4 : vector<32x31xf32>
    %cst = arith.constant dense<0.000000e+00> : vector<32xf32>
    %21 = vector.multi_reduction <add>, %20, %cst [1] : vector<32x31xf32> to vector<32xf32>
    %22 = vector.shape_cast %21 : vector<32xf32> to vector<32x1xf32>
    %cst_2 = arith.constant dense<0.000000e+00> : vector<1xf32>
    %23 = vector.multi_reduction <add>, %22, %cst_2 [0] : vector<32x1xf32> to vector<1xf32>
    %24 = vector.shape_cast %23 : vector<1xf32> to vector<1x1xf32>
    %cst_3 = arith.constant 2.52016122E-4 : f32
    %25 = vector.broadcast %cst_3 : f32 to vector<1x1xf32>
    %26 = arith.mulf %24, %25 : vector<1x1xf32>
    %27 = math.absf %7 : vector<31x32xf32>
    %cst_4 = arith.constant dense<0.000000e+00> : vector<31xf32>
    %28 = vector.multi_reduction <add>, %27, %cst_4 [1] : vector<31x32xf32> to vector<31xf32>
    %29 = vector.shape_cast %28 : vector<31xf32> to vector<31x1xf32>
    %cst_5 = arith.constant dense<0.000000e+00> : vector<1xf32>
    %30 = vector.multi_reduction <add>, %29, %cst_5 [0] : vector<31x1xf32> to vector<1xf32>
    %31 = vector.shape_cast %30 : vector<1xf32> to vector<1x1xf32>
    %cst_6 = arith.constant 2.52016122E-4 : f32
    %32 = vector.broadcast %cst_6 : f32 to vector<1x1xf32>
    %33 = arith.mulf %31, %32 : vector<1x1xf32>
    %34 = arith.addf %26, %33 : vector<1x1xf32>
    %35 = math.absf %10 : vector<32x30xf32>
    %cst_7 = arith.constant dense<0.000000e+00> : vector<32xf32>
    %36 = vector.multi_reduction <add>, %35, %cst_7 [1] : vector<32x30xf32> to vector<32xf32>
    %37 = vector.shape_cast %36 : vector<32xf32> to vector<32x1xf32>
    %cst_8 = arith.constant dense<0.000000e+00> : vector<1xf32>
    %38 = vector.multi_reduction <add>, %37, %cst_8 [0] : vector<32x1xf32> to vector<1xf32>
    %39 = vector.shape_cast %38 : vector<1xf32> to vector<1x1xf32>
    %cst_9 = arith.constant 2.6041668E-4 : f32
    %40 = vector.broadcast %cst_9 : f32 to vector<1x1xf32>
    %41 = arith.mulf %39, %40 : vector<1x1xf32>
    %42 = arith.addf %34, %41 : vector<1x1xf32>
    %43 = math.absf %13 : vector<31x31xf32>
    %cst_10 = arith.constant dense<0.000000e+00> : vector<31xf32>
    %44 = vector.multi_reduction <add>, %43, %cst_10 [1] : vector<31x31xf32> to vector<31xf32>
    %45 = vector.shape_cast %44 : vector<31xf32> to vector<31x1xf32>
    %cst_11 = arith.constant dense<0.000000e+00> : vector<1xf32>
    %46 = vector.multi_reduction <add>, %45, %cst_11 [0] : vector<31x1xf32> to vector<1xf32>
    %47 = vector.shape_cast %46 : vector<1xf32> to vector<1x1xf32>
    %cst_12 = arith.constant 2.60145694E-4 : f32
    %48 = vector.broadcast %cst_12 : f32 to vector<1x1xf32>
    %49 = arith.mulf %47, %48 : vector<1x1xf32>
    %50 = arith.addf %42, %49 : vector<1x1xf32>
    %51 = math.absf %16 : vector<31x31xf32>
    %cst_13 = arith.constant dense<0.000000e+00> : vector<31xf32>
    %52 = vector.multi_reduction <add>, %51, %cst_13 [1] : vector<31x31xf32> to vector<31xf32>
    %53 = vector.shape_cast %52 : vector<31xf32> to vector<31x1xf32>
    %cst_14 = arith.constant dense<0.000000e+00> : vector<1xf32>
    %54 = vector.multi_reduction <add>, %53, %cst_14 [0] : vector<31x1xf32> to vector<1xf32>
    %55 = vector.shape_cast %54 : vector<1xf32> to vector<1x1xf32>
    %cst_15 = arith.constant 2.60145694E-4 : f32
    %56 = vector.broadcast %cst_15 : f32 to vector<1x1xf32>
    %57 = arith.mulf %55, %56 : vector<1x1xf32>
    %58 = arith.addf %50, %57 : vector<1x1xf32>
    %59 = math.absf %19 : vector<30x32xf32>
    %cst_16 = arith.constant dense<0.000000e+00> : vector<30xf32>
    %60 = vector.multi_reduction <add>, %59, %cst_16 [1] : vector<30x32xf32> to vector<30xf32>
    %61 = vector.shape_cast %60 : vector<30xf32> to vector<30x1xf32>
    %cst_17 = arith.constant dense<0.000000e+00> : vector<1xf32>
    %62 = vector.multi_reduction <add>, %61, %cst_17 [0] : vector<30x1xf32> to vector<1xf32>
    %63 = vector.shape_cast %62 : vector<1xf32> to vector<1x1xf32>
    %cst_18 = arith.constant 2.6041668E-4 : f32
    %64 = vector.broadcast %cst_18 : f32 to vector<1x1xf32>
    %65 = arith.mulf %63, %64 : vector<1x1xf32>
    %66 = arith.addf %58, %65 : vector<1x1xf32>
    %c0_i32 = arith.constant 0 : i32
    %67 = arith.cmpi eq, %arg0, %c0_i32 : i32
    %68 = arith.extui %67 : i1 to i32
    %c0_i32_19 = arith.constant 0 : i32
    %69 = arith.cmpi ne, %68, %c0_i32_19 : i32
    scf.if %69 {
      %cst_24 = arith.constant 0.000000e+00 : f32
      %75 = vector.broadcast %cst_24 : f32 to vector<8x128xf32>
      %c0_25 = arith.constant 0 : index
      %c0_26 = arith.constant 0 : index
      %76 = vector.load %arg2[%c0_25, %c0_26] : memref<8x128xf32, #tpu.memory_space<vmem>>, vector<8x128xf32>
      tpu.vector_store %arg2[%c0_25, %c0_26], %75 {strides = array<i32>} : memref<8x128xf32, #tpu.memory_space<vmem>>, vector<8x128xf32>,
    } else {
    }
    %c0_20 = arith.constant 0 : index
    %c0_21 = arith.constant 0 : index
    %70 = vector.load %arg2[%c0_20, %c0_21] : memref<8x128xf32, #tpu.memory_space<vmem>>, vector<8x128xf32>
    %71 = vector.shape_cast %66 : vector<1x1xf32> to vector<1x1xf32>
    %72 = vector.broadcast %71 : vector<1x1xf32> to vector<8x128xf32>
    %73 = arith.addf %70, %72 : vector<8x128xf32>
    %c0_22 = arith.constant 0 : index
    %c0_23 = arith.constant 0 : index
    %74 = vector.load %arg2[%c0_22, %c0_23] : memref<8x128xf32, #tpu.memory_space<vmem>>, vector<8x128xf32>
    tpu.vector_store %arg2[%c0_22, %c0_23], %73 {strides = array<i32>} : memref<8x128xf32, #tpu.memory_space<vmem>>, vector<8x128xf32>,
    return
  }
  func.func @transform_0(%arg0: i32) -> (i32, i32, i32) {
    %c0_i32 = arith.constant 0 : i32
    %c0_i32_0 = arith.constant 0 : i32
    %c0_i32_1 = arith.constant 0 : i32
    return %arg0, %c0_i32, %c0_i32_0 : i32, i32, i32
  }
  func.func @transform_1(%arg0: i32) -> (i32, i32) {
    %c0_i32 = arith.constant 0 : i32
    %c0_i32_0 = arith.constant 0 : i32
    %c0_i32_1 = arith.constant 0 : i32
    return %c0_i32, %c0_i32_0 : i32, i32
  }
}

module attributes {stable_mosaic.version = 11 : i64} {
  func.func @_loss_kernel(%arg0: i32, %arg1: memref<64x32xf32, #tpu.memory_space<vmem>>, %arg2: memref<64x32xf32, #tpu.memory_space<vmem>>, %arg3: memref<64x32xf32, #tpu.memory_space<vmem>>, %arg4: memref<64x32xf32, #tpu.memory_space<vmem>>, %arg5: memref<64x32xf32, #tpu.memory_space<vmem>>, %arg6: memref<64x32xf32, #tpu.memory_space<vmem>>, %arg7: memref<64x32xf32, #tpu.memory_space<vmem>>, %arg8: memref<8x128xf32, #tpu.memory_space<vmem>>) attributes {dimension_semantics = [#tpu.dimension_semantics<arbitrary>], iteration_bounds = array<i64: 1>, scalar_prefetch = 0 : i64, scratch_operands = 0 : i64, tpu.core_type = #tpu.core_type<tc>, window_params = [{transform_indices = @transform_0, window_bounds = array<i64: 64, 32>}, {transform_indices = @transform_1, window_bounds = array<i64: 64, 32>}, {transform_indices = @transform_2, window_bounds = array<i64: 64, 32>}, {transform_indices = @transform_3, window_bounds = array<i64: 64, 32>}, {transform_indices = @transform_4, window_bounds = array<i64: 64, 32>}, {transform_indices = @transform_5, window_bounds = array<i64: 64, 32>}, {transform_indices = @transform_6, window_bounds = array<i64: 64, 32>}, {pipeline_mode = #tpu.pipeline_mode<synchronous>, transform_indices = @transform_7, window_bounds = array<i64: 8, 128>}]} {
    %c0 = arith.constant 0 : index
    %c0_0 = arith.constant 0 : index
    %0 = vector.load %arg1[%c0, %c0_0] : memref<64x32xf32, #tpu.memory_space<vmem>>, vector<64x32xf32>
    %c0_1 = arith.constant 0 : index
    %c0_2 = arith.constant 0 : index
    %1 = vector.load %arg2[%c0_1, %c0_2] : memref<64x32xf32, #tpu.memory_space<vmem>>, vector<64x32xf32>
    %c0_3 = arith.constant 0 : index
    %c0_4 = arith.constant 0 : index
    %2 = vector.load %arg3[%c0_3, %c0_4] : memref<64x32xf32, #tpu.memory_space<vmem>>, vector<64x32xf32>
    %c0_5 = arith.constant 0 : index
    %c0_6 = arith.constant 0 : index
    %3 = vector.load %arg4[%c0_5, %c0_6] : memref<64x32xf32, #tpu.memory_space<vmem>>, vector<64x32xf32>
    %c0_7 = arith.constant 0 : index
    %c0_8 = arith.constant 0 : index
    %4 = vector.load %arg5[%c0_7, %c0_8] : memref<64x32xf32, #tpu.memory_space<vmem>>, vector<64x32xf32>
    %5 = arith.mulf %2, %2 : vector<64x32xf32>
    %6 = arith.subf %4, %5 : vector<64x32xf32>
    %c0_9 = arith.constant 0 : index
    %c0_10 = arith.constant 0 : index
    %7 = vector.load %arg6[%c0_9, %c0_10] : memref<64x32xf32, #tpu.memory_space<vmem>>, vector<64x32xf32>
    %8 = arith.mulf %3, %3 : vector<64x32xf32>
    %9 = arith.subf %7, %8 : vector<64x32xf32>
    %c0_11 = arith.constant 0 : index
    %c0_12 = arith.constant 0 : index
    %10 = vector.load %arg7[%c0_11, %c0_12] : memref<64x32xf32, #tpu.memory_space<vmem>>, vector<64x32xf32>
    %11 = arith.mulf %2, %3 : vector<64x32xf32>
    %12 = arith.subf %10, %11 : vector<64x32xf32>
    %13 = arith.subf %0, %1 : vector<64x32xf32>
    %14 = arith.subf %0, %1 : vector<64x32xf32>
    %15 = arith.mulf %13, %14 : vector<64x32xf32>
    %cst = arith.constant 9.99999997E-7 : f32
    %16 = vector.broadcast %cst : f32 to vector<64x32xf32>
    %17 = arith.addf %15, %16 : vector<64x32xf32>
    %18 = math.sqrt %17 : vector<64x32xf32>
    %cst_13 = arith.constant 2.000000e+00 : f32
    %19 = vector.broadcast %cst_13 : f32 to vector<64x32xf32>
    %20 = arith.mulf %19, %2 : vector<64x32xf32>
    %21 = arith.mulf %20, %3 : vector<64x32xf32>
    %cst_14 = arith.constant 9.99999974E-5 : f32
    %22 = vector.broadcast %cst_14 : f32 to vector<64x32xf32>
    %23 = arith.addf %21, %22 : vector<64x32xf32>
    %cst_15 = arith.constant 2.000000e+00 : f32
    %24 = vector.broadcast %cst_15 : f32 to vector<64x32xf32>
    %25 = arith.mulf %24, %12 : vector<64x32xf32>
    %cst_16 = arith.constant 8.99999984E-4 : f32
    %26 = vector.broadcast %cst_16 : f32 to vector<64x32xf32>
    %27 = arith.addf %25, %26 : vector<64x32xf32>
    %28 = arith.mulf %23, %27 : vector<64x32xf32>
    %29 = arith.mulf %2, %2 : vector<64x32xf32>
    %30 = arith.mulf %3, %3 : vector<64x32xf32>
    %31 = arith.addf %29, %30 : vector<64x32xf32>
    %cst_17 = arith.constant 9.99999974E-5 : f32
    %32 = vector.broadcast %cst_17 : f32 to vector<64x32xf32>
    %33 = arith.addf %31, %32 : vector<64x32xf32>
    %34 = arith.addf %6, %9 : vector<64x32xf32>
    %cst_18 = arith.constant 8.99999984E-4 : f32
    %35 = vector.broadcast %cst_18 : f32 to vector<64x32xf32>
    %36 = arith.addf %34, %35 : vector<64x32xf32>
    %37 = arith.mulf %33, %36 : vector<64x32xf32>
    %38 = arith.divf %28, %37 : vector<64x32xf32>
    %cst_19 = arith.constant 1.000000e+00 : f32
    %39 = vector.broadcast %cst_19 : f32 to vector<64x32xf32>
    %40 = arith.subf %39, %38 : vector<64x32xf32>
    %cst_20 = arith.constant 5.000000e-01 : f32
    %41 = vector.broadcast %cst_20 : f32 to vector<64x32xf32>
    %42 = arith.mulf %40, %41 : vector<64x32xf32>
    %cst_21 = arith.constant 0.000000e+00 : f32
    %cst_22 = arith.constant 1.000000e+00 : f32
    %43 = vector.broadcast %cst_21 : f32 to vector<64x32xf32>
    %44 = arith.maximumf %43, %42 : vector<64x32xf32>
    %45 = vector.broadcast %cst_22 : f32 to vector<64x32xf32>
    %46 = arith.minimumf %45, %44 : vector<64x32xf32>
    %cst_23 = arith.constant 1.000000e+00 : f32
    %47 = vector.broadcast %cst_23 : f32 to vector<64x32xf32>
    %48 = arith.mulf %47, %18 : vector<64x32xf32>
    %cst_24 = arith.constant 1.000000e+00 : f32
    %49 = vector.broadcast %cst_24 : f32 to vector<64x32xf32>
    %50 = arith.mulf %49, %46 : vector<64x32xf32>
    %51 = arith.addf %48, %50 : vector<64x32xf32>
    %c64_i32 = arith.constant 64 : i32
    %52 = arith.muli %arg0, %c64_i32 : i32
    %53 = tpu.iota {dimensions = array<i32: 0>} : vector<64x32xi32>
    %54 = vector.broadcast %52 : i32 to vector<64x32xi32>
    %55 = arith.addi %54, %53 : vector<64x32xi32>
    %c64_i32_25 = arith.constant 64 : i32
    %56 = vector.broadcast %c64_i32_25 : i32 to vector<64x32xi32>
    %57 = arith.cmpi slt, %55, %56 : vector<64x32xi32>
    %cst_26 = arith.constant 0.000000e+00 : f32
    %58 = vector.broadcast %cst_26 : f32 to vector<64x32xf32>
    %59 = arith.select %57, %51, %58 : vector<64x32xi1>, vector<64x32xf32>
    %cst_27 = arith.constant dense<0.000000e+00> : vector<64xf32>
    %60 = vector.multi_reduction <add>, %59, %cst_27 [1] : vector<64x32xf32> to vector<64xf32>
    %61 = vector.shape_cast %60 : vector<64xf32> to vector<64x1xf32>
    %cst_28 = arith.constant dense<0.000000e+00> : vector<1xf32>
    %62 = vector.multi_reduction <add>, %61, %cst_28 [0] : vector<64x1xf32> to vector<1xf32>
    %63 = vector.shape_cast %62 : vector<1xf32> to vector<1x1xf32>
    %cst_29 = arith.constant 4.8828125E-4 : f32
    %64 = vector.broadcast %cst_29 : f32 to vector<1x1xf32>
    %65 = arith.mulf %63, %64 : vector<1x1xf32>
    %c0_i32 = arith.constant 0 : i32
    %66 = arith.cmpi eq, %arg0, %c0_i32 : i32
    %67 = arith.extui %66 : i1 to i32
    %c0_i32_30 = arith.constant 0 : i32
    %68 = arith.cmpi ne, %67, %c0_i32_30 : i32
    scf.if %68 {
      %cst_35 = arith.constant 0.000000e+00 : f32
      %74 = vector.broadcast %cst_35 : f32 to vector<8x128xf32>
      %c0_36 = arith.constant 0 : index
      %c0_37 = arith.constant 0 : index
      %75 = vector.load %arg8[%c0_36, %c0_37] : memref<8x128xf32, #tpu.memory_space<vmem>>, vector<8x128xf32>
      tpu.vector_store %arg8[%c0_36, %c0_37], %74 {strides = array<i32>} : memref<8x128xf32, #tpu.memory_space<vmem>>, vector<8x128xf32>,
    } else {
    }
    %c0_31 = arith.constant 0 : index
    %c0_32 = arith.constant 0 : index
    %69 = vector.load %arg8[%c0_31, %c0_32] : memref<8x128xf32, #tpu.memory_space<vmem>>, vector<8x128xf32>
    %70 = vector.shape_cast %65 : vector<1x1xf32> to vector<1x1xf32>
    %71 = vector.broadcast %70 : vector<1x1xf32> to vector<8x128xf32>
    %72 = arith.addf %69, %71 : vector<8x128xf32>
    %c0_33 = arith.constant 0 : index
    %c0_34 = arith.constant 0 : index
    %73 = vector.load %arg8[%c0_33, %c0_34] : memref<8x128xf32, #tpu.memory_space<vmem>>, vector<8x128xf32>
    tpu.vector_store %arg8[%c0_33, %c0_34], %72 {strides = array<i32>} : memref<8x128xf32, #tpu.memory_space<vmem>>, vector<8x128xf32>,
    return
  }
  func.func @transform_0(%arg0: i32) -> (i32, i32) {
    %c0_i32 = arith.constant 0 : i32
    %c0_i32_0 = arith.constant 0 : i32
    return %arg0, %c0_i32 : i32, i32
  }
  func.func @transform_1(%arg0: i32) -> (i32, i32) {
    %c0_i32 = arith.constant 0 : i32
    %c0_i32_0 = arith.constant 0 : i32
    return %arg0, %c0_i32 : i32, i32
  }
  func.func @transform_2(%arg0: i32) -> (i32, i32) {
    %c0_i32 = arith.constant 0 : i32
    %c0_i32_0 = arith.constant 0 : i32
    return %arg0, %c0_i32 : i32, i32
  }
  func.func @transform_3(%arg0: i32) -> (i32, i32) {
    %c0_i32 = arith.constant 0 : i32
    %c0_i32_0 = arith.constant 0 : i32
    return %arg0, %c0_i32 : i32, i32
  }
  func.func @transform_4(%arg0: i32) -> (i32, i32) {
    %c0_i32 = arith.constant 0 : i32
    %c0_i32_0 = arith.constant 0 : i32
    return %arg0, %c0_i32 : i32, i32
  }
  func.func @transform_5(%arg0: i32) -> (i32, i32) {
    %c0_i32 = arith.constant 0 : i32
    %c0_i32_0 = arith.constant 0 : i32
    return %arg0, %c0_i32 : i32, i32
  }
  func.func @transform_6(%arg0: i32) -> (i32, i32) {
    %c0_i32 = arith.constant 0 : i32
    %c0_i32_0 = arith.constant 0 : i32
    return %arg0, %c0_i32 : i32, i32
  }
  func.func @transform_7(%arg0: i32) -> (i32, i32) {
    %c0_i32 = arith.constant 0 : i32
    %c0_i32_0 = arith.constant 0 : i32
    %c0_i32_1 = arith.constant 0 : i32
    return %c0_i32, %c0_i32_0 : i32, i32
  }
}

</mosaic_0001>

<bundles_post_ra>
// kernel: baseline_forward.15
= control target key start
LH: loop header
LB: loop body
LE: loop exit
PB: predicated region body
PF: predicated region fallthrough
CT: control target
= control target key end

     0   :  { %vm94_vm0 = vcmask 261120   ;;  %s424_s1 = inlined_call_operand.vmem [shape: bf16[32,128], index: 1, kind: input, shape index: {}]   ;;  %s425_s0 = inlined_call_operand.vmem [shape: bf16[128,32], index: 0, kind: input, shape index: {}]   ;;  %s426_s2 = inlined_call_operand.vmem [shape: f32[1,128], index: 2, kind: input, shape index: {}]   ;;  %s427_s3 = inlined_call_operand.vmem [shape: f32[128,128], index: 3, kind: output, shape index: {}]  }
   0x1   :  { %v305_v0 = vld [vmem:[%s424_s1] sm:$0xff]   ;;  %v306_v1 = vld [vmem:[%s424_s1 + $0x8] sm:$0xff]   ;;  %v311_v6 = vld [vmem:[%s425_s0 + $0x10] sm:$0xff]  }
   0x2   :  { %281 = vmatprep.subr.bf16.mxu0 %v305_v0  ;;  %301 = vmatprep.subr.bf16.mxu1 %v305_v0  ;;  %v307_v2 = vld [vmem:[%s425_s0] sm:$0xff]   ;;  %v309_v4 = vld [vmem:[%s425_s0 + $0x8] sm:$0xff]   ;;  %v312_v7 = vld [vmem:[%s425_s0 + $0x30] sm:$0xff]  }
   0x3   :  { %282 = vmatpush3.bf16.msra.mxu0 %v305_v0  ;;  %303 = vmatpush3.bf16.msra.mxu1 %v305_v0  ;;  %v308_v3 = vld [vmem:[%s425_s0 + $0x20] sm:$0xff]   ;;  %v310_v5 = vld [vmem:[%s425_s0 + $0x28] sm:$0xff]   ;;  %v313_v8 = vld [vmem:[%s425_s0 + $0x18] sm:$0xff]  }
   0x4   :  { %283 = vmatprep.subr.bf16.mxu0 %v306_v1  ;;  %302 = vmatprep.subr.bf16.mxu1 %v306_v1  ;;  %v314_v9 = vld [vmem:[%s425_s0 + $0x38] sm:$0xff]   ;;  %v252_v10 = vld [vmem:[%s426_s2] ss:$0 sm:$0xff] }
   0x5   :  { %285 = vmatprep.mubr.msk.bf16.mxu0 %vm94_vm0, %v307_v2  ;;  %293 = vmatprep.mubr.msk.bf16.mxu1 %vm94_vm0, %v308_v3 }
   0x7   :  { %284 = vmatpush3.bf16.msra.mxu0 %v306_v1  ;;  %304 = vmatpush3.bf16.msra.mxu1 %v306_v1 }
   0xa   :  { %286 = vmatmul.mubr.msk.bf16.vlgmr.msra.gmra.mrb[0].mxu0 %vm94_vm0, %v309_v4  ;;  %294 = vmatmul.mubr.msk.bf16.vlgmr.msra.gmra.mrb[0].mxu1 %vm94_vm0, %v310_v5 }
   0xb   :  { %289 = vmatprep.mubr.msk.bf16.mxu0 %vm94_vm0, %v311_v6  ;;  %297 = vmatprep.mubr.msk.bf16.mxu1 %vm94_vm0, %v312_v7 }
  0x12   :  { %290 = vmatmul.mubr.msk.bf16.gmra.mrb[4].mxu0 %vm94_vm0, %v313_v8  ;;  %298 = vmatmul.mubr.msk.bf16.gmra.mrb[4].mxu1 %vm94_vm0, %v314_v9 }
  0xdd   :  { %v287_v11 = vpop.f32.mrb[0].mxu0  ;;  %v295_v12 = vpop.f32.mrb[0].mxu1 }
  0xde   :  { %v162_v13 = vadd.f32 %v287_v11, %v252_v10  ;;  %v194_v14 = vadd.f32 %v295_v12, %v252_v10  ;;  %v153_v15 = vpop.f32.mrb[1].mxu0  ;;  %v185_v16 = vpop.f32.mrb[1].mxu1 }
  0xdf   :  { %v154_v17 = vadd.f32 %v252_v10, %v153_v15  ;;  %v186_v18 = vadd.f32 %v252_v10, %v185_v16  ;;  %v288_v19 = vpop.f32.mrb[2].mxu0  ;;  %v296_v20 = vpop.f32.mrb[2].mxu1 }
  0xe0   :  { %v218_v21 = vmax.f32 %v162_v13, 0.0  ;;  %v226_v22 = vmax.f32 %v194_v14, 0.0  ;;  %v165_v23 = vadd.f32 %v288_v19, %v252_v10  ;;  %v197_v24 = vadd.f32 %v296_v20, %v252_v10  ;;  %v156_v25 = vpop.f32.mrb[3].mxu0  ;;  %v188_v26 = vpop.f32.mrb[3].mxu1 }
  0xe1   :  { %v216_v27 = vmax.f32 %v154_v17, 0.0  ;;  %v224_v28 = vmax.f32 %v186_v18, 0.0  ;;  %v157_v29 = vadd.f32 %v252_v10, %v156_v25  ;;  %v189_v30 = vadd.f32 %v252_v10, %v188_v26 }
  0xe2   :  { %234 = vst [vmem:[%s427_s3 + $0x10] sm:$0xff] %v218_v21  ;;  %242 = vst [vmem:[%s427_s3 + $0x50] sm:$0xff] %v226_v22  ;;  %v219_v31 = vmax.f32 %v165_v23, 0.0  ;;  %v227_v32 = vmax.f32 %v197_v24, 0.0 }
  0xe3   :  { %232 = vst [vmem:[%s427_s3] sm:$0xff] %v216_v27  ;;  %240 = vst [vmem:[%s427_s3 + $0x40] sm:$0xff] %v224_v28  ;;  %v217_v33 = vmax.f32 %v157_v29, 0.0  ;;  %v225_v34 = vmax.f32 %v189_v30, 0.0 }
  0xe4   :  { %235 = vst [vmem:[%s427_s3 + $0x18] sm:$0xff] %v219_v31  ;;  %243 = vst [vmem:[%s427_s3 + $0x58] sm:$0xff] %v227_v32 }
  0xe5   :  { %233 = vst [vmem:[%s427_s3 + $0x8] sm:$0xff] %v217_v33  ;;  %241 = vst [vmem:[%s427_s3 + $0x48] sm:$0xff] %v225_v34  ;;  %v291_v35 = vpop.f32.mrb[4].mxu0  ;;  %v299_v36 = vpop.f32.mrb[4].mxu1 }
  0xe6   :  { %v178_v37 = vadd.f32 %v291_v35, %v252_v10  ;;  %v210_v38 = vadd.f32 %v299_v36, %v252_v10  ;;  %v169_v39 = vpop.f32.mrb[5].mxu0  ;;  %v201_v40 = vpop.f32.mrb[5].mxu1 }
  0xe7   :  { %v170_v41 = vadd.f32 %v252_v10, %v169_v39  ;;  %v202_v42 = vadd.f32 %v252_v10, %v201_v40  ;;  %v292_v43 = vpop.f32.mrb[6].mxu0  ;;  %v300_v44 = vpop.f32.mrb[6].mxu1 }
  0xe8   :  { %v222_v45 = vmax.f32 %v178_v37, 0.0  ;;  %v230_v46 = vmax.f32 %v210_v38, 0.0  ;;  %v181_v47 = vadd.f32 %v292_v43, %v252_v10  ;;  %v213_v48 = vadd.f32 %v300_v44, %v252_v10  ;;  %v172_v49 = vpop.f32.mrb[7].mxu0  ;;  %v204_v50 = vpop.f32.mrb[7].mxu1 }
  0xe9   :  { %v220_v51 = vmax.f32 %v170_v41, 0.0  ;;  %v228_v52 = vmax.f32 %v202_v42, 0.0  ;;  %v173_v53 = vadd.f32 %v252_v10, %v172_v49  ;;  %v205_v54 = vadd.f32 %v252_v10, %v204_v50 }
  0xea   :  { %238 = vst [vmem:[%s427_s3 + $0x30] sm:$0xff] %v222_v45  ;;  %246 = vst [vmem:[%s427_s3 + $0x70] sm:$0xff] %v230_v46  ;;  %v223_v55 = vmax.f32 %v181_v47, 0.0  ;;  %v231_v56 = vmax.f32 %v213_v48, 0.0 }
  0xeb   :  { %236 = vst [vmem:[%s427_s3 + $0x20] sm:$0xff] %v220_v51  ;;  %244 = vst [vmem:[%s427_s3 + $0x60] sm:$0xff] %v228_v52  ;;  %v221_v57 = vmax.f32 %v173_v53, 0.0  ;;  %v229_v58 = vmax.f32 %v205_v54, 0.0 }
  0xec   :  { %239 = vst [vmem:[%s427_s3 + $0x38] sm:$0xff] %v223_v55  ;;  %247 = vst [vmem:[%s427_s3 + $0x78] sm:$0xff] %v231_v56 }
  0xed   :  { %237 = vst [vmem:[%s427_s3 + $0x28] sm:$0xff] %v221_v57  ;;  %245 = vst [vmem:[%s427_s3 + $0x68] sm:$0xff] %v229_v58 }

// kernel: baseline_forward.16
= control target key start
LH: loop header
LB: loop body
LE: loop exit
PB: predicated region body
PF: predicated region fallthrough
CT: control target
= control target key end

     0   :  { %v234_v0 = vmov 0   ;;  %vm116_vm0 = vcmask 130048   ;;  %s309_s1 = inlined_call_operand.vmem [shape: bf16[144,128], index: 1, kind: input, shape index: {}]   ;;  %s310_s0 = inlined_call_operand.vmem [shape: bf16[32,144], index: 0, kind: input, shape index: {}]   ;;  %s311_s2 = inlined_call_operand.vmem [shape: f32[1,128], index: 2, kind: input, shape index: {}]   ;;  %s312_s3 = inlined_call_operand.vmem [shape: f32[32,128], index: 3, kind: output, shape index: {}]  }
   0x1   :  { %123 = vmatprep.subr.bf16.mxu0 %v234_v0  ;;  %200 = vmatprep.subr.bf16.mxu1 %v234_v0  ;;  %v219_v1 = vld [vmem:[%s309_s1] sm:$0xff]   ;;  %v220_v2 = vld [vmem:[%s309_s1 + $0x8] sm:$0xff]   ;;  %v221_v3 = vld [vmem:[%s309_s1 + $0x10] sm:$0xff]  }
   0x2   :  { %124 = vmatpush1.bf16.msra.mxu0 %v219_v1  ;;  %209 = vmatpush1.bf16.msra.mxu1 %v219_v1  ;;  %v222_v4 = vld [vmem:[%s309_s1 + $0x18] sm:$0xff]   ;;  %v230_v5 = vld [vmem:[%s310_s0 + $0x4] ss:$8 sps:$4 sm:$0xff]   ;;  %v225_v9 = vld [vmem:[%s309_s1 + $0x30] sm:$0xff]  }
   0x3   :  { %125 = vmatprep.subr.bf16.mxu0 %v234_v0  ;;  %201 = vmatprep.subr.bf16.mxu1 %v234_v0  ;;  %v233_v6 = vld [vmem:[%s310_s0 + $0x14] ss:$8 sps:$4 sm:$0xff]   ;;  %v223_v7 = vld [vmem:[%s309_s1 + $0x20] sm:$0xff]   ;;  %v224_v8 = vld [vmem:[%s309_s1 + $0x28] sm:$0xff]  }
   0x4   :  { %198 = vmatprep.mubr.msk.bf16.mxu0 %vm116_vm0, %v230_v5  ;;  %199 = vmatprep.mubr.msk.bf16.mxu1 %vm116_vm0, %v233_v6  ;;  %v226_v10 = vld [vmem:[%s309_s1 + $0x38] sm:$0xff]   ;;  %v227_v11 = vld [vmem:[%s309_s1 + $0x40] sm:$0xff]  }
   0x5   :  { %v228_v12 = vld [vmem:[%s310_s0] ss:$8 sps:$4 sm:$0xff]   ;;  %v231_v13 = vld [vmem:[%s310_s0 + $0x10] ss:$8 sps:$4 sm:$0xff]  }
   0x6   :  { %126 = vmatpush1.bf16.msra.mxu0 %v220_v2  ;;  %210 = vmatpush1.bf16.msra.mxu1 %v220_v2  ;;  %v184_v14 = vld [vmem:[%s311_s2] ss:$0 sm:$0xff] }
   0x7   :  { %127 = vmatprep.subr.bf16.mxu0 %v234_v0  ;;  %202 = vmatprep.subr.bf16.mxu1 %v234_v0 }
   0xa   :  { %128 = vmatpush1.bf16.msra.mxu0 %v221_v3  ;;  %211 = vmatpush1.bf16.msra.mxu1 %v221_v3 }
   0xb   :  { %129 = vmatprep.subr.bf16.mxu0 %v234_v0  ;;  %203 = vmatprep.subr.bf16.mxu1 %v234_v0 }
   0xe   :  { %130 = vmatpush1.bf16.msra.mxu0 %v222_v4  ;;  %212 = vmatpush1.bf16.msra.mxu1 %v222_v4 }
   0xf   :  { %131 = vmatprep.subr.bf16.mxu0 %v234_v0  ;;  %204 = vmatprep.subr.bf16.mxu1 %v234_v0 }
  0x12   :  { %132 = vmatpush1.bf16.msra.mxu0 %v223_v7  ;;  %213 = vmatpush1.bf16.msra.mxu1 %v223_v7 }
  0x13   :  { %133 = vmatprep.subr.bf16.mxu0 %v234_v0  ;;  %205 = vmatprep.subr.bf16.mxu1 %v234_v0 }
  0x16   :  { %134 = vmatpush1.bf16.msra.mxu0 %v224_v8  ;;  %214 = vmatpush1.bf16.msra.mxu1 %v224_v8 }
  0x17   :  { %135 = vmatprep.subr.bf16.mxu0 %v234_v0  ;;  %206 = vmatprep.subr.bf16.mxu1 %v234_v0 }
  0x1a   :  { %136 = vmatpush1.bf16.msra.mxu0 %v225_v9  ;;  %215 = vmatpush1.bf16.msra.mxu1 %v225_v9 }
  0x1b   :  { %137 = vmatprep.subr.bf16.mxu0 %v234_v0  ;;  %207 = vmatprep.subr.bf16.mxu1 %v234_v0 }
  0x1e   :  { %138 = vmatpush1.bf16.msra.mxu0 %v226_v10  ;;  %216 = vmatpush1.bf16.msra.mxu1 %v226_v10 }
  0x1f   :  { %139 = vmatprep.subr.bf16.mxu0 %v234_v0  ;;  %208 = vmatprep.subr.bf16.mxu1 %v234_v0 }
  0x22   :  { %140 = vmatpush1.bf16.msra.mxu0 %v227_v11  ;;  %217 = vmatpush1.bf16.msra.mxu1 %v227_v11 }
  0x25   :  { %156 = vmatmul.mubr.bf16.vlgmr.msra.gmra.mrb[0].mxu0 %v228_v12  ;;  %164 = vmatmul.mubr.bf16.vlgmr.msra.gmra.mrb[0].mxu1 %v231_v13 }
  0xf8   :  { %v157_v15 = vpop.f32.mrb[0].mxu0  ;;  %v165_v16 = vpop.f32.mrb[0].mxu1 }
  0xf9   :  { %v158_v17 = vadd.f32 %v184_v14, %v157_v15  ;;  %v166_v18 = vadd.f32 %v184_v14, %v165_v16  ;;  %v159_v19 = vpop.f32.mrb[1].mxu0  ;;  %v167_v20 = vpop.f32.mrb[1].mxu1 }
  0xfa   :  { %v160_v21 = vpop.f32.mrb[2].mxu0  ;;  %v168_v22 = vpop.f32.mrb[2].mxu1 }
  0xfb   :  { %v172_v23 = vmax.f32 %v158_v17, 0.0  ;;  %v174_v24 = vmax.f32 %v166_v18, 0.0  ;;  %v161_v25 = vadd.f32 %v184_v14, %v160_v21  ;;  %v169_v26 = vadd.f32 %v184_v14, %v168_v22  ;;  %v162_v27 = vpop.f32.mrb[3].mxu0  ;;  %v170_v28 = vpop.f32.mrb[3].mxu1 }
  0xfd   :  { %176 = vst [vmem:[%s312_s3] sm:$0xff] %v172_v23  ;;  %178 = vst [vmem:[%s312_s3 + $0x10] sm:$0xff] %v174_v24  ;;  %v173_v29 = vmax.f32 %v161_v25, 0.0  ;;  %v175_v30 = vmax.f32 %v169_v26, 0.0 }
  0xff   :  { %177 = vst [vmem:[%s312_s3 + $0x8] sm:$0xff] %v173_v29  ;;  %179 = vst [vmem:[%s312_s3 + $0x18] sm:$0xff] %v175_v30 }

// kernel: baseline_forward.17
= control target key start
LH: loop header
LB: loop body
LE: loop exit
PB: predicated region body
PF: predicated region fallthrough
CT: control target
= control target key end

     0   :  { %v359_v1 = vmov 0.0   ;;  %vm360_vm0 = vmmov 0   ;;  %vm185_vm1 = vcmask 261120   ;;  %s453_s1 = inlined_call_operand.vmem [shape: bf16[288,128], index: 1, kind: input, shape index: {}]   ;;  %s454_s0 = inlined_call_operand.vmem [shape: bf16[16,288], index: 0, kind: input, shape index: {}]   ;;  %s455_s2 = inlined_call_operand.vmem [shape: f32[1,128], index: 2, kind: input, shape index: {}]   ;;  %s456_s3 = inlined_call_operand.vmem [shape: f32[16,128], index: 3, kind: output, shape index: {}]  }
   0x1   :  { %v337_v0 = vld [vmem:[%s453_s1 + $0x40] sm:$0xff]   ;;  %327 = vmatprep.subr.bf16.mxu1 %v359_v1  ;;  %331 = vmatprep.mubr.msk.bf16.mxu1 %vm360_vm0, %v359_v1  ;;  %v339_v3 = vld [vmem:[%s453_s1 + $0x48] sm:$0xff]   ;;  %v341_v5 = vld [vmem:[%s453_s1 + $0x50] sm:$0xff]  }
   0x2   :  { %v338_v2 = vld [vmem:[%s453_s1] sm:$0xff]   ;;  %302 = vmatprep.subr.bf16.mxu0 %v337_v0  ;;  %v340_v4 = vld [vmem:[%s453_s1 + $0x8] sm:$0xff]   ;;  %v342_v6 = vld [vmem:[%s453_s1 + $0x10] sm:$0xff]  }
   0x3   :  { %303 = vmatpush3.bf16.msra.mxu0 %v338_v2  ;;  %v343_v7 = vld [vmem:[%s453_s1 + $0x58] sm:$0xff]   ;;  %v345_v9 = vld [vmem:[%s453_s1 + $0x60] sm:$0xff]   ;;  %v347_v12 = vld [vmem:[%s453_s1 + $0x68] sm:$0xff]  }
   0x4   :  { %304 = vmatprep.subr.bf16.mxu0 %v339_v3  ;;  %v344_v8 = vld [vmem:[%s453_s1 + $0x18] sm:$0xff]   ;;  %v351_v10 = vld [vmem:[%s453_s1 + $0x80] sm:$0xff]   ;;  %v348_v13 = vld [vmem:[%s453_s1 + $0x28] sm:$0xff]  }
   0x5   :  { %v346_v11 = vld [vmem:[%s453_s1 + $0x20] sm:$0xff]   ;;  %328 = vmatpush3.bf16.msra.mxu1 %v351_v10  ;;  %v357_v15 = vld [vmem:[%s453_s1 + $0x88] sm:$0xff]   ;;  %v349_v16 = vld [vmem:[%s453_s1 + $0x70] sm:$0xff]  }
   0x6   :  { %329 = vmatprep.subr.bf16.mxu1 %v359_v1  ;;  %v356_v14 = vld [vmem:[%s454_s0 + $0x4] ss:$12 sps:$4 sm:$0xff]   ;;  %v358_v17 = vld [vmem:[%s454_s0 + $0x8] ss:$12 sps:$4 sm:$0xff]   ;;  %v352_v19 = vld [vmem:[%s453_s1 + $0x78] sm:$0xff]  }
   0x7   :  { %305 = vmatpush3.bf16.msra.mxu0 %v340_v4  ;;  %221 = vmatprep.mubr.bf16.mxu0 %v356_v14  ;;  %v350_v18 = vld [vmem:[%s453_s1 + $0x30] sm:$0xff]   ;;  %v353_v20 = vld [vmem:[%s453_s1 + $0x38] sm:$0xff]   ;;  %v354_v21 = vld [vmem:[%s454_s0] ss:$12 sps:$4 sm:$0xff]  }
   0x8   :  { %306 = vmatprep.subr.bf16.mxu0 %v341_v5  ;;  %v279_v28 = vld [vmem:[%s455_s2] ss:$0 sm:$0xff] }
   0x9   :  { %330 = vmatpush3.bf16.msra.mxu1 %v357_v15 }
   0xb   :  { %307 = vmatpush3.bf16.msra.mxu0 %v342_v6 }
   0xc   :  { %308 = vmatprep.subr.bf16.mxu0 %v343_v7  ;;  %332 = vmatmul.mubr.msk.bf16.vlgmr.msra.gmra.mrb[0].mxu1 %vm185_vm1, %v358_v17 }
   0xf   :  { %309 = vmatpush3.bf16.msra.mxu0 %v344_v8 }
  0x10   :  { %310 = vmatprep.subr.bf16.mxu0 %v345_v9 }
  0x13   :  { %311 = vmatpush3.bf16.msra.mxu0 %v346_v11 }
  0x14   :  { %312 = vmatprep.subr.bf16.mxu0 %v347_v12 }
  0x17   :  { %313 = vmatpush3.bf16.msra.mxu0 %v348_v13 }
  0x18   :  { %314 = vmatprep.subr.bf16.mxu0 %v349_v16 }
  0x1b   :  { %315 = vmatpush3.bf16.msra.mxu0 %v350_v18 }
  0x1c   :  { %316 = vmatprep.subr.bf16.mxu0 %v352_v19 }
  0x1f   :  { %317 = vmatpush3.bf16.msra.mxu0 %v353_v20 }
  0x22   :  { %222 = vmatmul.mubr.bf16.vlgmr.msra.gmra.mrb[0].mxu0 %v354_v21 }
  0xdf   :  { %v264_v22 = vpop.f32.mrb[0].mxu1 }
  0xe0   :  { %v333_v23 = vpop.f32.mrb[1].mxu1 }
  0xe1   :  { %v267_v24 = vpop.f32.mrb[2].mxu1 }
  0xe2   :  { %v334_v25 = vpop.f32.mrb[3].mxu1 }
  0xf5   :  { %v318_v26 = vpop.f32.mrb[0].mxu0 }
  0xf6   :  { %v319_v27 = vpop.f32.mrb[1].mxu0 }
  0xf7   :  { %v320_v29 = vadd.f32 %v319_v27, %v318_v26  ;;  %v321_v30 = vpop.f32.mrb[2].mxu0 }
  0xf8   :  { %v322_v31 = vpop.f32.mrb[3].mxu0 }
  0xf9   :  { %v224_v32 = vadd.f32 %v320_v29, %v279_v28  ;;  %v323_v33 = vadd.f32 %v322_v31, %v321_v30 }
  0xfb   :  { %v265_v34 = vadd.f32 %v264_v22, %v224_v32  ;;  %v227_v35 = vadd.f32 %v323_v33, %v279_v28 }
  0xfd   :  { %v271_v36 = vmax.f32 %v265_v34, 0.0  ;;  %v268_v37 = vadd.f32 %v267_v24, %v227_v35 }
  0xff   :  { %273 = vst [vmem:[%s456_s3] sm:$0xff] %v271_v36  ;;  %v272_v38 = vmax.f32 %v268_v37, 0.0 }
 0x101   :  { %274 = vst [vmem:[%s456_s3 + $0x8] sm:$0xff] %v272_v38 }

// kernel: baseline_forward.18
= control target key start
LH: loop header
LB: loop body
LE: loop exit
PB: predicated region body
PF: predicated region fallthrough
CT: control target
= control target key end

     0   :  { %v143_v0 = vmov 0.0   ;;  %vm144_vm0 = vmmov 0   ;;  %vm61_vm1 = vcmask 523264   ;;  %s189_s1 = inlined_call_operand.vmem [shape: bf16[64,128], index: 1, kind: input, shape index: {}]   ;;  %s190_s0 = inlined_call_operand.vmem [shape: bf16[16,64], index: 0, kind: input, shape index: {}]   ;;  %s191_s2 = inlined_call_operand.vmem [shape: f32[1,128], index: 2, kind: input, shape index: {}]   ;;  %s192_s3 = inlined_call_operand.vmem [shape: f32[16,128], index: 3, kind: output, shape index: {}]  }
   0x1   :  { %124 = vmatprep.subr.bf16.mxu0 %v143_v0  ;;  %v138_v1 = vld [vmem:[%s189_s1] sm:$0xff]   ;;  %132 = vmatprep.mubr.msk.bf16.mxu0 %vm144_vm0, %v143_v0  ;;  %v139_v2 = vld [vmem:[%s189_s1 + $0x8] sm:$0xff]   ;;  %v140_v3 = vld [vmem:[%s189_s1 + $0x10] sm:$0xff]  }
   0x2   :  { %125 = vmatpush3.bf16.msra.mxu0 %v138_v1  ;;  %v141_v4 = vld [vmem:[%s189_s1 + $0x18] sm:$0xff]   ;;  %v142_v5 = vld [vmem:[%s190_s0] sm:$0xff]  }
   0x3   :  { %126 = vmatprep.subr.bf16.mxu0 %v143_v0  ;;  %v112_v6 = vld [vmem:[%s191_s2] ss:$0 sm:$0xff] }
   0x6   :  { %127 = vmatpush3.bf16.msra.mxu0 %v139_v2 }
   0x7   :  { %128 = vmatprep.subr.bf16.mxu0 %v143_v0 }
   0xa   :  { %129 = vmatpush3.bf16.msra.mxu0 %v140_v3 }
   0xb   :  { %130 = vmatprep.subr.bf16.mxu0 %v143_v0 }
   0xe   :  { %131 = vmatpush3.bf16.msra.mxu0 %v141_v4 }
  0x11   :  { %133 = vmatmul.mubr.msk.bf16.vlgmr.msra.gmra.mrb[0].mxu0 %vm61_vm1, %v142_v5 }
  0xe4   :  { %v99_v7 = vpop.f32.mrb[0].mxu0 }
  0xe5   :  { %v100_v8 = vadd.f32 %v112_v6, %v99_v7  ;;  %v134_v9 = vpop.f32.mrb[1].mxu0 }
  0xe6   :  { %v102_v10 = vpop.f32.mrb[2].mxu0 }
  0xe7   :  { %106 = vst [vmem:[%s192_s3] sm:$0xff] %v100_v8  ;;  %v103_v11 = vadd.f32 %v112_v6, %v102_v10  ;;  %v135_v12 = vpop.f32.mrb[3].mxu0 }
  0xe9   :  { %107 = vst [vmem:[%s192_s3 + $0x8] sm:$0xff] %v103_v11 }

// kernel: baseline_forward.19
= control target key start
LH: loop header
LB: loop body
LE: loop exit
PB: predicated region body
PF: predicated region fallthrough
CT: control target
= control target key end

     0   :  { %vm262_vm0 = vcmask 261120   ;;  %s1402_s1 = inlined_call_operand.vmem [shape: bf16[32,128], index: 1, kind: input, shape index: {}]   ;;  %s1403_s0 = inlined_call_operand.vmem [shape: bf16[512,32], index: 0, kind: input, shape index: {}]   ;;  %s1404_s2 = inlined_call_operand.vmem [shape: f32[1,128], index: 2, kind: input, shape index: {}]   ;;  %s1405_s3 = inlined_call_operand.vmem [shape: f32[512,128], index: 3, kind: output, shape index: {}]  }
   0x1   :  { %v953_v0 = vld [vmem:[%s1402_s1] sm:$0xff]   ;;  %v954_v1 = vld [vmem:[%s1402_s1 + $0x8] sm:$0xff]   ;;  %v959_v6 = vld [vmem:[%s1403_s0 + $0x10] sm:$0xff]  }
   0x2   :  { %881 = vmatprep.subr.bf16.mxu0 %v953_v0  ;;  %949 = vmatprep.subr.bf16.mxu1 %v953_v0  ;;  %v955_v2 = vld [vmem:[%s1403_s0] sm:$0xff]   ;;  %v957_v4 = vld [vmem:[%s1403_s0 + $0x8] sm:$0xff]   ;;  %v960_v7 = vld [vmem:[%s1403_s0 + $0x90] sm:$0xff]  }
   0x3   :  { %882 = vmatpush3.bf16.msra.mxu0 %v953_v0  ;;  %951 = vmatpush3.bf16.msra.mxu1 %v953_v0  ;;  %v956_v3 = vld [vmem:[%s1403_s0 + $0x80] sm:$0xff]   ;;  %v958_v5 = vld [vmem:[%s1403_s0 + $0x88] sm:$0xff]   ;;  %v961_v8 = vld [vmem:[%s1403_s0 + $0x18] sm:$0xff]  }
   0x4   :  { %883 = vmatprep.subr.bf16.mxu0 %v954_v1  ;;  %950 = vmatprep.subr.bf16.mxu1 %v954_v1  ;;  %v962_v9 = vld [vmem:[%s1403_s0 + $0x98] sm:$0xff]   ;;  %v963_v10 = vld [vmem:[%s1403_s0 + $0x20] sm:$0xff]   ;;  %v965_v12 = vld [vmem:[%s1403_s0 + $0x28] sm:$0xff]  }
   0x5   :  { %885 = vmatprep.mubr.msk.bf16.mxu0 %vm262_vm0, %v955_v2  ;;  %917 = vmatprep.mubr.msk.bf16.mxu1 %vm262_vm0, %v956_v3  ;;  %v964_v11 = vld [vmem:[%s1403_s0 + $0xa0] sm:$0xff]   ;;  %v966_v13 = vld [vmem:[%s1403_s0 + $0xa8] sm:$0xff]   ;;  %v967_v14 = vld [vmem:[%s1403_s0 + $0x30] sm:$0xff]  }
   0x6   :  { %v968_v15 = vld [vmem:[%s1403_s0 + $0xb0] sm:$0xff]   ;;  %v969_v16 = vld [vmem:[%s1403_s0 + $0x38] sm:$0xff]   ;;  %v971_v18 = vld [vmem:[%s1403_s0 + $0x40] sm:$0xff]  }
   0x7   :  { %884 = vmatpush3.bf16.msra.mxu0 %v954_v1  ;;  %952 = vmatpush3.bf16.msra.mxu1 %v954_v1  ;;  %v970_v17 = vld [vmem:[%s1403_s0 + $0xb8] sm:$0xff]   ;;  %v972_v19 = vld [vmem:[%s1403_s0 + $0xc0] sm:$0xff]   ;;  %v973_v20 = vld [vmem:[%s1403_s0 + $0x48] sm:$0xff]  }
   0x8   :  { %v974_v21 = vld [vmem:[%s1403_s0 + $0xc8] sm:$0xff]   ;;  %v975_v22 = vld [vmem:[%s1403_s0 + $0x50] sm:$0xff]   ;;  %v977_v24 = vld [vmem:[%s1403_s0 + $0x58] sm:$0xff]  }
   0x9   :  { %v976_v23 = vld [vmem:[%s1403_s0 + $0xd0] sm:$0xff]   ;;  %v978_v25 = vld [vmem:[%s1403_s0 + $0xd8] sm:$0xff]   ;;  %v979_v26 = vld [vmem:[%s1403_s0 + $0x60] sm:$0xff]  }
   0xa   :  { %886 = vmatmul.mubr.msk.bf16.vlgmr.msra.gmra.mrb[0].mxu0 %vm262_vm0, %v957_v4  ;;  %918 = vmatmul.mubr.msk.bf16.vlgmr.msra.gmra.mrb[0].mxu1 %vm262_vm0, %v958_v5  ;;  %v980_v27 = vld [vmem:[%s1403_s0 + $0xe0] sm:$0xff]   ;;  %v981_v28 = vld [vmem:[%s1403_s0 + $0x68] sm:$0xff]   ;;  %v983_v30 = vld [vmem:[%s1403_s0 + $0x70] sm:$0xff]  }
   0xb   :  { %889 = vmatprep.mubr.msk.bf16.mxu0 %vm262_vm0, %v959_v6  ;;  %921 = vmatprep.mubr.msk.bf16.mxu1 %vm262_vm0, %v960_v7  ;;  %v982_v29 = vld [vmem:[%s1403_s0 + $0xe8] sm:$0xff]   ;;  %v984_v31 = vld [vmem:[%s1403_s0 + $0xf0] sm:$0xff]   ;;  %v985_v32 = vld [vmem:[%s1403_s0 + $0x78] sm:$0xff]  }
   0xc   :  { %v986_v33 = vld [vmem:[%s1403_s0 + $0xf8] sm:$0xff]   ;;  %v1144_v34 = vld [vmem:[%s1404_s2] ss:$0 sm:$0xff] }
  0x12   :  { %890 = vmatmul.mubr.msk.bf16.gmra.mrb[4].mxu0 %vm262_vm0, %v961_v8  ;;  %922 = vmatmul.mubr.msk.bf16.gmra.mrb[4].mxu1 %vm262_vm0, %v962_v9 }
  0x13   :  { %893 = vmatprep.mubr.msk.bf16.mxu0 %vm262_vm0, %v963_v10  ;;  %925 = vmatprep.mubr.msk.bf16.mxu1 %vm262_vm0, %v964_v11 }
  0x1a   :  { %894 = vmatmul.mubr.msk.bf16.gmra.mrb[8].mxu0 %vm262_vm0, %v965_v12  ;;  %926 = vmatmul.mubr.msk.bf16.gmra.mrb[8].mxu1 %vm262_vm0, %v966_v13 }
  0x1b   :  { %897 = vmatprep.mubr.msk.bf16.mxu0 %vm262_vm0, %v967_v14  ;;  %929 = vmatprep.mubr.msk.bf16.mxu1 %vm262_vm0, %v968_v15 }
  0x22   :  { %898 = vmatmul.mubr.msk.bf16.gmra.mrb[12].mxu0 %vm262_vm0, %v969_v16  ;;  %930 = vmatmul.mubr.msk.bf16.gmra.mrb[12].mxu1 %vm262_vm0, %v970_v17 }
  0x23   :  { %901 = vmatprep.mubr.msk.bf16.mxu0 %vm262_vm0, %v971_v18  ;;  %933 = vmatprep.mubr.msk.bf16.mxu1 %vm262_vm0, %v972_v19 }
  0x2a   :  { %902 = vmatmul.mubr.msk.bf16.gmra.mrb[16].mxu0 %vm262_vm0, %v973_v20  ;;  %934 = vmatmul.mubr.msk.bf16.gmra.mrb[16].mxu1 %vm262_vm0, %v974_v21 }
  0x2b   :  { %905 = vmatprep.mubr.msk.bf16.mxu0 %vm262_vm0, %v975_v22  ;;  %937 = vmatprep.mubr.msk.bf16.mxu1 %vm262_vm0, %v976_v23 }
  0x32   :  { %906 = vmatmul.mubr.msk.bf16.gmra.mrb[20].mxu0 %vm262_vm0, %v977_v24  ;;  %938 = vmatmul.mubr.msk.bf16.gmra.mrb[20].mxu1 %vm262_vm0, %v978_v25 }
  0x33   :  { %909 = vmatprep.mubr.msk.bf16.mxu0 %vm262_vm0, %v979_v26  ;;  %941 = vmatprep.mubr.msk.bf16.mxu1 %vm262_vm0, %v980_v27 }
  0x3a   :  { %910 = vmatmul.mubr.msk.bf16.gmra.mrb[24].mxu0 %vm262_vm0, %v981_v28  ;;  %942 = vmatmul.mubr.msk.bf16.gmra.mrb[24].mxu1 %vm262_vm0, %v982_v29 }
  0x3b   :  { %913 = vmatprep.mubr.msk.bf16.mxu0 %vm262_vm0, %v983_v30  ;;  %945 = vmatprep.mubr.msk.bf16.mxu1 %vm262_vm0, %v984_v31 }
  0x42   :  { %914 = vmatmul.mubr.msk.bf16.gmra.mrb[28].mxu0 %vm262_vm0, %v985_v32  ;;  %946 = vmatmul.mubr.msk.bf16.gmra.mrb[28].mxu1 %vm262_vm0, %v986_v33 }
  0xdd   :  { %v887_v35 = vpop.f32.mrb[0].mxu0  ;;  %v919_v36 = vpop.f32.mrb[0].mxu1 }
  0xde   :  { %v402_v37 = vadd.f32 %v887_v35, %v1144_v34  ;;  %v530_v38 = vadd.f32 %v919_v36, %v1144_v34  ;;  %v393_v39 = vpop.f32.mrb[1].mxu0  ;;  %v521_v40 = vpop.f32.mrb[1].mxu1 }
  0xdf   :  { %v394_v41 = vadd.f32 %v1144_v34, %v393_v39  ;;  %v522_v42 = vadd.f32 %v1144_v34, %v521_v40  ;;  %v888_v43 = vpop.f32.mrb[2].mxu0  ;;  %v920_v44 = vpop.f32.mrb[2].mxu1 }
  0xe0   :  { %v650_v45 = vmax.f32 %v402_v37, 0.0  ;;  %v682_v46 = vmax.f32 %v530_v38, 0.0  ;;  %v405_v47 = vadd.f32 %v888_v43, %v1144_v34  ;;  %v533_v48 = vadd.f32 %v920_v44, %v1144_v34  ;;  %v396_v49 = vpop.f32.mrb[3].mxu0  ;;  %v524_v50 = vpop.f32.mrb[3].mxu1 }
  0xe1   :  { %v648_v51 = vmax.f32 %v394_v41, 0.0  ;;  %v680_v52 = vmax.f32 %v522_v42, 0.0  ;;  %v397_v53 = vadd.f32 %v1144_v34, %v396_v49  ;;  %v525_v54 = vadd.f32 %v1144_v34, %v524_v50 }
  0xe2   :  { %714 = vst [vmem:[%s1405_s3 + $0x10] sm:$0xff] %v650_v45  ;;  %746 = vst [vmem:[%s1405_s3 + $0x110] sm:$0xff] %v682_v46  ;;  %v651_v55 = vmax.f32 %v405_v47, 0.0  ;;  %v683_v56 = vmax.f32 %v533_v48, 0.0 }
  0xe3   :  { %712 = vst [vmem:[%s1405_s3] sm:$0xff] %v648_v51  ;;  %744 = vst [vmem:[%s1405_s3 + $0x100] sm:$0xff] %v680_v52  ;;  %v649_v57 = vmax.f32 %v397_v53, 0.0  ;;  %v681_v58 = vmax.f32 %v525_v54, 0.0 }
  0xe4   :  { %715 = vst [vmem:[%s1405_s3 + $0x18] sm:$0xff] %v651_v55  ;;  %747 = vst [vmem:[%s1405_s3 + $0x118] sm:$0xff] %v683_v56 }
  0xe5   :  { %713 = vst [vmem:[%s1405_s3 + $0x8] sm:$0xff] %v649_v57  ;;  %745 = vst [vmem:[%s1405_s3 + $0x108] sm:$0xff] %v681_v58  ;;  %v891_v59 = vpop.f32.mrb[4].mxu0  ;;  %v923_v60 = vpop.f32.mrb[4].mxu1 }
  0xe6   :  { %v418_v61 = vadd.f32 %v891_v59, %v1144_v34  ;;  %v546_v62 = vadd.f32 %v923_v60, %v1144_v34  ;;  %v409_v63 = vpop.f32.mrb[5].mxu0  ;;  %v537_v0 = vpop.f32.mrb[5].mxu1 }
  0xe7   :  { %v410_v1 = vadd.f32 %v1144_v34, %v409_v63  ;;  %v538_v2 = vadd.f32 %v1144_v34, %v537_v0  ;;  %v892_v3 = vpop.f32.mrb[6].mxu0  ;;  %v924_v4 = vpop.f32.mrb[6].mxu1 }
  0xe8   :  { %v654_v5 = vmax.f32 %v418_v61, 0.0  ;;  %v686_v6 = vmax.f32 %v546_v62, 0.0  ;;  %v421_v7 = vadd.f32 %v892_v3, %v1144_v34  ;;  %v549_v8 = vadd.f32 %v924_v4, %v1144_v34  ;;  %v412_v9 = vpop.f32.mrb[7].mxu0  ;;  %v540_v10 = vpop.f32.mrb[7].mxu1 }
  0xe9   :  { %v652_v11 = vmax.f32 %v410_v1, 0.0  ;;  %v684_v12 = vmax.f32 %v538_v2, 0.0  ;;  %v413_v13 = vadd.f32 %v1144_v34, %v412_v9  ;;  %v541_v14 = vadd.f32 %v1144_v34, %v540_v10 }
  0xea   :  { %718 = vst [vmem:[%s1405_s3 + $0x30] sm:$0xff] %v654_v5  ;;  %750 = vst [vmem:[%s1405_s3 + $0x130] sm:$0xff] %v686_v6  ;;  %v655_v15 = vmax.f32 %v421_v7, 0.0  ;;  %v687_v16 = vmax.f32 %v549_v8, 0.0 }
  0xeb   :  { %716 = vst [vmem:[%s1405_s3 + $0x20] sm:$0xff] %v652_v11  ;;  %748 = vst [vmem:[%s1405_s3 + $0x120] sm:$0xff] %v684_v12  ;;  %v653_v17 = vmax.f32 %v413_v13, 0.0  ;;  %v685_v18 = vmax.f32 %v541_v14, 0.0 }
  0xec   :  { %719 = vst [vmem:[%s1405_s3 + $0x38] sm:$0xff] %v655_v15  ;;  %751 = vst [vmem:[%s1405_s3 + $0x138] sm:$0xff] %v687_v16 }
  0xed   :  { %717 = vst [vmem:[%s1405_s3 + $0x28] sm:$0xff] %v653_v17  ;;  %749 = vst [vmem:[%s1405_s3 + $0x128] sm:$0xff] %v685_v18  ;;  %v895_v19 = vpop.f32.mrb[8].mxu0  ;;  %v927_v20 = vpop.f32.mrb[8].mxu1 }
  0xee   :  { %v434_v21 = vadd.f32 %v895_v19, %v1144_v34  ;;  %v562_v22 = vadd.f32 %v927_v20, %v1144_v34  ;;  %v425_v23 = vpop.f32.mrb[9].mxu0  ;;  %v553_v24 = vpop.f32.mrb[9].mxu1 }
  0xef   :  { %v426_v25 = vadd.f32 %v1144_v34, %v425_v23  ;;  %v554_v26 = vadd.f32 %v1144_v34, %v553_v24  ;;  %v896_v27 = vpop.f32.mrb[10].mxu0  ;;  %v928_v28 = vpop.f32.mrb[10].mxu1 }
  0xf0   :  { %v658_v29 = vmax.f32 %v434_v21, 0.0  ;;  %v690_v30 = vmax.f32 %v562_v22, 0.0  ;;  %v437_v31 = vadd.f32 %v896_v27, %v1144_v34  ;;  %v565_v32 = vadd.f32 %v928_v28, %v1144_v34  ;;  %v428_v33 = vpop.f32.mrb[11].mxu0  ;;  %v556_v35 = vpop.f32.mrb[11].mxu1 }
  0xf1   :  { %v656_v36 = vmax.f32 %v426_v25, 0.0  ;;  %v688_v37 = vmax.f32 %v554_v26, 0.0  ;;  %v429_v38 = vadd.f32 %v1144_v34, %v428_v33  ;;  %v557_v39 = vadd.f32 %v1144_v34, %v556_v35 }
  0xf2   :  { %722 = vst [vmem:[%s1405_s3 + $0x50] sm:$0xff] %v658_v29  ;;  %754 = vst [vmem:[%s1405_s3 + $0x150] sm:$0xff] %v690_v30  ;;  %v659_v40 = vmax.f32 %v437_v31, 0.0  ;;  %v691_v41 = vmax.f32 %v565_v32, 0.0 }
  0xf3   :  { %720 = vst [vmem:[%s1405_s3 + $0x40] sm:$0xff] %v656_v36  ;;  %752 = vst [vmem:[%s1405_s3 + $0x140] sm:$0xff] %v688_v37  ;;  %v657_v42 = vmax.f32 %v429_v38, 0.0  ;;  %v689_v43 = vmax.f32 %v557_v39, 0.0 }
  0xf4   :  { %723 = vst [vmem:[%s1405_s3 + $0x58] sm:$0xff] %v659_v40  ;;  %755 = vst [vmem:[%s1405_s3 + $0x158] sm:$0xff] %v691_v41 }
  0xf5   :  { %721 = vst [vmem:[%s1405_s3 + $0x48] sm:$0xff] %v657_v42  ;;  %753 = vst [vmem:[%s1405_s3 + $0x148] sm:$0xff] %v689_v43  ;;  %v899_v44 = vpop.f32.mrb[12].mxu0  ;;  %v931_v45 = vpop.f32.mrb[12].mxu1 }
  0xf6   :  { %v450_v46 = vadd.f32 %v899_v44, %v1144_v34  ;;  %v578_v47 = vadd.f32 %v931_v45, %v1144_v34  ;;  %v441_v48 = vpop.f32.mrb[13].mxu0  ;;  %v569_v49 = vpop.f32.mrb[13].mxu1 }
  0xf7   :  { %v442_v50 = vadd.f32 %v1144_v34, %v441_v48  ;;  %v570_v51 = vadd.f32 %v1144_v34, %v569_v49  ;;  %v900_v52 = vpop.f32.mrb[14].mxu0  ;;  %v932_v53 = vpop.f32.mrb[14].mxu1 }
  0xf8   :  { %v662_v54 = vmax.f32 %v450_v46, 0.0  ;;  %v694_v55 = vmax.f32 %v578_v47, 0.0  ;;  %v453_v56 = vadd.f32 %v900_v52, %v1144_v34  ;;  %v581_v57 = vadd.f32 %v932_v53, %v1144_v34  ;;  %v444_v58 = vpop.f32.mrb[15].mxu0  ;;  %v572_v59 = vpop.f32.mrb[15].mxu1 }
  0xf9   :  { %v660_v60 = vmax.f32 %v442_v50, 0.0  ;;  %v692_v61 = vmax.f32 %v570_v51, 0.0  ;;  %v445_v62 = vadd.f32 %v1144_v34, %v444_v58  ;;  %v573_v63 = vadd.f32 %v1144_v34, %v572_v59 }
  0xfa   :  { %726 = vst [vmem:[%s1405_s3 + $0x70] sm:$0xff] %v662_v54  ;;  %758 = vst [vmem:[%s1405_s3 + $0x170] sm:$0xff] %v694_v55  ;;  %v663_v0 = vmax.f32 %v453_v56, 0.0  ;;  %v695_v1 = vmax.f32 %v581_v57, 0.0 }
  0xfb   :  { %724 = vst [vmem:[%s1405_s3 + $0x60] sm:$0xff] %v660_v60  ;;  %756 = vst [vmem:[%s1405_s3 + $0x160] sm:$0xff] %v692_v61  ;;  %v661_v2 = vmax.f32 %v445_v62, 0.0  ;;  %v693_v3 = vmax.f32 %v573_v63, 0.0 }
  0xfc   :  { %727 = vst [vmem:[%s1405_s3 + $0x78] sm:$0xff] %v663_v0  ;;  %759 = vst [vmem:[%s1405_s3 + $0x178] sm:$0xff] %v695_v1 }
  0xfd   :  { %725 = vst [vmem:[%s1405_s3 + $0x68] sm:$0xff] %v661_v2  ;;  %757 = vst [vmem:[%s1405_s3 + $0x168] sm:$0xff] %v693_v3  ;;  %v903_v4 = vpop.f32.mrb[16].mxu0  ;;  %v935_v5 = vpop.f32.mrb[16].mxu1 }
  0xfe   :  { %v466_v6 = vadd.f32 %v903_v4, %v1144_v34  ;;  %v594_v7 = vadd.f32 %v935_v5, %v1144_v34  ;;  %v457_v8 = vpop.f32.mrb[17].mxu0  ;;  %v585_v9 = vpop.f32.mrb[17].mxu1 }
  0xff   :  { %v458_v10 = vadd.f32 %v1144_v34, %v457_v8  ;;  %v586_v11 = vadd.f32 %v1144_v34, %v585_v9  ;;  %v904_v12 = vpop.f32.mrb[18].mxu0  ;;  %v936_v13 = vpop.f32.mrb[18].mxu1 }
 0x100   :  { %v666_v14 = vmax.f32 %v466_v6, 0.0  ;;  %v698_v15 = vmax.f32 %v594_v7, 0.0  ;;  %v469_v16 = vadd.f32 %v904_v12, %v1144_v34  ;;  %v597_v17 = vadd.f32 %v936_v13, %v1144_v34  ;;  %v460_v18 = vpop.f32.mrb[19].mxu0  ;;  %v588_v19 = vpop.f32.mrb[19].mxu1 }
 0x101   :  { %v664_v20 = vmax.f32 %v458_v10, 0.0  ;;  %v696_v21 = vmax.f32 %v586_v11, 0.0  ;;  %v461_v22 = vadd.f32 %v1144_v34, %v460_v18  ;;  %v589_v23 = vadd.f32 %v1144_v34, %v588_v19 }
 0x102   :  { %730 = vst [vmem:[%s1405_s3 + $0x90] sm:$0xff] %v666_v14  ;;  %762 = vst [vmem:[%s1405_s3 + $0x190] sm:$0xff] %v698_v15  ;;  %v667_v24 = vmax.f32 %v469_v16, 0.0  ;;  %v699_v25 = vmax.f32 %v597_v17, 0.0 }
 0x103   :  { %728 = vst [vmem:[%s1405_s3 + $0x80] sm:$0xff] %v664_v20  ;;  %760 = vst [vmem:[%s1405_s3 + $0x180] sm:$0xff] %v696_v21  ;;  %v665_v26 = vmax.f32 %v461_v22, 0.0  ;;  %v697_v27 = vmax.f32 %v589_v23, 0.0 }
 0x104   :  { %731 = vst [vmem:[%s1405_s3 + $0x98] sm:$0xff] %v667_v24  ;;  %763 = vst [vmem:[%s1405_s3 + $0x198] sm:$0xff] %v699_v25 }
 0x105   :  { %729 = vst [vmem:[%s1405_s3 + $0x88] sm:$0xff] %v665_v26  ;;  %761 = vst [vmem:[%s1405_s3 + $0x188] sm:$0xff] %v697_v27  ;;  %v907_v28 = vpop.f32.mrb[20].mxu0  ;;  %v939_v29 = vpop.f32.mrb[20].mxu1 }
 0x106   :  { %v482_v30 = vadd.f32 %v907_v28, %v1144_v34  ;;  %v610_v31 = vadd.f32 %v939_v29, %v1144_v34  ;;  %v473_v32 = vpop.f32.mrb[21].mxu0  ;;  %v601_v33 = vpop.f32.mrb[21].mxu1 }
 0x107   :  { %v474_v35 = vadd.f32 %v1144_v34, %v473_v32  ;;  %v602_v36 = vadd.f32 %v1144_v34, %v601_v33  ;;  %v908_v37 = vpop.f32.mrb[22].mxu0  ;;  %v940_v38 = vpop.f32.mrb[22].mxu1 }
 0x108   :  { %v670_v39 = vmax.f32 %v482_v30, 0.0  ;;  %v702_v40 = vmax.f32 %v610_v31, 0.0  ;;  %v485_v41 = vadd.f32 %v908_v37, %v1144_v34  ;;  %v613_v42 = vadd.f32 %v940_v38, %v1144_v34  ;;  %v476_v43 = vpop.f32.mrb[23].mxu0  ;;  %v604_v44 = vpop.f32.mrb[23].mxu1 }
 0x109   :  { %v668_v45 = vmax.f32 %v474_v35, 0.0  ;;  %v700_v46 = vmax.f32 %v602_v36, 0.0  ;;  %v477_v47 = vadd.f32 %v1144_v34, %v476_v43  ;;  %v605_v48 = vadd.f32 %v1144_v34, %v604_v44 }
 0x10a   :  { %734 = vst [vmem:[%s1405_s3 + $0xb0] sm:$0xff] %v670_v39  ;;  %766 = vst [vmem:[%s1405_s3 + $0x1b0] sm:$0xff] %v702_v40  ;;  %v671_v49 = vmax.f32 %v485_v41, 0.0  ;;  %v703_v50 = vmax.f32 %v613_v42, 0.0 }
 0x10b   :  { %732 = vst [vmem:[%s1405_s3 + $0xa0] sm:$0xff] %v668_v45  ;;  %764 = vst [vmem:[%s1405_s3 + $0x1a0] sm:$0xff] %v700_v46  ;;  %v669_v51 = vmax.f32 %v477_v47, 0.0  ;;  %v701_v52 = vmax.f32 %v605_v48, 0.0 }
 0x10c   :  { %735 = vst [vmem:[%s1405_s3 + $0xb8] sm:$0xff] %v671_v49  ;;  %767 = vst [vmem:[%s1405_s3 + $0x1b8] sm:$0xff] %v703_v50 }
 0x10d   :  { %733 = vst [vmem:[%s1405_s3 + $0xa8] sm:$0xff] %v669_v51  ;;  %765 = vst [vmem:[%s1405_s3 + $0x1a8] sm:$0xff] %v701_v52  ;;  %v911_v53 = vpop.f32.mrb[24].mxu0  ;;  %v943_v54 = vpop.f32.mrb[24].mxu1 }
 0x10e   :  { %v498_v55 = vadd.f32 %v911_v53, %v1144_v34  ;;  %v626_v56 = vadd.f32 %v943_v54, %v1144_v34  ;;  %v489_v57 = vpop.f32.mrb[25].mxu0  ;;  %v617_v58 = vpop.f32.mrb[25].mxu1 }
 0x10f   :  { %v490_v59 = vadd.f32 %v1144_v34, %v489_v57  ;;  %v618_v60 = vadd.f32 %v1144_v34, %v617_v58  ;;  %v912_v61 = vpop.f32.mrb[26].mxu0  ;;  %v944_v62 = vpop.f32.mrb[26].mxu1 }
 0x110   :  { %v674_v63 = vmax.f32 %v498_v55, 0.0  ;;  %v706_v0 = vmax.f32 %v626_v56, 0.0  ;;  %v501_v1 = vadd.f32 %v912_v61, %v1144_v34  ;;  %v629_v2 = vadd.f32 %v944_v62, %v1144_v34  ;;  %v492_v3 = vpop.f32.mrb[27].mxu0  ;;  %v620_v4 = vpop.f32.mrb[27].mxu1 }
 0x111   :  { %v672_v5 = vmax.f32 %v490_v59, 0.0  ;;  %v704_v6 = vmax.f32 %v618_v60, 0.0  ;;  %v493_v7 = vadd.f32 %v1144_v34, %v492_v3  ;;  %v621_v8 = vadd.f32 %v1144_v34, %v620_v4 }
 0x112   :  { %738 = vst [vmem:[%s1405_s3 + $0xd0] sm:$0xff] %v674_v63  ;;  %770 = vst [vmem:[%s1405_s3 + $0x1d0] sm:$0xff] %v706_v0  ;;  %v675_v9 = vmax.f32 %v501_v1, 0.0  ;;  %v707_v10 = vmax.f32 %v629_v2, 0.0 }
 0x113   :  { %736 = vst [vmem:[%s1405_s3 + $0xc0] sm:$0xff] %v672_v5  ;;  %768 = vst [vmem:[%s1405_s3 + $0x1c0] sm:$0xff] %v704_v6  ;;  %v673_v11 = vmax.f32 %v493_v7, 0.0  ;;  %v705_v12 = vmax.f32 %v621_v8, 0.0 }
 0x114   :  { %739 = vst [vmem:[%s1405_s3 + $0xd8] sm:$0xff] %v675_v9  ;;  %771 = vst [vmem:[%s1405_s3 + $0x1d8] sm:$0xff] %v707_v10 }
 0x115   :  { %737 = vst [vmem:[%s1405_s3 + $0xc8] sm:$0xff] %v673_v11  ;;  %769 = vst [vmem:[%s1405_s3 + $0x1c8] sm:$0xff] %v705_v12  ;;  %v915_v13 = vpop.f32.mrb[28].mxu0  ;;  %v947_v14 = vpop.f32.mrb[28].mxu1 }
 0x116   :  { %v514_v15 = vadd.f32 %v915_v13, %v1144_v34  ;;  %v642_v16 = vadd.f32 %v947_v14, %v1144_v34  ;;  %v505_v17 = vpop.f32.mrb[29].mxu0  ;;  %v633_v18 = vpop.f32.mrb[29].mxu1 }
 0x117   :  { %v506_v19 = vadd.f32 %v1144_v34, %v505_v17  ;;  %v634_v20 = vadd.f32 %v1144_v34, %v633_v18  ;;  %v916_v21 = vpop.f32.mrb[30].mxu0  ;;  %v948_v22 = vpop.f32.mrb[30].mxu1 }
 0x118   :  { %v678_v23 = vmax.f32 %v514_v15, 0.0  ;;  %v710_v24 = vmax.f32 %v642_v16, 0.0  ;;  %v517_v25 = vadd.f32 %v916_v21, %v1144_v34  ;;  %v645_v26 = vadd.f32 %v948_v22, %v1144_v34  ;;  %v508_v27 = vpop.f32.mrb[31].mxu0  ;;  %v636_v28 = vpop.f32.mrb[31].mxu1 }
 0x119   :  { %v676_v29 = vmax.f32 %v506_v19, 0.0  ;;  %v708_v30 = vmax.f32 %v634_v20, 0.0  ;;  %v509_v31 = vadd.f32 %v1144_v34, %v508_v27  ;;  %v637_v32 = vadd.f32 %v1144_v34, %v636_v28 }
 0x11a   :  { %742 = vst [vmem:[%s1405_s3 + $0xf0] sm:$0xff] %v678_v23  ;;  %774 = vst [vmem:[%s1405_s3 + $0x1f0] sm:$0xff] %v710_v24  ;;  %v679_v33 = vmax.f32 %v517_v25, 0.0  ;;  %v711_v35 = vmax.f32 %v645_v26, 0.0 }
 0x11b   :  { %740 = vst [vmem:[%s1405_s3 + $0xe0] sm:$0xff] %v676_v29  ;;  %772 = vst [vmem:[%s1405_s3 + $0x1e0] sm:$0xff] %v708_v30  ;;  %v677_v36 = vmax.f32 %v509_v31, 0.0  ;;  %v709_v34 = vmax.f32 %v637_v32, 0.0 }
 0x11c   :  { %743 = vst [vmem:[%s1405_s3 + $0xf8] sm:$0xff] %v679_v33  ;;  %775 = vst [vmem:[%s1405_s3 + $0x1f8] sm:$0xff] %v711_v35 }
 0x11d   :  { %741 = vst [vmem:[%s1405_s3 + $0xe8] sm:$0xff] %v677_v36  ;;  %773 = vst [vmem:[%s1405_s3 + $0x1e8] sm:$0xff] %v709_v34 }

// kernel: baseline_forward.20
= control target key start
LH: loop header
LB: loop body
LE: loop exit
PB: predicated region body
PF: predicated region fallthrough
CT: control target
= control target key end

     0   :  { %v426_v0 = vmov 0   ;;  %vm182_vm0 = vcmask 130048   ;;  %s599_s1 = inlined_call_operand.vmem [shape: bf16[144,128], index: 1, kind: input, shape index: {}]   ;;  %s600_s0 = inlined_call_operand.vmem [shape: bf16[128,144], index: 0, kind: input, shape index: {}]   ;;  %s601_s2 = inlined_call_operand.vmem [shape: f32[1,128], index: 2, kind: input, shape index: {}]   ;;  %s602_s3 = inlined_call_operand.vmem [shape: f32[128,128], index: 3, kind: output, shape index: {}]  }
   0x1   :  { %207 = vmatprep.subr.bf16.mxu0 %v426_v0  ;;  %374 = vmatprep.subr.bf16.mxu1 %v426_v0  ;;  %v393_v1 = vld [vmem:[%s599_s1] sm:$0xff]   ;;  %v394_v2 = vld [vmem:[%s599_s1 + $0x8] sm:$0xff]   ;;  %v395_v3 = vld [vmem:[%s599_s1 + $0x10] sm:$0xff]  }
   0x2   :  { %208 = vmatpush1.bf16.msra.mxu0 %v393_v1  ;;  %383 = vmatpush1.bf16.msra.mxu1 %v393_v1  ;;  %v396_v4 = vld [vmem:[%s599_s1 + $0x18] sm:$0xff]   ;;  %v404_v5 = vld [vmem:[%s600_s0 + $0x4] ss:$8 sps:$4 sm:$0xff]   ;;  %v399_v9 = vld [vmem:[%s599_s1 + $0x30] sm:$0xff]  }
   0x3   :  { %209 = vmatprep.subr.bf16.mxu0 %v426_v0  ;;  %375 = vmatprep.subr.bf16.mxu1 %v426_v0  ;;  %v407_v6 = vld [vmem:[%s600_s0 + $0x44] ss:$8 sps:$4 sm:$0xff]   ;;  %v400_v10 = vld [vmem:[%s599_s1 + $0x38] sm:$0xff]   ;;  %v402_v12 = vld [vmem:[%s600_s0] ss:$8 sps:$4 sm:$0xff]  }
   0x4   :  { %366 = vmatprep.mubr.msk.bf16.mxu0 %vm182_vm0, %v404_v5  ;;  %370 = vmatprep.mubr.msk.bf16.mxu1 %vm182_vm0, %v407_v6  ;;  %v397_v7 = vld [vmem:[%s599_s1 + $0x20] sm:$0xff]   ;;  %v398_v8 = vld [vmem:[%s599_s1 + $0x28] sm:$0xff]   ;;  %v408_v14 = vld [vmem:[%s600_s0 + $0x14] ss:$8 sps:$4 sm:$0xff]  }
   0x5   :  { %v401_v11 = vld [vmem:[%s599_s1 + $0x40] sm:$0xff]   ;;  %v410_v15 = vld [vmem:[%s600_s0 + $0x54] ss:$8 sps:$4 sm:$0xff]   ;;  %v412_v16 = vld [vmem:[%s600_s0 + $0x10] ss:$8 sps:$4 sm:$0xff]  }
   0x6   :  { %210 = vmatpush1.bf16.msra.mxu0 %v394_v2  ;;  %384 = vmatpush1.bf16.msra.mxu1 %v394_v2  ;;  %v405_v13 = vld [vmem:[%s600_s0 + $0x40] ss:$8 sps:$4 sm:$0xff]   ;;  %v413_v17 = vld [vmem:[%s600_s0 + $0x50] ss:$8 sps:$4 sm:$0xff]   ;;  %v414_v18 = vld [vmem:[%s600_s0 + $0x24] ss:$8 sps:$4 sm:$0xff]  }
   0x7   :  { %211 = vmatprep.subr.bf16.mxu0 %v426_v0  ;;  %376 = vmatprep.subr.bf16.mxu1 %v426_v0  ;;  %v416_v19 = vld [vmem:[%s600_s0 + $0x64] ss:$8 sps:$4 sm:$0xff]   ;;  %v418_v20 = vld [vmem:[%s600_s0 + $0x20] ss:$8 sps:$4 sm:$0xff]   ;;  %v420_v22 = vld [vmem:[%s600_s0 + $0x34] ss:$8 sps:$4 sm:$0xff]  }
   0x8   :  { %v419_v21 = vld [vmem:[%s600_s0 + $0x60] ss:$8 sps:$4 sm:$0xff]   ;;  %v422_v23 = vld [vmem:[%s600_s0 + $0x74] ss:$8 sps:$4 sm:$0xff]   ;;  %v424_v24 = vld [vmem:[%s600_s0 + $0x30] ss:$8 sps:$4 sm:$0xff]  }
   0x9   :  { %v425_v25 = vld [vmem:[%s600_s0 + $0x70] ss:$8 sps:$4 sm:$0xff]   ;;  %v533_v26 = vld [vmem:[%s601_s2] ss:$0 sm:$0xff] }
   0xa   :  { %212 = vmatpush1.bf16.msra.mxu0 %v395_v3  ;;  %385 = vmatpush1.bf16.msra.mxu1 %v395_v3 }
   0xb   :  { %213 = vmatprep.subr.bf16.mxu0 %v426_v0  ;;  %377 = vmatprep.subr.bf16.mxu1 %v426_v0 }
   0xe   :  { %214 = vmatpush1.bf16.msra.mxu0 %v396_v4  ;;  %386 = vmatpush1.bf16.msra.mxu1 %v396_v4 }
   0xf   :  { %215 = vmatprep.subr.bf16.mxu0 %v426_v0  ;;  %378 = vmatprep.subr.bf16.mxu1 %v426_v0 }
  0x12   :  { %216 = vmatpush1.bf16.msra.mxu0 %v397_v7  ;;  %387 = vmatpush1.bf16.msra.mxu1 %v397_v7 }
  0x13   :  { %217 = vmatprep.subr.bf16.mxu0 %v426_v0  ;;  %379 = vmatprep.subr.bf16.mxu1 %v426_v0 }
  0x16   :  { %218 = vmatpush1.bf16.msra.mxu0 %v398_v8  ;;  %388 = vmatpush1.bf16.msra.mxu1 %v398_v8 }
  0x17   :  { %219 = vmatprep.subr.bf16.mxu0 %v426_v0  ;;  %380 = vmatprep.subr.bf16.mxu1 %v426_v0 }
  0x1a   :  { %220 = vmatpush1.bf16.msra.mxu0 %v399_v9  ;;  %389 = vmatpush1.bf16.msra.mxu1 %v399_v9 }
  0x1b   :  { %221 = vmatprep.subr.bf16.mxu0 %v426_v0  ;;  %381 = vmatprep.subr.bf16.mxu1 %v426_v0 }
  0x1e   :  { %222 = vmatpush1.bf16.msra.mxu0 %v400_v10  ;;  %390 = vmatpush1.bf16.msra.mxu1 %v400_v10 }
  0x1f   :  { %223 = vmatprep.subr.bf16.mxu0 %v426_v0  ;;  %382 = vmatprep.subr.bf16.mxu1 %v426_v0 }
  0x22   :  { %224 = vmatpush1.bf16.msra.mxu0 %v401_v11  ;;  %391 = vmatpush1.bf16.msra.mxu1 %v401_v11 }
  0x25   :  { %240 = vmatmul.mubr.bf16.vlgmr.msra.gmra.mrb[0].mxu0 %v402_v12  ;;  %272 = vmatmul.mubr.bf16.vlgmr.msra.gmra.mrb[0].mxu1 %v405_v13 }
  0x26   :  { %367 = vmatprep.mubr.msk.bf16.mxu0 %vm182_vm0, %v408_v14  ;;  %371 = vmatprep.mubr.msk.bf16.mxu1 %vm182_vm0, %v410_v15 }
  0x2d   :  { %248 = vmatmul.mubr.bf16.gmra.mrb[4].mxu0 %v412_v16  ;;  %280 = vmatmul.mubr.bf16.gmra.mrb[4].mxu1 %v413_v17 }
  0x2e   :  { %368 = vmatprep.mubr.msk.bf16.mxu0 %vm182_vm0, %v414_v18  ;;  %372 = vmatprep.mubr.msk.bf16.mxu1 %vm182_vm0, %v416_v19 }
  0x35   :  { %256 = vmatmul.mubr.bf16.gmra.mrb[8].mxu0 %v418_v20  ;;  %288 = vmatmul.mubr.bf16.gmra.mrb[8].mxu1 %v419_v21 }
  0x36   :  { %369 = vmatprep.mubr.msk.bf16.mxu0 %vm182_vm0, %v420_v22  ;;  %373 = vmatprep.mubr.msk.bf16.mxu1 %vm182_vm0, %v422_v23 }
  0x3d   :  { %264 = vmatmul.mubr.bf16.gmra.mrb[12].mxu0 %v424_v24  ;;  %296 = vmatmul.mubr.bf16.gmra.mrb[12].mxu1 %v425_v25 }
  0xf8   :  { %v241_v27 = vpop.f32.mrb[0].mxu0  ;;  %v273_v28 = vpop.f32.mrb[0].mxu1 }
  0xf9   :  { %v242_v29 = vadd.f32 %v533_v26, %v241_v27  ;;  %v274_v30 = vadd.f32 %v533_v26, %v273_v28  ;;  %v243_v31 = vpop.f32.mrb[1].mxu0  ;;  %v275_v32 = vpop.f32.mrb[1].mxu1 }
  0xfa   :  { %v244_v33 = vpop.f32.mrb[2].mxu0  ;;  %v276_v34 = vpop.f32.mrb[2].mxu1 }
  0xfb   :  { %v304_v35 = vmax.f32 %v242_v29, 0.0  ;;  %v312_v36 = vmax.f32 %v274_v30, 0.0  ;;  %v245_v37 = vadd.f32 %v533_v26, %v244_v33  ;;  %v277_v38 = vadd.f32 %v533_v26, %v276_v34  ;;  %v246_v39 = vpop.f32.mrb[3].mxu0  ;;  %v278_v40 = vpop.f32.mrb[3].mxu1 }
  0xfd   :  { %320 = vst [vmem:[%s602_s3] sm:$0xff] %v304_v35  ;;  %328 = vst [vmem:[%s602_s3 + $0x40] sm:$0xff] %v312_v36  ;;  %v305_v41 = vmax.f32 %v245_v37, 0.0  ;;  %v313_v42 = vmax.f32 %v277_v38, 0.0 }
  0xff   :  { %321 = vst [vmem:[%s602_s3 + $0x8] sm:$0xff] %v305_v41  ;;  %329 = vst [vmem:[%s602_s3 + $0x48] sm:$0xff] %v313_v42 }
 0x100   :  { %v249_v43 = vpop.f32.mrb[4].mxu0  ;;  %v281_v44 = vpop.f32.mrb[4].mxu1 }
 0x101   :  { %v250_v45 = vadd.f32 %v533_v26, %v249_v43  ;;  %v282_v46 = vadd.f32 %v533_v26, %v281_v44  ;;  %v251_v47 = vpop.f32.mrb[5].mxu0  ;;  %v283_v48 = vpop.f32.mrb[5].mxu1 }
 0x102   :  { %v252_v49 = vpop.f32.mrb[6].mxu0  ;;  %v284_v50 = vpop.f32.mrb[6].mxu1 }
 0x103   :  { %v306_v51 = vmax.f32 %v250_v45, 0.0  ;;  %v314_v52 = vmax.f32 %v282_v46, 0.0  ;;  %v253_v53 = vadd.f32 %v533_v26, %v252_v49  ;;  %v285_v54 = vadd.f32 %v533_v26, %v284_v50  ;;  %v254_v55 = vpop.f32.mrb[7].mxu0  ;;  %v286_v56 = vpop.f32.mrb[7].mxu1 }
 0x105   :  { %322 = vst [vmem:[%s602_s3 + $0x10] sm:$0xff] %v306_v51  ;;  %330 = vst [vmem:[%s602_s3 + $0x50] sm:$0xff] %v314_v52  ;;  %v307_v57 = vmax.f32 %v253_v53, 0.0  ;;  %v315_v58 = vmax.f32 %v285_v54, 0.0 }
 0x107   :  { %323 = vst [vmem:[%s602_s3 + $0x18] sm:$0xff] %v307_v57  ;;  %331 = vst [vmem:[%s602_s3 + $0x58] sm:$0xff] %v315_v58 }
 0x108   :  { %v257_v59 = vpop.f32.mrb[8].mxu0  ;;  %v289_v60 = vpop.f32.mrb[8].mxu1 }
 0x109   :  { %v258_v61 = vadd.f32 %v533_v26, %v257_v59  ;;  %v290_v62 = vadd.f32 %v533_v26, %v289_v60  ;;  %v259_v63 = vpop.f32.mrb[9].mxu0  ;;  %v291_v0 = vpop.f32.mrb[9].mxu1 }
 0x10a   :  { %v260_v1 = vpop.f32.mrb[10].mxu0  ;;  %v292_v2 = vpop.f32.mrb[10].mxu1 }
 0x10b   :  { %v308_v3 = vmax.f32 %v258_v61, 0.0  ;;  %v316_v4 = vmax.f32 %v290_v62, 0.0  ;;  %v261_v5 = vadd.f32 %v533_v26, %v260_v1  ;;  %v293_v6 = vadd.f32 %v533_v26, %v292_v2  ;;  %v262_v7 = vpop.f32.mrb[11].mxu0  ;;  %v294_v8 = vpop.f32.mrb[11].mxu1 }
 0x10d   :  { %324 = vst [vmem:[%s602_s3 + $0x20] sm:$0xff] %v308_v3  ;;  %332 = vst [vmem:[%s602_s3 + $0x60] sm:$0xff] %v316_v4  ;;  %v309_v9 = vmax.f32 %v261_v5, 0.0  ;;  %v317_v10 = vmax.f32 %v293_v6, 0.0 }
 0x10f   :  { %325 = vst [vmem:[%s602_s3 + $0x28] sm:$0xff] %v309_v9  ;;  %333 = vst [vmem:[%s602_s3 + $0x68] sm:$0xff] %v317_v10 }
 0x110   :  { %v265_v11 = vpop.f32.mrb[12].mxu0  ;;  %v297_v12 = vpop.f32.mrb[12].mxu1 }
 0x111   :  { %v266_v13 = vadd.f32 %v533_v26, %v265_v11  ;;  %v298_v14 = vadd.f32 %v533_v26, %v297_v12  ;;  %v267_v15 = vpop.f32.mrb[13].mxu0  ;;  %v299_v16 = vpop.f32.mrb[13].mxu1 }
 0x112   :  { %v268_v17 = vpop.f32.mrb[14].mxu0  ;;  %v300_v18 = vpop.f32.mrb[14].mxu1 }
 0x113   :  { %v310_v19 = vmax.f32 %v266_v13, 0.0  ;;  %v318_v20 = vmax.f32 %v298_v14, 0.0  ;;  %v269_v21 = vadd.f32 %v533_v26, %v268_v17  ;;  %v301_v22 = vadd.f32 %v533_v26, %v300_v18  ;;  %v270_v23 = vpop.f32.mrb[15].mxu0  ;;  %v302_v24 = vpop.f32.mrb[15].mxu1 }
 0x115   :  { %326 = vst [vmem:[%s602_s3 + $0x30] sm:$0xff] %v310_v19  ;;  %334 = vst [vmem:[%s602_s3 + $0x70] sm:$0xff] %v318_v20  ;;  %v311_v25 = vmax.f32 %v269_v21, 0.0  ;;  %v319_v27 = vmax.f32 %v301_v22, 0.0 }
 0x117   :  { %327 = vst [vmem:[%s602_s3 + $0x38] sm:$0xff] %v311_v25  ;;  %335 = vst [vmem:[%s602_s3 + $0x78] sm:$0xff] %v319_v27 }

// kernel: baseline_forward.21
= control target key start
LH: loop header
LB: loop body
LE: loop exit
PB: predicated region body
PF: predicated region fallthrough
CT: control target
= control target key end

     0   :  { %vm204_vm0 = vcmask 261120   ;;  %s521_s1 = inlined_call_operand.vmem [shape: bf16[288,128], index: 1, kind: input, shape index: {}]   ;;  %s522_s0 = inlined_call_operand.vmem [shape: bf16[32,288], index: 0, kind: input, shape index: {}]   ;;  %s523_s2 = inlined_call_operand.vmem [shape: f32[1,128], index: 2, kind: input, shape index: {}]   ;;  %s524_s3 = inlined_call_operand.vmem [shape: f32[32,128], index: 3, kind: output, shape index: {}]  }
   0x1   :  { %v388_v0 = vld [vmem:[%s521_s1 + $0x40] sm:$0xff]   ;;  %v390_v2 = vld [vmem:[%s521_s1 + $0x48] sm:$0xff]   ;;  %v392_v4 = vld [vmem:[%s521_s1 + $0x50] sm:$0xff]  }
   0x2   :  { %v389_v1 = vld [vmem:[%s521_s1] sm:$0xff]   ;;  %348 = vmatprep.subr.bf16.mxu0 %v388_v0  ;;  %v391_v3 = vld [vmem:[%s521_s1 + $0x8] sm:$0xff]   ;;  %v393_v5 = vld [vmem:[%s521_s1 + $0x10] sm:$0xff]  }
   0x3   :  { %349 = vmatpush3.bf16.msra.mxu0 %v389_v1  ;;  %v394_v6 = vld [vmem:[%s521_s1 + $0x58] sm:$0xff]   ;;  %v396_v8 = vld [vmem:[%s521_s1 + $0x60] sm:$0xff]   ;;  %v398_v11 = vld [vmem:[%s521_s1 + $0x68] sm:$0xff]  }
   0x4   :  { %350 = vmatprep.subr.bf16.mxu0 %v390_v2  ;;  %v395_v7 = vld [vmem:[%s521_s1 + $0x18] sm:$0xff]   ;;  %v397_v9 = vld [vmem:[%s521_s1 + $0x20] sm:$0xff]   ;;  %v399_v12 = vld [vmem:[%s521_s1 + $0x28] sm:$0xff]  }
   0x5   :  { %v403_v10 = vld [vmem:[%s521_s1 + $0x80] sm:$0xff]   ;;  %v400_v13 = vld [vmem:[%s521_s1 + $0x70] sm:$0xff]   ;;  %v408_v15 = vld [vmem:[%s521_s1 + $0x88] sm:$0xff]  }
   0x6   :  { %380 = vmatprep.subr.bf16.mxu1 %v403_v10  ;;  %v407_v14 = vld [vmem:[%s522_s0 + $0x4] ss:$12 sps:$4 sm:$0xff]   ;;  %v409_v16 = vld [vmem:[%s522_s0 + $0x8] ss:$12 sps:$4 sm:$0xff]   ;;  %v410_v17 = vld [vmem:[%s522_s0 + $0x20] ss:$12 sps:$4 sm:$0xff]  }
   0x7   :  { %351 = vmatpush3.bf16.msra.mxu0 %v391_v3  ;;  %381 = vmatpush3.bf16.msra.mxu1 %v403_v10  ;;  %v401_v18 = vld [vmem:[%s521_s1 + $0x30] sm:$0xff]   ;;  %v402_v19 = vld [vmem:[%s521_s1 + $0x78] sm:$0xff]   ;;  %v405_v21 = vld [vmem:[%s522_s0] ss:$12 sps:$4 sm:$0xff]  }
   0x8   :  { %352 = vmatprep.subr.bf16.mxu0 %v392_v4  ;;  %243 = vmatprep.mubr.bf16.mxu0 %v407_v14  ;;  %v404_v20 = vld [vmem:[%s521_s1 + $0x38] sm:$0xff]   ;;  %v321_v30 = vld [vmem:[%s523_s2] ss:$0 sm:$0xff] }
   0x9   :  { %382 = vmatprep.subr.bf16.mxu1 %v408_v15  ;;  %384 = vmatprep.mubr.msk.bf16.mxu1 %vm204_vm0, %v409_v16  ;;  %v411_v22 = vld [vmem:[%s522_s0 + $0x1c] ss:$12 sps:$4 sm:$0xff]   ;;  %v413_v23 = vld [vmem:[%s522_s0 + $0x18] ss:$12 sps:$4 sm:$0xff]  }
   0xb   :  { %353 = vmatpush3.bf16.msra.mxu0 %v393_v5  ;;  %383 = vmatpush3.bf16.msra.mxu1 %v408_v15 }
   0xc   :  { %354 = vmatprep.subr.bf16.mxu0 %v394_v6 }
   0xe   :  { %385 = vmatmul.mubr.msk.bf16.vlgmr.msra.gmra.mrb[0].mxu1 %vm204_vm0, %v410_v17 }
   0xf   :  { %355 = vmatpush3.bf16.msra.mxu0 %v395_v7 }
  0x10   :  { %356 = vmatprep.subr.bf16.mxu0 %v396_v8 }
  0x13   :  { %357 = vmatpush3.bf16.msra.mxu0 %v397_v9 }
  0x14   :  { %358 = vmatprep.subr.bf16.mxu0 %v398_v11 }
  0x17   :  { %359 = vmatpush3.bf16.msra.mxu0 %v399_v12 }
  0x18   :  { %360 = vmatprep.subr.bf16.mxu0 %v400_v13 }
  0x1b   :  { %361 = vmatpush3.bf16.msra.mxu0 %v401_v18 }
  0x1c   :  { %362 = vmatprep.subr.bf16.mxu0 %v402_v19 }
  0x1f   :  { %363 = vmatpush3.bf16.msra.mxu0 %v404_v20 }
  0x22   :  { %244 = vmatmul.mubr.bf16.vlgmr.msra.gmra.mrb[0].mxu0 %v405_v21 }
  0x23   :  { %251 = vmatprep.mubr.bf16.mxu0 %v411_v22 }
  0x2a   :  { %252 = vmatmul.mubr.bf16.gmra.mrb[4].mxu0 %v413_v23 }
  0xe1   :  { %v386_v24 = vpop.f32.mrb[0].mxu1 }
  0xe2   :  { %v294_v25 = vpop.f32.mrb[1].mxu1 }
  0xe3   :  { %v387_v26 = vpop.f32.mrb[2].mxu1 }
  0xe4   :  { %v297_v27 = vpop.f32.mrb[3].mxu1 }
  0xf5   :  { %v364_v28 = vpop.f32.mrb[0].mxu0 }
  0xf6   :  { %v365_v29 = vpop.f32.mrb[1].mxu0 }
  0xf7   :  { %v366_v31 = vadd.f32 %v365_v29, %v364_v28  ;;  %v367_v32 = vpop.f32.mrb[2].mxu0 }
  0xf8   :  { %v368_v33 = vpop.f32.mrb[3].mxu0 }
  0xf9   :  { %v369_v34 = vadd.f32 %v368_v33, %v367_v32  ;;  %v246_v35 = vadd.f32 %v366_v31, %v321_v30 }
  0xfb   :  { %v295_v36 = vadd.f32 %v294_v25, %v246_v35  ;;  %v249_v37 = vadd.f32 %v369_v34, %v321_v30 }
  0xfd   :  { %v309_v38 = vmax.f32 %v295_v36, 0.0  ;;  %v298_v39 = vadd.f32 %v297_v27, %v249_v37  ;;  %v370_v40 = vpop.f32.mrb[4].mxu0 }
  0xfe   :  { %v371_v41 = vpop.f32.mrb[5].mxu0 }
  0xff   :  { %313 = vst [vmem:[%s524_s3] sm:$0xff] %v309_v38  ;;  %v310_v42 = vmax.f32 %v298_v39, 0.0  ;;  %v372_v43 = vadd.f32 %v371_v41, %v370_v40  ;;  %v373_v44 = vpop.f32.mrb[6].mxu0 }
 0x100   :  { %v374_v45 = vpop.f32.mrb[7].mxu0 }
 0x101   :  { %314 = vst [vmem:[%s524_s3 + $0x8] sm:$0xff] %v310_v42  ;;  %v254_v46 = vadd.f32 %v372_v43, %v321_v30  ;;  %v375_v47 = vadd.f32 %v374_v45, %v373_v44 }
 0x103   :  { %v303_v48 = vadd.f32 %v386_v24, %v254_v46  ;;  %v257_v49 = vadd.f32 %v375_v47, %v321_v30 }
 0x105   :  { %v311_v50 = vmax.f32 %v303_v48, 0.0  ;;  %v306_v51 = vadd.f32 %v387_v26, %v257_v49 }
 0x107   :  { %315 = vst [vmem:[%s524_s3 + $0x10] sm:$0xff] %v311_v50  ;;  %v312_v52 = vmax.f32 %v306_v51, 0.0 }
 0x109   :  { %316 = vst [vmem:[%s524_s3 + $0x18] sm:$0xff] %v312_v52 }

// kernel: baseline_forward.22
= control target key start
LH: loop header
LB: loop body
LE: loop exit
PB: predicated region body
PF: predicated region fallthrough
CT: control target
= control target key end

     0   :  { %vm372_vm0 = vcmask 523264   ;;  %s884_s1 = inlined_call_operand.vmem [shape: bf16[576,128], index: 1, kind: input, shape index: {}]   ;;  %s885_s0 = inlined_call_operand.vmem [shape: bf16[32,576], index: 0, kind: input, shape index: {}]   ;;  %s886_s2 = inlined_call_operand.vmem [shape: f32[1,128], index: 2, kind: input, shape index: {}]   ;;  %s887_s3 = inlined_call_operand.vmem [shape: f32[32,128], index: 3, kind: output, shape index: {}]  }
   0x1   :  { %v661_v0 = vld [vmem:[%s884_s1 + $0x40] sm:$0xff]   ;;  %v665_v4 = vld [vmem:[%s884_s1 + $0x48] sm:$0xff]   ;;  %v669_v8 = vld [vmem:[%s884_s1 + $0x50] sm:$0xff]  }
   0x2   :  { %v662_v1 = vld [vmem:[%s884_s1] sm:$0xff]   ;;  %587 = vmatprep.subr.bf16.mxu0 %v661_v0  ;;  %v666_v5 = vld [vmem:[%s884_s1 + $0x8] sm:$0xff]   ;;  %v670_v9 = vld [vmem:[%s884_s1 + $0x10] sm:$0xff]  }
   0x3   :  { %v663_v2 = vld [vmem:[%s884_s1 + $0xc0] sm:$0xff]   ;;  %588 = vmatpush3.bf16.msra.mxu0 %v662_v1  ;;  %v667_v6 = vld [vmem:[%s884_s1 + $0xc8] sm:$0xff]   ;;  %v671_v10 = vld [vmem:[%s884_s1 + $0xd0] sm:$0xff]  }
   0x4   :  { %v664_v3 = vld [vmem:[%s884_s1 + $0x80] sm:$0xff]   ;;  %615 = vmatprep.subr.bf16.mxu1 %v663_v2  ;;  %589 = vmatprep.subr.bf16.mxu0 %v665_v4  ;;  %v668_v7 = vld [vmem:[%s884_s1 + $0x88] sm:$0xff]   ;;  %v672_v11 = vld [vmem:[%s884_s1 + $0x90] sm:$0xff]  }
   0x5   :  { %616 = vmatpush3.bf16.msra.mxu1 %v664_v3  ;;  %v673_v12 = vld [vmem:[%s884_s1 + $0x58] sm:$0xff]   ;;  %v677_v16 = vld [vmem:[%s884_s1 + $0x60] sm:$0xff]   ;;  %v681_v20 = vld [vmem:[%s884_s1 + $0x68] sm:$0xff]  }
   0x6   :  { %617 = vmatprep.subr.bf16.mxu1 %v667_v6  ;;  %v674_v13 = vld [vmem:[%s884_s1 + $0x18] sm:$0xff]   ;;  %v678_v17 = vld [vmem:[%s884_s1 + $0x20] sm:$0xff]   ;;  %v682_v21 = vld [vmem:[%s884_s1 + $0x28] sm:$0xff]  }
   0x7   :  { %590 = vmatpush3.bf16.msra.mxu0 %v666_v5  ;;  %v675_v14 = vld [vmem:[%s884_s1 + $0xd8] sm:$0xff]   ;;  %v679_v18 = vld [vmem:[%s884_s1 + $0xe0] sm:$0xff]   ;;  %v683_v22 = vld [vmem:[%s884_s1 + $0xe8] sm:$0xff]  }
   0x8   :  { %591 = vmatprep.subr.bf16.mxu0 %v669_v8  ;;  %v676_v15 = vld [vmem:[%s884_s1 + $0x98] sm:$0xff]   ;;  %v680_v19 = vld [vmem:[%s884_s1 + $0xa0] sm:$0xff]   ;;  %v684_v23 = vld [vmem:[%s884_s1 + $0xa8] sm:$0xff]  }
   0x9   :  { %618 = vmatpush3.bf16.msra.mxu1 %v668_v7  ;;  %v685_v24 = vld [vmem:[%s884_s1 + $0x70] sm:$0xff]   ;;  %v689_v28 = vld [vmem:[%s884_s1 + $0x78] sm:$0xff]   ;;  %v696_v34 = vld [vmem:[%s884_s1 + $0x100] sm:$0xff]  }
   0xa   :  { %619 = vmatprep.subr.bf16.mxu1 %v671_v10  ;;  %v686_v25 = vld [vmem:[%s884_s1 + $0x30] sm:$0xff]   ;;  %v690_v29 = vld [vmem:[%s884_s1 + $0x38] sm:$0xff]   ;;  %v699_v36 = vld [vmem:[%s885_s0 + $0xc] ss:$20 sps:$4 sm:$0xff]  }
   0xb   :  { %592 = vmatpush3.bf16.msra.mxu0 %v670_v9  ;;  %v687_v26 = vld [vmem:[%s884_s1 + $0xf0] sm:$0xff]   ;;  %v691_v30 = vld [vmem:[%s884_s1 + $0xf8] sm:$0xff]   ;;  %v700_v37 = vld [vmem:[%s884_s1 + $0x108] sm:$0xff]   ;;  %460 = vmatprep.mubr.bf16.mxu1 %v699_v36 }
   0xc   :  { %593 = vmatprep.subr.bf16.mxu0 %v673_v12  ;;  %v688_v27 = vld [vmem:[%s884_s1 + $0xb0] sm:$0xff]   ;;  %v694_v32 = vld [vmem:[%s885_s0 + $0x4] ss:$20 sps:$4 sm:$0xff]   ;;  %v697_v35 = vld [vmem:[%s885_s0 + $0x8] ss:$20 sps:$4 sm:$0xff]  }
   0xd   :  { %620 = vmatpush3.bf16.msra.mxu1 %v672_v11  ;;  %v692_v31 = vld [vmem:[%s885_s0] ss:$20 sps:$4 sm:$0xff]   ;;  %v695_v33 = vld [vmem:[%s884_s1 + $0xb8] sm:$0xff]   ;;  %411 = vmatprep.mubr.bf16.mxu0 %v694_v32  ;;  %v707_v42 = vld [vmem:[%s885_s0 + $0x30] ss:$20 sps:$4 sm:$0xff]  }
   0xe   :  { %621 = vmatprep.subr.bf16.mxu1 %v675_v14  ;;  %v701_v38 = vld [vmem:[%s885_s0 + $0x2c] ss:$20 sps:$4 sm:$0xff]   ;;  %v703_v39 = vld [vmem:[%s885_s0 + $0x28] ss:$20 sps:$4 sm:$0xff]   ;;  %v704_v40 = vld [vmem:[%s884_s1 + $0x110] sm:$0xff]  }
   0xf   :  { %594 = vmatpush3.bf16.msra.mxu0 %v674_v13  ;;  %v705_v41 = vld [vmem:[%s885_s0 + $0x34] ss:$20 sps:$4 sm:$0xff]   ;;  %v708_v43 = vld [vmem:[%s884_s1 + $0x118] sm:$0xff]   ;;  %v709_v44 = vld [vmem:[%s885_s0 + $0x10] ss:$20 sps:$4 sm:$0xff]  }
  0x10   :  { %595 = vmatprep.subr.bf16.mxu0 %v677_v16  ;;  %v710_v45 = vld [vmem:[%s885_s0 + $0x38] ss:$20 sps:$4 sm:$0xff]   ;;  %v538_v47 = vld [vmem:[%s886_s2] ss:$0 sm:$0xff] }
  0x11   :  { %622 = vmatpush3.bf16.msra.mxu1 %v676_v15 }
  0x12   :  { %623 = vmatprep.subr.bf16.mxu1 %v679_v18 }
  0x13   :  { %596 = vmatpush3.bf16.msra.mxu0 %v678_v17 }
  0x14   :  { %597 = vmatprep.subr.bf16.mxu0 %v681_v20 }
  0x15   :  { %624 = vmatpush3.bf16.msra.mxu1 %v680_v19 }
  0x16   :  { %625 = vmatprep.subr.bf16.mxu1 %v683_v22 }
  0x17   :  { %598 = vmatpush3.bf16.msra.mxu0 %v682_v21 }
  0x18   :  { %599 = vmatprep.subr.bf16.mxu0 %v685_v24 }
  0x19   :  { %626 = vmatpush3.bf16.msra.mxu1 %v684_v23 }
  0x1a   :  { %627 = vmatprep.subr.bf16.mxu1 %v687_v26 }
  0x1b   :  { %600 = vmatpush3.bf16.msra.mxu0 %v686_v25 }
  0x1c   :  { %601 = vmatprep.subr.bf16.mxu0 %v689_v28 }
  0x1d   :  { %628 = vmatpush3.bf16.msra.mxu1 %v688_v27 }
  0x1e   :  { %629 = vmatprep.subr.bf16.mxu1 %v691_v30 }
  0x1f   :  { %602 = vmatpush3.bf16.msra.mxu0 %v690_v29 }
  0x20   :  { %649 = vmatprep.subr.bf16.mxu0 %v696_v34 }
  0x21   :  { %630 = vmatpush3.bf16.msra.mxu1 %v695_v33 }
  0x22   :  { %412 = vmatmul.mubr.bf16.vlgmr.msra.gmra.mrb[0].mxu0 %v692_v31 }
  0x23   :  { %650 = vmatpush3.bf16.msra.mxu0 %v696_v34  ;;  %419 = vmatprep.mubr.bf16.mxu0 %v701_v38 }
  0x24   :  { %461 = vmatmul.mubr.bf16.vlgmr.msra.gmra.mrb[0].mxu1 %v697_v35  ;;  %651 = vmatprep.subr.bf16.mxu0 %v700_v37 }
  0x25   :  { %468 = vmatprep.mubr.bf16.mxu1 %v705_v41 }
  0x27   :  { %652 = vmatpush3.bf16.msra.mxu0 %v700_v37 }
  0x28   :  { %653 = vmatprep.subr.bf16.mxu0 %v704_v40 }
  0x2a   :  { %420 = vmatmul.mubr.bf16.gmra.mrb[4].mxu0 %v703_v39 }
  0x2b   :  { %657 = vmatprep.mubr.msk.bf16.mxu0 %vm372_vm0, %v709_v44  ;;  %654 = vmatpush3.bf16.msra.mxu0 %v704_v40 }
  0x2c   :  { %469 = vmatmul.mubr.bf16.gmra.mrb[4].mxu1 %v707_v42  ;;  %655 = vmatprep.subr.bf16.mxu0 %v708_v43 }
  0x2f   :  { %656 = vmatpush3.bf16.msra.mxu0 %v708_v43 }
  0x32   :  { %658 = vmatmul.mubr.msk.bf16.vlgmr.msra.gmra.mrb[8].mxu0 %vm372_vm0, %v710_v45 }
  0xf5   :  { %v603_v46 = vpop.f32.mrb[0].mxu0 }
  0xf6   :  { %v604_v48 = vpop.f32.mrb[1].mxu0 }
  0xf7   :  { %v605_v49 = vadd.f32 %v604_v48, %v603_v46  ;;  %v606_v50 = vpop.f32.mrb[2].mxu0  ;;  %v631_v51 = vpop.f32.mrb[0].mxu1 }
  0xf8   :  { %v607_v52 = vpop.f32.mrb[3].mxu0  ;;  %v632_v55 = vpop.f32.mrb[1].mxu1 }
  0xf9   :  { %v414_v53 = vadd.f32 %v605_v49, %v538_v47  ;;  %v608_v54 = vadd.f32 %v607_v52, %v606_v50  ;;  %v633_v56 = vadd.f32 %v632_v55, %v631_v51  ;;  %v634_v57 = vpop.f32.mrb[2].mxu1 }
  0xfa   :  { %v635_v59 = vpop.f32.mrb[3].mxu1 }
  0xfb   :  { %v417_v58 = vadd.f32 %v608_v54, %v538_v47  ;;  %v636_v60 = vadd.f32 %v635_v59, %v634_v57  ;;  %v463_v61 = vadd.f32 %v633_v56, %v414_v53 }
  0xfd   :  { %v609_v62 = vpop.f32.mrb[4].mxu0  ;;  %v466_v0 = vadd.f32 %v636_v60, %v417_v58 }
  0xfe   :  { %v610_v63 = vpop.f32.mrb[5].mxu0 }
  0xff   :  { %v611_v1 = vadd.f32 %v610_v63, %v609_v62  ;;  %v612_v2 = vpop.f32.mrb[6].mxu0  ;;  %v637_v3 = vpop.f32.mrb[4].mxu1 }
 0x100   :  { %v613_v4 = vpop.f32.mrb[7].mxu0  ;;  %v638_v7 = vpop.f32.mrb[5].mxu1 }
 0x101   :  { %v422_v5 = vadd.f32 %v611_v1, %v538_v47  ;;  %v614_v6 = vadd.f32 %v613_v4, %v612_v2  ;;  %v639_v8 = vadd.f32 %v638_v7, %v637_v3  ;;  %v640_v9 = vpop.f32.mrb[6].mxu1 }
 0x102   :  { %v641_v11 = vpop.f32.mrb[7].mxu1 }
 0x103   :  { %v425_v10 = vadd.f32 %v614_v6, %v538_v47  ;;  %v642_v12 = vadd.f32 %v641_v11, %v640_v9  ;;  %v471_v13 = vadd.f32 %v639_v8, %v422_v5 }
 0x105   :  { %v659_v14 = vpop.f32.mrb[8].mxu0  ;;  %v474_v15 = vadd.f32 %v642_v12, %v425_v10 }
 0x106   :  { %v520_v16 = vadd.f32 %v659_v14, %v471_v13  ;;  %v511_v17 = vpop.f32.mrb[9].mxu0 }
 0x107   :  { %v512_v18 = vadd.f32 %v511_v17, %v463_v61  ;;  %v660_v19 = vpop.f32.mrb[10].mxu0 }
 0x108   :  { %v528_v20 = vmax.f32 %v520_v16, 0.0  ;;  %v523_v21 = vadd.f32 %v660_v19, %v474_v15  ;;  %v514_v22 = vpop.f32.mrb[11].mxu0 }
 0x109   :  { %v526_v23 = vmax.f32 %v512_v18, 0.0  ;;  %v515_v24 = vadd.f32 %v514_v22, %v466_v0 }
 0x10a   :  { %532 = vst [vmem:[%s887_s3 + $0x10] sm:$0xff] %v528_v20  ;;  %v529_v25 = vmax.f32 %v523_v21, 0.0 }
 0x10b   :  { %530 = vst [vmem:[%s887_s3] sm:$0xff] %v526_v23  ;;  %v527_v26 = vmax.f32 %v515_v24, 0.0 }
 0x10c   :  { %533 = vst [vmem:[%s887_s3 + $0x18] sm:$0xff] %v529_v25 }
 0x10d   :  { %531 = vst [vmem:[%s887_s3 + $0x8] sm:$0xff] %v527_v26 }

// kernel: baseline_forward.23
= control target key start
LH: loop header
LB: loop body
LE: loop exit
PB: predicated region body
PF: predicated region fallthrough
CT: control target
= control target key end

     0   :  { %vm558_vm0 = vcmask 523264   ;;  %s1614_s1 = inlined_call_operand.vmem [shape: bf16[576,128], index: 1, kind: input, shape index: {}]   ;;  %s1615_s0 = inlined_call_operand.vmem [shape: bf16[128,576], index: 0, kind: input, shape index: {}]   ;;  %s1616_s2 = inlined_call_operand.vmem [shape: f32[1,128], index: 2, kind: input, shape index: {}]   ;;  %s1617_s3 = inlined_call_operand.vmem [shape: f32[128,128], index: 3, kind: output, shape index: {}]  }
   0x1   :  { %v1167_v0 = vld [vmem:[%s1614_s1 + $0x40] sm:$0xff]   ;;  %v1171_v4 = vld [vmem:[%s1614_s1 + $0x48] sm:$0xff]   ;;  %v1175_v8 = vld [vmem:[%s1614_s1 + $0x50] sm:$0xff]  }
   0x2   :  { %v1168_v1 = vld [vmem:[%s1614_s1 + $0xc0] sm:$0xff]   ;;  %995 = vmatprep.subr.bf16.mxu0 %v1167_v0  ;;  %v1172_v5 = vld [vmem:[%s1614_s1 + $0xc8] sm:$0xff]   ;;  %v1176_v9 = vld [vmem:[%s1614_s1 + $0xd0] sm:$0xff]  }
   0x3   :  { %v1169_v2 = vld [vmem:[%s1614_s1] sm:$0xff]   ;;  %1059 = vmatprep.subr.bf16.mxu1 %v1168_v1  ;;  %v1173_v6 = vld [vmem:[%s1614_s1 + $0x8] sm:$0xff]   ;;  %v1177_v10 = vld [vmem:[%s1614_s1 + $0x10] sm:$0xff]  }
   0x4   :  { %v1170_v3 = vld [vmem:[%s1614_s1 + $0x80] sm:$0xff]   ;;  %996 = vmatpush3.bf16.msra.mxu0 %v1169_v2  ;;  %v1174_v7 = vld [vmem:[%s1614_s1 + $0x88] sm:$0xff]   ;;  %v1178_v11 = vld [vmem:[%s1614_s1 + $0x90] sm:$0xff]  }
   0x5   :  { %1060 = vmatpush3.bf16.msra.mxu1 %v1170_v3  ;;  %997 = vmatprep.subr.bf16.mxu0 %v1171_v4  ;;  %v1179_v12 = vld [vmem:[%s1614_s1 + $0x58] sm:$0xff]   ;;  %v1183_v16 = vld [vmem:[%s1614_s1 + $0x60] sm:$0xff]   ;;  %v1187_v20 = vld [vmem:[%s1614_s1 + $0x68] sm:$0xff]  }
   0x6   :  { %1061 = vmatprep.subr.bf16.mxu1 %v1172_v5  ;;  %v1180_v13 = vld [vmem:[%s1614_s1 + $0xd8] sm:$0xff]   ;;  %v1184_v17 = vld [vmem:[%s1614_s1 + $0xe0] sm:$0xff]   ;;  %v1188_v21 = vld [vmem:[%s1614_s1 + $0xe8] sm:$0xff]  }
   0x7   :  { %v1181_v14 = vld [vmem:[%s1614_s1 + $0x18] sm:$0xff]   ;;  %v1185_v18 = vld [vmem:[%s1614_s1 + $0x20] sm:$0xff]   ;;  %v1189_v22 = vld [vmem:[%s1614_s1 + $0x28] sm:$0xff]  }
   0x8   :  { %998 = vmatpush3.bf16.msra.mxu0 %v1173_v6  ;;  %v1182_v15 = vld [vmem:[%s1614_s1 + $0x98] sm:$0xff]   ;;  %v1186_v19 = vld [vmem:[%s1614_s1 + $0xa0] sm:$0xff]   ;;  %v1190_v23 = vld [vmem:[%s1614_s1 + $0xa8] sm:$0xff]  }
   0x9   :  { %1062 = vmatpush3.bf16.msra.mxu1 %v1174_v7  ;;  %999 = vmatprep.subr.bf16.mxu0 %v1175_v8  ;;  %v1191_v24 = vld [vmem:[%s1614_s1 + $0x70] sm:$0xff]   ;;  %v1195_v28 = vld [vmem:[%s1614_s1 + $0x78] sm:$0xff]   ;;  %v1204_v35 = vld [vmem:[%s1615_s0 + $0xc] ss:$20 sps:$4 sm:$0xff]  }
   0xa   :  { %1063 = vmatprep.subr.bf16.mxu1 %v1176_v9  ;;  %v1192_v25 = vld [vmem:[%s1614_s1 + $0xf0] sm:$0xff]   ;;  %v1196_v29 = vld [vmem:[%s1614_s1 + $0xf8] sm:$0xff]   ;;  %v1205_v36 = vld [vmem:[%s1614_s1 + $0x100] sm:$0xff]   ;;  %712 = vmatprep.mubr.bf16.mxu1 %v1204_v35 }
   0xb   :  { %v1193_v26 = vld [vmem:[%s1614_s1 + $0x30] sm:$0xff]   ;;  %v1197_v30 = vld [vmem:[%s1614_s1 + $0x38] sm:$0xff]   ;;  %v1206_v37 = vld [vmem:[%s1615_s0 + $0x2c] ss:$20 sps:$4 sm:$0xff]  }
   0xc   :  { %1000 = vmatpush3.bf16.msra.mxu0 %v1177_v10  ;;  %v1194_v27 = vld [vmem:[%s1614_s1 + $0xb0] sm:$0xff]   ;;  %v1198_v31 = vld [vmem:[%s1614_s1 + $0xb8] sm:$0xff]   ;;  %v1218_v42 = vld [vmem:[%s1614_s1 + $0x108] sm:$0xff]  }
   0xd   :  { %1064 = vmatpush3.bf16.msra.mxu1 %v1178_v11  ;;  %1001 = vmatprep.subr.bf16.mxu0 %v1179_v12  ;;  %v1199_v32 = vld [vmem:[%s1615_s0] ss:$20 sps:$4 sm:$0xff]   ;;  %v1201_v33 = vld [vmem:[%s1615_s0 + $0x4] ss:$20 sps:$4 sm:$0xff]   ;;  %v1202_v34 = vld [vmem:[%s1615_s0 + $0x8] ss:$20 sps:$4 sm:$0xff]  }
   0xe   :  { %1065 = vmatprep.subr.bf16.mxu1 %v1180_v13  ;;  %615 = vmatprep.mubr.bf16.mxu0 %v1201_v33  ;;  %v1208_v38 = vld [vmem:[%s1615_s0 + $0x34] ss:$20 sps:$4 sm:$0xff]   ;;  %v1211_v40 = vld [vmem:[%s1615_s0 + $0x30] ss:$20 sps:$4 sm:$0xff]   ;;  %v1217_v45 = vld [vmem:[%s1615_s0 + $0x58] ss:$20 sps:$4 sm:$0xff]  }
   0xf   :  { %v1210_v39 = vld [vmem:[%s1615_s0 + $0x28] ss:$20 sps:$4 sm:$0xff]   ;;  %v1216_v44 = vld [vmem:[%s1615_s0 + $0x50] ss:$20 sps:$4 sm:$0xff]   ;;  %v1223_v50 = vld [vmem:[%s1615_s0 + $0x78] ss:$20 sps:$4 sm:$0xff]  }
  0x10   :  { %1002 = vmatpush3.bf16.msra.mxu0 %v1181_v14  ;;  %v1212_v41 = vld [vmem:[%s1615_s0 + $0x54] ss:$20 sps:$4 sm:$0xff]   ;;  %v1214_v43 = vld [vmem:[%s1615_s0 + $0x5c] ss:$20 sps:$4 sm:$0xff]   ;;  %v1221_v48 = vld [vmem:[%s1615_s0 + $0x84] ss:$20 sps:$4 sm:$0xff]  }
  0x11   :  { %1066 = vmatpush3.bf16.msra.mxu1 %v1182_v15  ;;  %1003 = vmatprep.subr.bf16.mxu0 %v1183_v16  ;;  %v1231_v46 = vld [vmem:[%s1614_s1 + $0x110] sm:$0xff]   ;;  %v1244_v49 = vld [vmem:[%s1614_s1 + $0x118] sm:$0xff]   ;;  %v1227_v53 = vld [vmem:[%s1615_s0 + $0xac] ss:$20 sps:$4 sm:$0xff]  }
  0x12   :  { %1067 = vmatprep.subr.bf16.mxu1 %v1184_v17  ;;  %v1219_v47 = vld [vmem:[%s1615_s0 + $0x7c] ss:$20 sps:$4 sm:$0xff]   ;;  %v1224_v51 = vld [vmem:[%s1615_s0 + $0x80] ss:$20 sps:$4 sm:$0xff]   ;;  %v1225_v52 = vld [vmem:[%s1615_s0 + $0xa4] ss:$20 sps:$4 sm:$0xff]  }
  0x13   :  { %v1229_v54 = vld [vmem:[%s1615_s0 + $0xa0] ss:$20 sps:$4 sm:$0xff]   ;;  %v1230_v55 = vld [vmem:[%s1615_s0 + $0xa8] ss:$20 sps:$4 sm:$0xff]   ;;  %v1237_v59 = vld [vmem:[%s1615_s0 + $0xd0] ss:$20 sps:$4 sm:$0xff]  }
  0x14   :  { %1004 = vmatpush3.bf16.msra.mxu0 %v1185_v18  ;;  %v1232_v56 = vld [vmem:[%s1615_s0 + $0xcc] ss:$20 sps:$4 sm:$0xff]   ;;  %v1234_v57 = vld [vmem:[%s1615_s0 + $0xd4] ss:$20 sps:$4 sm:$0xff]   ;;  %v1240_v61 = vld [vmem:[%s1615_s0 + $0xfc] ss:$20 sps:$4 sm:$0xff]  }
  0x15   :  { %1068 = vmatpush3.bf16.msra.mxu1 %v1186_v19  ;;  %1005 = vmatprep.subr.bf16.mxu0 %v1187_v20  ;;  %v1236_v58 = vld [vmem:[%s1615_s0 + $0xc8] ss:$20 sps:$4 sm:$0xff]   ;;  %v1242_v62 = vld [vmem:[%s1615_s0 + $0xf0] ss:$20 sps:$4 sm:$0xff]   ;;  %v1243_v63 = vld [vmem:[%s1615_s0 + $0xf8] ss:$20 sps:$4 sm:$0xff]  }
  0x16   :  { %1069 = vmatprep.subr.bf16.mxu1 %v1188_v21  ;;  %v1238_v60 = vld [vmem:[%s1615_s0 + $0xf4] ss:$20 sps:$4 sm:$0xff]   ;;  %v1245_v0 = vld [vmem:[%s1615_s0 + $0x11c] ss:$20 sps:$4 sm:$0xff]   ;;  %v1247_v1 = vld [vmem:[%s1615_s0 + $0x124] ss:$20 sps:$4 sm:$0xff]  }
  0x17   :  { %v1249_v2 = vld [vmem:[%s1615_s0 + $0x118] ss:$20 sps:$4 sm:$0xff]   ;;  %v1250_v3 = vld [vmem:[%s1615_s0 + $0x120] ss:$20 sps:$4 sm:$0xff]   ;;  %v1251_v4 = vld [vmem:[%s1615_s0 + $0x10] ss:$20 sps:$4 sm:$0xff]  }
  0x18   :  { %1006 = vmatpush3.bf16.msra.mxu0 %v1189_v22  ;;  %v1252_v5 = vld [vmem:[%s1615_s0 + $0xb0] ss:$20 sps:$4 sm:$0xff]   ;;  %v1253_v6 = vld [vmem:[%s1615_s0 + $0x38] ss:$20 sps:$4 sm:$0xff]   ;;  %v1255_v8 = vld [vmem:[%s1615_s0 + $0x60] ss:$20 sps:$4 sm:$0xff]  }
  0x19   :  { %1070 = vmatpush3.bf16.msra.mxu1 %v1190_v23  ;;  %1007 = vmatprep.subr.bf16.mxu0 %v1191_v24  ;;  %v1254_v7 = vld [vmem:[%s1615_s0 + $0xd8] ss:$20 sps:$4 sm:$0xff]   ;;  %v1256_v9 = vld [vmem:[%s1615_s0 + $0x100] ss:$20 sps:$4 sm:$0xff]   ;;  %v1257_v10 = vld [vmem:[%s1615_s0 + $0x88] ss:$20 sps:$4 sm:$0xff]  }
  0x1a   :  { %1071 = vmatprep.subr.bf16.mxu1 %v1192_v25  ;;  %v1258_v11 = vld [vmem:[%s1615_s0 + $0x128] ss:$20 sps:$4 sm:$0xff]   ;;  %v1518_v14 = vld [vmem:[%s1616_s2] ss:$0 sm:$0xff] }
  0x1c   :  { %1008 = vmatpush3.bf16.msra.mxu0 %v1193_v26 }
  0x1d   :  { %1072 = vmatpush3.bf16.msra.mxu1 %v1194_v27  ;;  %1009 = vmatprep.subr.bf16.mxu0 %v1195_v28 }
  0x1e   :  { %1073 = vmatprep.subr.bf16.mxu1 %v1196_v29 }
  0x20   :  { %1010 = vmatpush3.bf16.msra.mxu0 %v1197_v30 }
  0x21   :  { %1074 = vmatpush3.bf16.msra.mxu1 %v1198_v31  ;;  %1135 = vmatprep.subr.bf16.mxu0 %v1205_v36 }
  0x22   :  { %1159 = vmatprep.subr.bf16.mxu1 %v1205_v36 }
  0x23   :  { %616 = vmatmul.mubr.bf16.vlgmr.msra.gmra.mrb[0].mxu0 %v1199_v32 }
  0x24   :  { %713 = vmatmul.mubr.bf16.vlgmr.msra.gmra.mrb[0].mxu1 %v1202_v34  ;;  %1136 = vmatpush3.bf16.msra.mxu0 %v1205_v36 }
  0x25   :  { %1163 = vmatpush3.bf16.msra.mxu1 %v1205_v36  ;;  %623 = vmatprep.mubr.bf16.mxu0 %v1206_v37 }
  0x26   :  { %720 = vmatprep.mubr.bf16.mxu1 %v1208_v38  ;;  %1137 = vmatprep.subr.bf16.mxu0 %v1218_v42 }
  0x27   :  { %1160 = vmatprep.subr.bf16.mxu1 %v1218_v42 }
  0x28   :  { %1138 = vmatpush3.bf16.msra.mxu0 %v1218_v42 }
  0x29   :  { %1164 = vmatpush3.bf16.msra.mxu1 %v1218_v42  ;;  %1139 = vmatprep.subr.bf16.mxu0 %v1231_v46 }
  0x2a   :  { %1161 = vmatprep.subr.bf16.mxu1 %v1231_v46 }
  0x2b   :  { %624 = vmatmul.mubr.bf16.gmra.mrb[4].mxu0 %v1210_v39 }
  0x2c   :  { %721 = vmatmul.mubr.bf16.gmra.mrb[4].mxu1 %v1211_v40  ;;  %631 = vmatprep.mubr.bf16.mxu0 %v1212_v41 }
  0x2d   :  { %728 = vmatprep.mubr.bf16.mxu1 %v1214_v43  ;;  %1140 = vmatpush3.bf16.msra.mxu0 %v1231_v46 }
  0x2e   :  { %1165 = vmatpush3.bf16.msra.mxu1 %v1231_v46  ;;  %1141 = vmatprep.subr.bf16.mxu0 %v1244_v49 }
  0x2f   :  { %1162 = vmatprep.subr.bf16.mxu1 %v1244_v49 }
  0x31   :  { %1142 = vmatpush3.bf16.msra.mxu0 %v1244_v49 }
  0x32   :  { %1166 = vmatpush3.bf16.msra.mxu1 %v1244_v49 }
  0x33   :  { %632 = vmatmul.mubr.bf16.gmra.mrb[8].mxu0 %v1216_v44 }
  0x34   :  { %729 = vmatmul.mubr.bf16.gmra.mrb[8].mxu1 %v1217_v45  ;;  %639 = vmatprep.mubr.bf16.mxu0 %v1219_v47 }
  0x35   :  { %736 = vmatprep.mubr.bf16.mxu1 %v1221_v48 }
  0x3b   :  { %640 = vmatmul.mubr.bf16.gmra.mrb[12].mxu0 %v1223_v50 }
  0x3c   :  { %737 = vmatmul.mubr.bf16.gmra.mrb[12].mxu1 %v1224_v51  ;;  %647 = vmatprep.mubr.bf16.mxu0 %v1225_v52 }
  0x3d   :  { %744 = vmatprep.mubr.bf16.mxu1 %v1227_v53 }
  0x43   :  { %648 = vmatmul.mubr.bf16.gmra.mrb[16].mxu0 %v1229_v54 }
  0x44   :  { %745 = vmatmul.mubr.bf16.gmra.mrb[16].mxu1 %v1230_v55  ;;  %655 = vmatprep.mubr.bf16.mxu0 %v1232_v56 }
  0x45   :  { %752 = vmatprep.mubr.bf16.mxu1 %v1234_v57 }
  0x4b   :  { %656 = vmatmul.mubr.bf16.gmra.mrb[20].mxu0 %v1236_v58 }
  0x4c   :  { %753 = vmatmul.mubr.bf16.gmra.mrb[20].mxu1 %v1237_v59  ;;  %663 = vmatprep.mubr.bf16.mxu0 %v1238_v60 }
  0x4d   :  { %760 = vmatprep.mubr.bf16.mxu1 %v1240_v61 }
  0x53   :  { %664 = vmatmul.mubr.bf16.gmra.mrb[24].mxu0 %v1242_v62 }
  0x54   :  { %761 = vmatmul.mubr.bf16.gmra.mrb[24].mxu1 %v1243_v63  ;;  %671 = vmatprep.mubr.bf16.mxu0 %v1245_v0 }
  0x55   :  { %768 = vmatprep.mubr.bf16.mxu1 %v1247_v1 }
  0x5b   :  { %672 = vmatmul.mubr.bf16.gmra.mrb[28].mxu0 %v1249_v2 }
  0x5c   :  { %769 = vmatmul.mubr.bf16.gmra.mrb[28].mxu1 %v1250_v3  ;;  %1143 = vmatprep.mubr.msk.bf16.mxu0 %vm558_vm0, %v1251_v4 }
  0x5d   :  { %1151 = vmatprep.mubr.msk.bf16.mxu1 %vm558_vm0, %v1252_v5 }
  0x63   :  { %1144 = vmatmul.mubr.msk.bf16.vlgmr.msra.gmra.mrb[32].mxu0 %vm558_vm0, %v1253_v6 }
  0x64   :  { %1152 = vmatmul.mubr.msk.bf16.vlgmr.msra.gmra.mrb[32].mxu1 %vm558_vm0, %v1254_v7  ;;  %1147 = vmatprep.mubr.msk.bf16.mxu0 %vm558_vm0, %v1255_v8 }
  0x65   :  { %1155 = vmatprep.mubr.msk.bf16.mxu1 %vm558_vm0, %v1256_v9 }
  0x6b   :  { %1148 = vmatmul.mubr.msk.bf16.gmra.mrb[36].mxu0 %vm558_vm0, %v1257_v10 }
  0x6c   :  { %1156 = vmatmul.mubr.msk.bf16.gmra.mrb[36].mxu1 %vm558_vm0, %v1258_v11 }
  0xf6   :  { %v1011_v12 = vpop.f32.mrb[0].mxu0 }
  0xf7   :  { %v1075_v13 = vpop.f32.mrb[0].mxu1  ;;  %v1012_v15 = vpop.f32.mrb[1].mxu0 }
  0xf8   :  { %v1013_v16 = vadd.f32 %v1012_v15, %v1011_v12  ;;  %v1076_v17 = vpop.f32.mrb[1].mxu1  ;;  %v1014_v18 = vpop.f32.mrb[2].mxu0 }
  0xf9   :  { %v1077_v19 = vadd.f32 %v1076_v17, %v1075_v13  ;;  %v1078_v20 = vpop.f32.mrb[2].mxu1  ;;  %v1015_v21 = vpop.f32.mrb[3].mxu0 }
  0xfa   :  { %v618_v22 = vadd.f32 %v1013_v16, %v1518_v14  ;;  %v1016_v23 = vadd.f32 %v1015_v21, %v1014_v18  ;;  %v1079_v24 = vpop.f32.mrb[3].mxu1 }
  0xfb   :  { %v1080_v25 = vadd.f32 %v1079_v24, %v1078_v20 }
  0xfc   :  { %v621_v26 = vadd.f32 %v1016_v23, %v1518_v14  ;;  %v1522_v27 = vadd.f32 %v1077_v19, %v618_v22 }
  0xfe   :  { %v1017_v28 = vpop.f32.mrb[4].mxu0  ;;  %v1524_v29 = vadd.f32 %v1080_v25, %v621_v26 }
  0xff   :  { %v1081_v30 = vpop.f32.mrb[4].mxu1  ;;  %v1018_v31 = vpop.f32.mrb[5].mxu0 }
 0x100   :  { %v1019_v32 = vadd.f32 %v1018_v31, %v1017_v28  ;;  %v1082_v33 = vpop.f32.mrb[5].mxu1  ;;  %v1020_v34 = vpop.f32.mrb[6].mxu0 }
 0x101   :  { %v1083_v35 = vadd.f32 %v1082_v33, %v1081_v30  ;;  %v1084_v36 = vpop.f32.mrb[6].mxu1  ;;  %v1021_v37 = vpop.f32.mrb[7].mxu0 }
 0x102   :  { %v626_v38 = vadd.f32 %v1019_v32, %v1518_v14  ;;  %v1022_v39 = vadd.f32 %v1021_v37, %v1020_v34  ;;  %v1085_v40 = vpop.f32.mrb[7].mxu1 }
 0x103   :  { %v1086_v41 = vadd.f32 %v1085_v40, %v1084_v36 }
 0x104   :  { %v629_v42 = vadd.f32 %v1022_v39, %v1518_v14  ;;  %v1528_v43 = vadd.f32 %v1083_v35, %v626_v38 }
 0x106   :  { %v1023_v44 = vpop.f32.mrb[8].mxu0  ;;  %v1530_v45 = vadd.f32 %v1086_v41, %v629_v42 }
 0x107   :  { %v1087_v46 = vpop.f32.mrb[8].mxu1  ;;  %v1024_v47 = vpop.f32.mrb[9].mxu0 }
 0x108   :  { %v1025_v48 = vadd.f32 %v1024_v47, %v1023_v44  ;;  %v1088_v49 = vpop.f32.mrb[9].mxu1  ;;  %v1026_v50 = vpop.f32.mrb[10].mxu0 }
 0x109   :  { %v1089_v51 = vadd.f32 %v1088_v49, %v1087_v46  ;;  %v1090_v52 = vpop.f32.mrb[10].mxu1  ;;  %v1027_v53 = vpop.f32.mrb[11].mxu0 }
 0x10a   :  { %v634_v54 = vadd.f32 %v1025_v48, %v1518_v14  ;;  %v1028_v55 = vadd.f32 %v1027_v53, %v1026_v50  ;;  %v1091_v56 = vpop.f32.mrb[11].mxu1 }
 0x10b   :  { %v1092_v57 = vadd.f32 %v1091_v56, %v1090_v52 }
 0x10c   :  { %v637_v58 = vadd.f32 %v1028_v55, %v1518_v14  ;;  %v1534_v59 = vadd.f32 %v1089_v51, %v634_v54 }
 0x10e   :  { %v1029_v60 = vpop.f32.mrb[12].mxu0  ;;  %v1536_v61 = vadd.f32 %v1092_v57, %v637_v58 }
 0x10f   :  { %v1093_v62 = vpop.f32.mrb[12].mxu1  ;;  %v1030_v63 = vpop.f32.mrb[13].mxu0 }
 0x110   :  { %v1031_v0 = vadd.f32 %v1030_v63, %v1029_v60  ;;  %v1094_v1 = vpop.f32.mrb[13].mxu1  ;;  %v1032_v2 = vpop.f32.mrb[14].mxu0 }
 0x111   :  { %v1095_v3 = vadd.f32 %v1094_v1, %v1093_v62  ;;  %v1096_v4 = vpop.f32.mrb[14].mxu1  ;;  %v1033_v5 = vpop.f32.mrb[15].mxu0 }
 0x112   :  { %v642_v6 = vadd.f32 %v1031_v0, %v1518_v14  ;;  %v1034_v7 = vadd.f32 %v1033_v5, %v1032_v2  ;;  %v1097_v8 = vpop.f32.mrb[15].mxu1 }
 0x113   :  { %v1098_v9 = vadd.f32 %v1097_v8, %v1096_v4 }
 0x114   :  { %v645_v10 = vadd.f32 %v1034_v7, %v1518_v14  ;;  %v1540_v11 = vadd.f32 %v1095_v3, %v642_v6 }
 0x116   :  { %v1035_v12 = vpop.f32.mrb[16].mxu0  ;;  %v1542_v13 = vadd.f32 %v1098_v9, %v645_v10 }
 0x117   :  { %v1099_v15 = vpop.f32.mrb[16].mxu1  ;;  %v1036_v16 = vpop.f32.mrb[17].mxu0 }
 0x118   :  { %v1037_v17 = vadd.f32 %v1036_v16, %v1035_v12  ;;  %v1100_v18 = vpop.f32.mrb[17].mxu1  ;;  %v1038_v19 = vpop.f32.mrb[18].mxu0 }
 0x119   :  { %v1101_v20 = vadd.f32 %v1100_v18, %v1099_v15  ;;  %v1102_v21 = vpop.f32.mrb[18].mxu1  ;;  %v1039_v22 = vpop.f32.mrb[19].mxu0 }
 0x11a   :  { %v650_v23 = vadd.f32 %v1037_v17, %v1518_v14  ;;  %v1040_v24 = vadd.f32 %v1039_v22, %v1038_v19  ;;  %v1103_v25 = vpop.f32.mrb[19].mxu1 }
 0x11b   :  { %v1104_v26 = vadd.f32 %v1103_v25, %v1102_v21 }
 0x11c   :  { %v653_v28 = vadd.f32 %v1040_v24, %v1518_v14  ;;  %v747_v30 = vadd.f32 %v1101_v20, %v650_v23 }
 0x11e   :  { %v1041_v31 = vpop.f32.mrb[20].mxu0  ;;  %v1546_v32 = vadd.f32 %v1104_v26, %v653_v28 }
 0x11f   :  { %v1105_v33 = vpop.f32.mrb[20].mxu1  ;;  %v1042_v34 = vpop.f32.mrb[21].mxu0 }
 0x120   :  { %v1043_v35 = vadd.f32 %v1042_v34, %v1041_v31  ;;  %v1106_v36 = vpop.f32.mrb[21].mxu1  ;;  %v1044_v37 = vpop.f32.mrb[22].mxu0 }
 0x121   :  { %v1107_v38 = vadd.f32 %v1106_v36, %v1105_v33  ;;  %v1108_v39 = vpop.f32.mrb[22].mxu1  ;;  %v1045_v40 = vpop.f32.mrb[23].mxu0 }
 0x122   :  { %v658_v41 = vadd.f32 %v1043_v35, %v1518_v14  ;;  %v1046_v42 = vadd.f32 %v1045_v40, %v1044_v37  ;;  %v1109_v44 = vpop.f32.mrb[23].mxu1 }
 0x123   :  { %v1110_v46 = vadd.f32 %v1109_v44, %v1108_v39 }
 0x124   :  { %v661_v47 = vadd.f32 %v1046_v42, %v1518_v14  ;;  %v755_v48 = vadd.f32 %v1107_v38, %v658_v41 }
 0x126   :  { %v1047_v49 = vpop.f32.mrb[24].mxu0  ;;  %v758_v50 = vadd.f32 %v1110_v46, %v661_v47 }
 0x127   :  { %v1111_v51 = vpop.f32.mrb[24].mxu1  ;;  %v1048_v52 = vpop.f32.mrb[25].mxu0 }
 0x128   :  { %v1049_v53 = vadd.f32 %v1048_v52, %v1047_v49  ;;  %v1112_v54 = vpop.f32.mrb[25].mxu1  ;;  %v1050_v55 = vpop.f32.mrb[26].mxu0 }
 0x129   :  { %v1113_v56 = vadd.f32 %v1112_v54, %v1111_v51  ;;  %v1114_v57 = vpop.f32.mrb[26].mxu1  ;;  %v1051_v58 = vpop.f32.mrb[27].mxu0 }
 0x12a   :  { %v666_v60 = vadd.f32 %v1049_v53, %v1518_v14  ;;  %v1052_v62 = vadd.f32 %v1051_v58, %v1050_v55  ;;  %v1115_v63 = vpop.f32.mrb[27].mxu1 }
 0x12b   :  { %v1116_v0 = vadd.f32 %v1115_v63, %v1114_v57 }
 0x12c   :  { %v669_v1 = vadd.f32 %v1052_v62, %v1518_v14  ;;  %v763_v2 = vadd.f32 %v1113_v56, %v666_v60 }
 0x12e   :  { %v1053_v3 = vpop.f32.mrb[28].mxu0  ;;  %v1552_v4 = vadd.f32 %v1116_v0, %v669_v1 }
 0x12f   :  { %v1117_v5 = vpop.f32.mrb[28].mxu1  ;;  %v1054_v6 = vpop.f32.mrb[29].mxu0 }
 0x130   :  { %v1055_v7 = vadd.f32 %v1054_v6, %v1053_v3  ;;  %v1118_v8 = vpop.f32.mrb[29].mxu1  ;;  %v1056_v9 = vpop.f32.mrb[30].mxu0 }
 0x131   :  { %v1119_v10 = vadd.f32 %v1118_v8, %v1117_v5  ;;  %v1120_v12 = vpop.f32.mrb[30].mxu1  ;;  %v1057_v15 = vpop.f32.mrb[31].mxu0 }
 0x132   :  { %v674_v16 = vadd.f32 %v1055_v7, %v1518_v14  ;;  %v1058_v17 = vadd.f32 %v1057_v15, %v1056_v9  ;;  %v1121_v18 = vpop.f32.mrb[31].mxu1 }
 0x133   :  { %v1122_v19 = vadd.f32 %v1121_v18, %v1120_v12 }
 0x134   :  { %v677_v20 = vadd.f32 %v1058_v17, %v1518_v14  ;;  %v771_v21 = vadd.f32 %v1119_v10, %v674_v16 }
 0x136   :  { %v1145_v22 = vpop.f32.mrb[32].mxu0  ;;  %v774_v23 = vadd.f32 %v1122_v19, %v677_v20 }
 0x137   :  { %v820_v24 = vadd.f32 %v1145_v22, %v1528_v43  ;;  %v1153_v25 = vpop.f32.mrb[32].mxu1  ;;  %v811_v26 = vpop.f32.mrb[33].mxu0 }
 0x138   :  { %v852_v28 = vadd.f32 %v1153_v25, %v755_v48  ;;  %v812_v31 = vadd.f32 %v811_v26, %v1522_v27  ;;  %v843_v33 = vpop.f32.mrb[33].mxu1  ;;  %v1146_v34 = vpop.f32.mrb[34].mxu0 }
 0x139   :  { %v876_v35 = vmax.f32 %v820_v24, 0.0  ;;  %v844_v36 = vadd.f32 %v843_v33, %v747_v30  ;;  %v823_v37 = vadd.f32 %v1146_v34, %v1530_v45  ;;  %v1154_v38 = vpop.f32.mrb[34].mxu1  ;;  %v814_v39 = vpop.f32.mrb[35].mxu0 }
 0x13a   :  { %v884_v40 = vmax.f32 %v852_v28, 0.0  ;;  %v874_v14 = vmax.f32 %v812_v31, 0.0  ;;  %v855_v41 = vadd.f32 %v1154_v38, %v758_v50  ;;  %v815_v42 = vadd.f32 %v814_v39, %v1524_v29  ;;  %v846_v44 = vpop.f32.mrb[35].mxu1 }
 0x13b   :  { %892 = vst [vmem:[%s1617_s3 + $0x10] sm:$0xff] %v876_v35  ;;  %v882_v43 = vmax.f32 %v844_v36, 0.0  ;;  %v877_v27 = vmax.f32 %v823_v37, 0.0  ;;  %v847_v46 = vadd.f32 %v846_v44, %v1546_v32 }
 0x13c   :  { %900 = vst [vmem:[%s1617_s3 + $0x50] sm:$0xff] %v884_v40  ;;  %890 = vst [vmem:[%s1617_s3] sm:$0xff] %v874_v14  ;;  %v885_v45 = vmax.f32 %v855_v41, 0.0  ;;  %v875_v30 = vmax.f32 %v815_v42, 0.0 }
 0x13d   :  { %898 = vst [vmem:[%s1617_s3 + $0x40] sm:$0xff] %v882_v43  ;;  %893 = vst [vmem:[%s1617_s3 + $0x18] sm:$0xff] %v877_v27  ;;  %v883_v29 = vmax.f32 %v847_v46, 0.0 }
 0x13e   :  { %901 = vst [vmem:[%s1617_s3 + $0x58] sm:$0xff] %v885_v45  ;;  %891 = vst [vmem:[%s1617_s3 + $0x8] sm:$0xff] %v875_v30  ;;  %v1149_v32 = vpop.f32.mrb[36].mxu0 }
 0x13f   :  { %899 = vst [vmem:[%s1617_s3 + $0x48] sm:$0xff] %v883_v29  ;;  %v836_v47 = vadd.f32 %v1149_v32, %v1540_v11  ;;  %v1157_v48 = vpop.f32.mrb[36].mxu1  ;;  %v827_v49 = vpop.f32.mrb[37].mxu0 }
 0x140   :  { %v868_v50 = vadd.f32 %v1157_v48, %v771_v21  ;;  %v828_v51 = vadd.f32 %v827_v49, %v1534_v59  ;;  %v859_v52 = vpop.f32.mrb[37].mxu1  ;;  %v1150_v53 = vpop.f32.mrb[38].mxu0 }
 0x141   :  { %v880_v54 = vmax.f32 %v836_v47, 0.0  ;;  %v860_v55 = vadd.f32 %v859_v52, %v763_v2  ;;  %v839_v56 = vadd.f32 %v1150_v53, %v1542_v13  ;;  %v1158_v57 = vpop.f32.mrb[38].mxu1  ;;  %v830_v58 = vpop.f32.mrb[39].mxu0 }
 0x142   :  { %v888_v60 = vmax.f32 %v868_v50, 0.0  ;;  %v878_v62 = vmax.f32 %v828_v51, 0.0  ;;  %v871_v63 = vadd.f32 %v1158_v57, %v774_v23  ;;  %v831_v0 = vadd.f32 %v830_v58, %v1536_v61  ;;  %v862_v1 = vpop.f32.mrb[39].mxu1 }
 0x143   :  { %896 = vst [vmem:[%s1617_s3 + $0x30] sm:$0xff] %v880_v54  ;;  %v886_v11 = vmax.f32 %v860_v55, 0.0  ;;  %v881_v59 = vmax.f32 %v839_v56, 0.0  ;;  %v863_v3 = vadd.f32 %v862_v1, %v1552_v4 }
 0x144   :  { %904 = vst [vmem:[%s1617_s3 + $0x70] sm:$0xff] %v888_v60  ;;  %894 = vst [vmem:[%s1617_s3 + $0x20] sm:$0xff] %v878_v62  ;;  %v889_v13 = vmax.f32 %v871_v63, 0.0  ;;  %v879_v2 = vmax.f32 %v831_v0, 0.0 }
 0x145   :  { %902 = vst [vmem:[%s1617_s3 + $0x60] sm:$0xff] %v886_v11  ;;  %897 = vst [vmem:[%s1617_s3 + $0x38] sm:$0xff] %v881_v59  ;;  %v887_v61 = vmax.f32 %v863_v3, 0.0 }
 0x146   :  { %905 = vst [vmem:[%s1617_s3 + $0x78] sm:$0xff] %v889_v13  ;;  %895 = vst [vmem:[%s1617_s3 + $0x28] sm:$0xff] %v879_v2 }
 0x147   :  { %903 = vst [vmem:[%s1617_s3 + $0x68] sm:$0xff] %v887_v61 }

// kernel: baseline_forward.24
= control target key start
LH: loop header
LB: loop body
LE: loop exit
PB: predicated region body
PF: predicated region fallthrough
CT: control target
= control target key end

     0   :  { %v2318_v0 = vmov 0   ;;  %vm974_vm0 = vcmask 392192   ;;  %s3123_s1 = inlined_call_operand.vmem [shape: bf16[432,128], index: 1, kind: input, shape index: {}]   ;;  %s3124_s0 = inlined_call_operand.vmem [shape: bf16[512,432], index: 0, kind: input, shape index: {}]   ;;  %s3125_s2 = inlined_call_operand.vmem [shape: f32[1,128], index: 2, kind: input, shape index: {}]   ;;  %s3126_s3 = inlined_call_operand.vmem [shape: f32[512,128], index: 3, kind: output, shape index: {}]  }
   0x1   :  { %1071 = vmatprep.subr.bf16.mxu1 %v2318_v0  ;;  %v2098_v1 = vld [vmem:[%s3123_s1] sm:$0xff]   ;;  %1360 = vmatprep.subr.bf16.mxu0 %v2318_v0  ;;  %v2099_v2 = vld [vmem:[%s3123_s1 + $0x8] sm:$0xff]   ;;  %v2100_v4 = vld [vmem:[%s3123_s1 + $0x10] sm:$0xff]  }
   0x2   :  { %1072 = vmatpush1.bf16.msra.mxu1 %v2098_v1  ;;  %v2103_v3 = vld [vmem:[%s3123_s1 + $0x80] sm:$0xff]   ;;  %v2105_v5 = vld [vmem:[%s3123_s1 + $0x88] sm:$0xff]   ;;  %v2101_v6 = vld [vmem:[%s3123_s1 + $0x18] sm:$0xff]  }
   0x3   :  { %1073 = vmatprep.subr.bf16.mxu1 %v2318_v0  ;;  %1361 = vmatpush1.bf16.msra.mxu0 %v2103_v3  ;;  %v2107_v7 = vld [vmem:[%s3123_s1 + $0x90] sm:$0xff]   ;;  %v2102_v8 = vld [vmem:[%s3123_s1 + $0x20] sm:$0xff]   ;;  %v2109_v9 = vld [vmem:[%s3123_s1 + $0x98] sm:$0xff]  }
   0x4   :  { %1362 = vmatprep.subr.bf16.mxu0 %v2318_v0  ;;  %v2104_v10 = vld [vmem:[%s3123_s1 + $0x28] sm:$0xff]   ;;  %v2111_v11 = vld [vmem:[%s3123_s1 + $0xa0] sm:$0xff]   ;;  %v2106_v12 = vld [vmem:[%s3123_s1 + $0x30] sm:$0xff]  }
   0x5   :  { %v2113_v13 = vld [vmem:[%s3123_s1 + $0xa8] sm:$0xff]   ;;  %v2108_v14 = vld [vmem:[%s3123_s1 + $0x38] sm:$0xff]   ;;  %v2115_v15 = vld [vmem:[%s3123_s1 + $0xb0] sm:$0xff]  }
   0x6   :  { %1074 = vmatpush1.bf16.msra.mxu1 %v2099_v2  ;;  %v2127_v16 = vld [vmem:[%s3124_s0 + $0xc] ss:$16 sps:$4 sm:$0xff]   ;;  %v2130_v17 = vld [vmem:[%s3124_s0 + $0x4] ss:$16 sps:$4 sm:$0xff]   ;;  %v2125_v27 = vld [vmem:[%s3124_s0 + $0x8] ss:$16 sps:$4 sm:$0xff]  }
   0x7   :  { %1075 = vmatprep.subr.bf16.mxu1 %v2318_v0  ;;  %1363 = vmatpush1.bf16.msra.mxu0 %v2105_v5  ;;  %v2110_v18 = vld [vmem:[%s3123_s1 + $0x40] sm:$0xff]   ;;  %v2117_v19 = vld [vmem:[%s3123_s1 + $0xb8] sm:$0xff]   ;;  %v2112_v20 = vld [vmem:[%s3123_s1 + $0x48] sm:$0xff]  }
   0x8   :  { %1364 = vmatprep.subr.bf16.mxu0 %v2318_v0  ;;  %1937 = vmatprep.mubr.msk.bf16.mxu0 %vm974_vm0, %v2127_v16  ;;  %v2119_v21 = vld [vmem:[%s3123_s1 + $0xc0] sm:$0xff]   ;;  %v2114_v22 = vld [vmem:[%s3123_s1 + $0x50] sm:$0xff]   ;;  %v2121_v23 = vld [vmem:[%s3123_s1 + $0xc8] sm:$0xff]  }
   0x9   :  { %1103 = vmatprep.mubr.bf16.mxu1 %v2130_v17  ;;  %v2116_v24 = vld [vmem:[%s3123_s1 + $0x58] sm:$0xff]   ;;  %v2123_v25 = vld [vmem:[%s3123_s1 + $0xd0] sm:$0xff]   ;;  %v2118_v26 = vld [vmem:[%s3123_s1 + $0x60] sm:$0xff]  }
   0xa   :  { %1076 = vmatpush1.bf16.msra.mxu1 %v2100_v4  ;;  %v2131_v28 = vld [vmem:[%s3124_s0 + $0x2c] ss:$16 sps:$4 sm:$0xff]   ;;  %v2122_v30 = vld [vmem:[%s3123_s1 + $0x70] sm:$0xff]   ;;  %v2135_v31 = vld [vmem:[%s3124_s0 + $0x28] ss:$16 sps:$4 sm:$0xff]  }
   0xb   :  { %1077 = vmatprep.subr.bf16.mxu1 %v2318_v0  ;;  %1365 = vmatpush1.bf16.msra.mxu0 %v2107_v7  ;;  %v2120_v29 = vld [vmem:[%s3123_s1 + $0x68] sm:$0xff]   ;;  %v2124_v33 = vld [vmem:[%s3123_s1 + $0x78] sm:$0xff]   ;;  %v2128_v34 = vld [vmem:[%s3124_s0] ss:$16 sps:$4 sm:$0xff]  }
   0xc   :  { %1366 = vmatprep.subr.bf16.mxu0 %v2318_v0  ;;  %v2137_v32 = vld [vmem:[%s3124_s0 + $0x4c] ss:$16 sps:$4 sm:$0xff]   ;;  %v2133_v35 = vld [vmem:[%s3124_s0 + $0x24] ss:$16 sps:$4 sm:$0xff]   ;;  %v2141_v36 = vld [vmem:[%s3124_s0 + $0x48] ss:$16 sps:$4 sm:$0xff]  }
   0xd   :  { %v2143_v37 = vld [vmem:[%s3124_s0 + $0x6c] ss:$16 sps:$4 sm:$0xff]   ;;  %v2136_v38 = vld [vmem:[%s3124_s0 + $0x20] ss:$16 sps:$4 sm:$0xff]   ;;  %v2139_v39 = vld [vmem:[%s3124_s0 + $0x44] ss:$16 sps:$4 sm:$0xff]  }
   0xe   :  { %1078 = vmatpush1.bf16.msra.mxu1 %v2101_v6  ;;  %v2147_v40 = vld [vmem:[%s3124_s0 + $0x68] ss:$16 sps:$4 sm:$0xff]   ;;  %v2149_v41 = vld [vmem:[%s3124_s0 + $0x8c] ss:$16 sps:$4 sm:$0xff]   ;;  %v2142_v42 = vld [vmem:[%s3124_s0 + $0x40] ss:$16 sps:$4 sm:$0xff]  }
   0xf   :  { %1079 = vmatprep.subr.bf16.mxu1 %v2318_v0  ;;  %1367 = vmatpush1.bf16.msra.mxu0 %v2109_v9  ;;  %v2145_v43 = vld [vmem:[%s3124_s0 + $0x64] ss:$16 sps:$4 sm:$0xff]   ;;  %v2153_v44 = vld [vmem:[%s3124_s0 + $0x88] ss:$16 sps:$4 sm:$0xff]   ;;  %v2155_v45 = vld [vmem:[%s3124_s0 + $0xac] ss:$16 sps:$4 sm:$0xff]  }
  0x10   :  { %1368 = vmatprep.subr.bf16.mxu0 %v2318_v0  ;;  %v2148_v46 = vld [vmem:[%s3124_s0 + $0x60] ss:$16 sps:$4 sm:$0xff]   ;;  %v2151_v47 = vld [vmem:[%s3124_s0 + $0x84] ss:$16 sps:$4 sm:$0xff]   ;;  %v2159_v48 = vld [vmem:[%s3124_s0 + $0xa8] ss:$16 sps:$4 sm:$0xff]  }
  0x11   :  { %v2161_v49 = vld [vmem:[%s3124_s0 + $0xcc] ss:$16 sps:$4 sm:$0xff]   ;;  %v2154_v50 = vld [vmem:[%s3124_s0 + $0x80] ss:$16 sps:$4 sm:$0xff]   ;;  %v2157_v51 = vld [vmem:[%s3124_s0 + $0xa4] ss:$16 sps:$4 sm:$0xff]  }
  0x12   :  { %1080 = vmatpush1.bf16.msra.mxu1 %v2102_v8  ;;  %v2165_v52 = vld [vmem:[%s3124_s0 + $0xc8] ss:$16 sps:$4 sm:$0xff]   ;;  %v2167_v53 = vld [vmem:[%s3124_s0 + $0xec] ss:$16 sps:$4 sm:$0xff]   ;;  %v2160_v54 = vld [vmem:[%s3124_s0 + $0xa0] ss:$16 sps:$4 sm:$0xff]  }
  0x13   :  { %1081 = vmatprep.subr.bf16.mxu1 %v2318_v0  ;;  %1369 = vmatpush1.bf16.msra.mxu0 %v2111_v11  ;;  %v2163_v55 = vld [vmem:[%s3124_s0 + $0xc4] ss:$16 sps:$4 sm:$0xff]   ;;  %v2171_v56 = vld [vmem:[%s3124_s0 + $0xe8] ss:$16 sps:$4 sm:$0xff]   ;;  %v2173_v57 = vld [vmem:[%s3124_s0 + $0x10c] ss:$16 sps:$4 sm:$0xff]  }
  0x14   :  { %1370 = vmatprep.subr.bf16.mxu0 %v2318_v0  ;;  %v2166_v58 = vld [vmem:[%s3124_s0 + $0xc0] ss:$16 sps:$4 sm:$0xff]   ;;  %v2169_v59 = vld [vmem:[%s3124_s0 + $0xe4] ss:$16 sps:$4 sm:$0xff]   ;;  %v2177_v60 = vld [vmem:[%s3124_s0 + $0x108] ss:$16 sps:$4 sm:$0xff]  }
  0x15   :  { %v2179_v61 = vld [vmem:[%s3124_s0 + $0x12c] ss:$16 sps:$4 sm:$0xff]   ;;  %v2172_v62 = vld [vmem:[%s3124_s0 + $0xe0] ss:$16 sps:$4 sm:$0xff]   ;;  %v2175_v63 = vld [vmem:[%s3124_s0 + $0x104] ss:$16 sps:$4 sm:$0xff]  }
  0x16   :  { %1082 = vmatpush1.bf16.msra.mxu1 %v2104_v10  ;;  %v2185_v1 = vld [vmem:[%s3124_s0 + $0x14c] ss:$16 sps:$4 sm:$0xff]   ;;  %v2178_v2 = vld [vmem:[%s3124_s0 + $0x100] ss:$16 sps:$4 sm:$0xff]   ;;  %v2181_v3 = vld [vmem:[%s3124_s0 + $0x124] ss:$16 sps:$4 sm:$0xff]  }
  0x17   :  { %1083 = vmatprep.subr.bf16.mxu1 %v2318_v0  ;;  %1371 = vmatpush1.bf16.msra.mxu0 %v2113_v13  ;;  %v2189_v4 = vld [vmem:[%s3124_s0 + $0x148] ss:$16 sps:$4 sm:$0xff]   ;;  %v2191_v5 = vld [vmem:[%s3124_s0 + $0x16c] ss:$16 sps:$4 sm:$0xff]   ;;  %v2184_v6 = vld [vmem:[%s3124_s0 + $0x120] ss:$16 sps:$4 sm:$0xff]  }
  0x18   :  { %1372 = vmatprep.subr.bf16.mxu0 %v2318_v0  ;;  %v2187_v7 = vld [vmem:[%s3124_s0 + $0x144] ss:$16 sps:$4 sm:$0xff]   ;;  %v2195_v8 = vld [vmem:[%s3124_s0 + $0x168] ss:$16 sps:$4 sm:$0xff]   ;;  %v2197_v9 = vld [vmem:[%s3124_s0 + $0x18c] ss:$16 sps:$4 sm:$0xff]  }
  0x19   :  { %v2190_v10 = vld [vmem:[%s3124_s0 + $0x140] ss:$16 sps:$4 sm:$0xff]   ;;  %v2193_v11 = vld [vmem:[%s3124_s0 + $0x164] ss:$16 sps:$4 sm:$0xff]   ;;  %v2203_v13 = vld [vmem:[%s3124_s0 + $0x1ac] ss:$16 sps:$4 sm:$0xff]  }
  0x1a   :  { %1084 = vmatpush1.bf16.msra.mxu1 %v2106_v12  ;;  %v2201_v12 = vld [vmem:[%s3124_s0 + $0x188] ss:$16 sps:$4 sm:$0xff]   ;;  %v2209_v17 = vld [vmem:[%s3124_s0 + $0x1cc] ss:$16 sps:$4 sm:$0xff]  }
  0x1b   :  { %1085 = vmatprep.subr.bf16.mxu1 %v2318_v0  ;;  %1373 = vmatpush1.bf16.msra.mxu0 %v2115_v15  ;;  %v2199_v15 = vld [vmem:[%s3124_s0 + $0x184] ss:$16 sps:$4 sm:$0xff]   ;;  %v2207_v16 = vld [vmem:[%s3124_s0 + $0x1a8] ss:$16 sps:$4 sm:$0xff]  }
  0x1c   :  { %1374 = vmatprep.subr.bf16.mxu0 %v2318_v0 }
  0x1e   :  { %1086 = vmatpush1.bf16.msra.mxu1 %v2108_v14  ;;  %v2196_v14 = vld [vmem:[%s3124_s0 + $0x160] ss:$16 sps:$4 sm:$0xff]  }
  0x1f   :  { %1087 = vmatprep.subr.bf16.mxu1 %v2318_v0  ;;  %1375 = vmatpush1.bf16.msra.mxu0 %v2117_v19  ;;  %v2205_v19 = vld [vmem:[%s3124_s0 + $0x1a4] ss:$16 sps:$4 sm:$0xff]  }
  0x20   :  { %1376 = vmatprep.subr.bf16.mxu0 %v2318_v0 }
  0x22   :  { %1088 = vmatpush1.bf16.msra.mxu1 %v2110_v18  ;;  %v2202_v18 = vld [vmem:[%s3124_s0 + $0x180] ss:$16 sps:$4 sm:$0xff]  }
  0x23   :  { %1089 = vmatprep.subr.bf16.mxu1 %v2318_v0  ;;  %1377 = vmatpush1.bf16.msra.mxu0 %v2119_v21  ;;  %v2215_v21 = vld [vmem:[%s3124_s0 + $0x1ec] ss:$16 sps:$4 sm:$0xff]  }
  0x24   :  { %1378 = vmatprep.subr.bf16.mxu0 %v2318_v0 }
  0x26   :  { %1090 = vmatpush1.bf16.msra.mxu1 %v2112_v20  ;;  %v2213_v20 = vld [vmem:[%s3124_s0 + $0x1c8] ss:$16 sps:$4 sm:$0xff]  }
  0x27   :  { %1091 = vmatprep.subr.bf16.mxu1 %v2318_v0  ;;  %1379 = vmatpush1.bf16.msra.mxu0 %v2121_v23  ;;  %v2211_v23 = vld [vmem:[%s3124_s0 + $0x1c4] ss:$16 sps:$4 sm:$0xff]  }
  0x28   :  { %1380 = vmatprep.subr.bf16.mxu0 %v2318_v0 }
  0x2a   :  { %1092 = vmatpush1.bf16.msra.mxu1 %v2114_v22  ;;  %v2208_v22 = vld [vmem:[%s3124_s0 + $0x1a0] ss:$16 sps:$4 sm:$0xff]  }
  0x2b   :  { %1093 = vmatprep.subr.bf16.mxu1 %v2318_v0  ;;  %1381 = vmatpush1.bf16.msra.mxu0 %v2123_v25  ;;  %v2221_v25 = vld [vmem:[%s3124_s0 + $0x20c] ss:$16 sps:$4 sm:$0xff]  }
  0x2e   :  { %1094 = vmatpush1.bf16.msra.mxu1 %v2116_v24  ;;  %1393 = vmatmul.mubr.bf16.vlgmr.msra.gmra.mrb[0].mxu0 %v2125_v27  ;;  %v2219_v24 = vld [vmem:[%s3124_s0 + $0x1e8] ss:$16 sps:$4 sm:$0xff]   ;;  %v2217_v27 = vld [vmem:[%s3124_s0 + $0x1e4] ss:$16 sps:$4 sm:$0xff]  }
  0x2f   :  { %1095 = vmatprep.subr.bf16.mxu1 %v2318_v0  ;;  %1938 = vmatprep.mubr.msk.bf16.mxu0 %vm974_vm0, %v2131_v28  ;;  %v2225_v28 = vld [vmem:[%s3124_s0 + $0x208] ss:$16 sps:$4 sm:$0xff]  }
  0x32   :  { %1096 = vmatpush1.bf16.msra.mxu1 %v2118_v26  ;;  %v2214_v26 = vld [vmem:[%s3124_s0 + $0x1c0] ss:$16 sps:$4 sm:$0xff]  }
  0x33   :  { %1097 = vmatprep.subr.bf16.mxu1 %v2318_v0 }
  0x36   :  { %1098 = vmatpush1.bf16.msra.mxu1 %v2120_v29  ;;  %1401 = vmatmul.mubr.bf16.gmra.mrb[4].mxu0 %v2135_v31  ;;  %v2227_v29 = vld [vmem:[%s3124_s0 + $0x22c] ss:$16 sps:$4 sm:$0xff]   ;;  %v2223_v31 = vld [vmem:[%s3124_s0 + $0x204] ss:$16 sps:$4 sm:$0xff]  }
  0x37   :  { %1099 = vmatprep.subr.bf16.mxu1 %v2318_v0  ;;  %1939 = vmatprep.mubr.msk.bf16.mxu0 %vm974_vm0, %v2137_v32  ;;  %v2231_v32 = vld [vmem:[%s3124_s0 + $0x228] ss:$16 sps:$4 sm:$0xff]  }
  0x3a   :  { %1100 = vmatpush1.bf16.msra.mxu1 %v2122_v30  ;;  %v2220_v30 = vld [vmem:[%s3124_s0 + $0x1e0] ss:$16 sps:$4 sm:$0xff]  }
  0x3b   :  { %1101 = vmatprep.subr.bf16.mxu1 %v2318_v0  ;;  %v2183_v0 = vld [vmem:[%s3124_s0 + $0x128] ss:$16 sps:$4 sm:$0xff]  }
  0x3e   :  { %1102 = vmatpush1.bf16.msra.mxu1 %v2124_v33  ;;  %1409 = vmatmul.mubr.bf16.gmra.mrb[8].mxu0 %v2141_v36  ;;  %v2233_v33 = vld [vmem:[%s3124_s0 + $0x24c] ss:$16 sps:$4 sm:$0xff]   ;;  %v2237_v36 = vld [vmem:[%s3124_s0 + $0x248] ss:$16 sps:$4 sm:$0xff]  }
  0x3f   :  { %1940 = vmatprep.mubr.msk.bf16.mxu0 %vm974_vm0, %v2143_v37  ;;  %v2239_v37 = vld [vmem:[%s3124_s0 + $0x26c] ss:$16 sps:$4 sm:$0xff]  }
  0x41   :  { %1104 = vmatmul.mubr.bf16.vlgmr.msra.gmra.mrb[0].mxu1 %v2128_v34  ;;  %v2226_v34 = vld [vmem:[%s3124_s0 + $0x200] ss:$16 sps:$4 sm:$0xff]  }
  0x42   :  { %1111 = vmatprep.mubr.bf16.mxu1 %v2133_v35  ;;  %v2229_v35 = vld [vmem:[%s3124_s0 + $0x224] ss:$16 sps:$4 sm:$0xff]  }
  0x46   :  { %1417 = vmatmul.mubr.bf16.gmra.mrb[12].mxu0 %v2147_v40  ;;  %v2243_v40 = vld [vmem:[%s3124_s0 + $0x268] ss:$16 sps:$4 sm:$0xff]  }
  0x47   :  { %1941 = vmatprep.mubr.msk.bf16.mxu0 %vm974_vm0, %v2149_v41  ;;  %v2245_v41 = vld [vmem:[%s3124_s0 + $0x28c] ss:$16 sps:$4 sm:$0xff]  }
  0x49   :  { %1112 = vmatmul.mubr.bf16.gmra.mrb[4].mxu1 %v2136_v38  ;;  %v2232_v38 = vld [vmem:[%s3124_s0 + $0x220] ss:$16 sps:$4 sm:$0xff]  }
  0x4a   :  { %1119 = vmatprep.mubr.bf16.mxu1 %v2139_v39  ;;  %v2235_v39 = vld [vmem:[%s3124_s0 + $0x244] ss:$16 sps:$4 sm:$0xff]  }
  0x4e   :  { %1425 = vmatmul.mubr.bf16.gmra.mrb[16].mxu0 %v2153_v44  ;;  %v2249_v44 = vld [vmem:[%s3124_s0 + $0x288] ss:$16 sps:$4 sm:$0xff]  }
  0x4f   :  { %1942 = vmatprep.mubr.msk.bf16.mxu0 %vm974_vm0, %v2155_v45  ;;  %v2251_v45 = vld [vmem:[%s3124_s0 + $0x2ac] ss:$16 sps:$4 sm:$0xff]  }
  0x51   :  { %1120 = vmatmul.mubr.bf16.gmra.mrb[8].mxu1 %v2142_v42  ;;  %v2238_v42 = vld [vmem:[%s3124_s0 + $0x240] ss:$16 sps:$4 sm:$0xff]  }
  0x52   :  { %1127 = vmatprep.mubr.bf16.mxu1 %v2145_v43  ;;  %v2241_v43 = vld [vmem:[%s3124_s0 + $0x264] ss:$16 sps:$4 sm:$0xff]  }
  0x56   :  { %1433 = vmatmul.mubr.bf16.gmra.mrb[20].mxu0 %v2159_v48  ;;  %v2255_v48 = vld [vmem:[%s3124_s0 + $0x2a8] ss:$16 sps:$4 sm:$0xff]  }
  0x57   :  { %1943 = vmatprep.mubr.msk.bf16.mxu0 %vm974_vm0, %v2161_v49  ;;  %v2257_v49 = vld [vmem:[%s3124_s0 + $0x2cc] ss:$16 sps:$4 sm:$0xff]  }
  0x59   :  { %1128 = vmatmul.mubr.bf16.gmra.mrb[12].mxu1 %v2148_v46  ;;  %v2244_v46 = vld [vmem:[%s3124_s0 + $0x260] ss:$16 sps:$4 sm:$0xff]  }
  0x5a   :  { %1135 = vmatprep.mubr.bf16.mxu1 %v2151_v47  ;;  %v2247_v47 = vld [vmem:[%s3124_s0 + $0x284] ss:$16 sps:$4 sm:$0xff]  }
  0x5e   :  { %1441 = vmatmul.mubr.bf16.gmra.mrb[24].mxu0 %v2165_v52  ;;  %v2261_v52 = vld [vmem:[%s3124_s0 + $0x2c8] ss:$16 sps:$4 sm:$0xff]  }
  0x5f   :  { %1944 = vmatprep.mubr.msk.bf16.mxu0 %vm974_vm0, %v2167_v53  ;;  %v2263_v53 = vld [vmem:[%s3124_s0 + $0x2ec] ss:$16 sps:$4 sm:$0xff]  }
  0x61   :  { %1136 = vmatmul.mubr.bf16.gmra.mrb[16].mxu1 %v2154_v50  ;;  %v2250_v50 = vld [vmem:[%s3124_s0 + $0x280] ss:$16 sps:$4 sm:$0xff]  }
  0x62   :  { %1143 = vmatprep.mubr.bf16.mxu1 %v2157_v51  ;;  %v2253_v51 = vld [vmem:[%s3124_s0 + $0x2a4] ss:$16 sps:$4 sm:$0xff]  }
  0x66   :  { %1449 = vmatmul.mubr.bf16.gmra.mrb[28].mxu0 %v2171_v56  ;;  %v2267_v56 = vld [vmem:[%s3124_s0 + $0x2e8] ss:$16 sps:$4 sm:$0xff]  }
  0x67   :  { %1945 = vmatprep.mubr.msk.bf16.mxu0 %vm974_vm0, %v2173_v57  ;;  %v2269_v57 = vld [vmem:[%s3124_s0 + $0x30c] ss:$16 sps:$4 sm:$0xff]  }
  0x69   :  { %1144 = vmatmul.mubr.bf16.gmra.mrb[20].mxu1 %v2160_v54  ;;  %v2256_v54 = vld [vmem:[%s3124_s0 + $0x2a0] ss:$16 sps:$4 sm:$0xff]  }
  0x6a   :  { %1151 = vmatprep.mubr.bf16.mxu1 %v2163_v55  ;;  %v2259_v55 = vld [vmem:[%s3124_s0 + $0x2c4] ss:$16 sps:$4 sm:$0xff]  }
  0x6e   :  { %1457 = vmatmul.mubr.bf16.gmra.mrb[32].mxu0 %v2177_v60  ;;  %v2273_v60 = vld [vmem:[%s3124_s0 + $0x308] ss:$16 sps:$4 sm:$0xff]  }
  0x6f   :  { %1946 = vmatprep.mubr.msk.bf16.mxu0 %vm974_vm0, %v2179_v61  ;;  %v2275_v61 = vld [vmem:[%s3124_s0 + $0x32c] ss:$16 sps:$4 sm:$0xff]  }
  0x71   :  { %1152 = vmatmul.mubr.bf16.gmra.mrb[24].mxu1 %v2166_v58  ;;  %v2262_v58 = vld [vmem:[%s3124_s0 + $0x2c0] ss:$16 sps:$4 sm:$0xff]  }
  0x72   :  { %1159 = vmatprep.mubr.bf16.mxu1 %v2169_v59  ;;  %v2265_v59 = vld [vmem:[%s3124_s0 + $0x2e4] ss:$16 sps:$4 sm:$0xff]  }
  0x76   :  { %1465 = vmatmul.mubr.bf16.gmra.mrb[36].mxu0 %v2183_v0  ;;  %v2279_v0 = vld [vmem:[%s3124_s0 + $0x328] ss:$16 sps:$4 sm:$0xff]  }
  0x77   :  { %1947 = vmatprep.mubr.msk.bf16.mxu0 %vm974_vm0, %v2185_v1  ;;  %v2281_v1 = vld [vmem:[%s3124_s0 + $0x34c] ss:$16 sps:$4 sm:$0xff]  }
  0x79   :  { %1160 = vmatmul.mubr.bf16.gmra.mrb[28].mxu1 %v2172_v62  ;;  %v2268_v62 = vld [vmem:[%s3124_s0 + $0x2e0] ss:$16 sps:$4 sm:$0xff]  }
  0x7a   :  { %1167 = vmatprep.mubr.bf16.mxu1 %v2175_v63  ;;  %v2271_v63 = vld [vmem:[%s3124_s0 + $0x304] ss:$16 sps:$4 sm:$0xff]  }
  0x7e   :  { %1473 = vmatmul.mubr.bf16.gmra.mrb[40].mxu0 %v2189_v4  ;;  %v2285_v4 = vld [vmem:[%s3124_s0 + $0x348] ss:$16 sps:$4 sm:$0xff]  }
  0x7f   :  { %1948 = vmatprep.mubr.msk.bf16.mxu0 %vm974_vm0, %v2191_v5  ;;  %v2287_v5 = vld [vmem:[%s3124_s0 + $0x36c] ss:$16 sps:$4 sm:$0xff]  }
  0x81   :  { %1168 = vmatmul.mubr.bf16.gmra.mrb[32].mxu1 %v2178_v2  ;;  %v2274_v2 = vld [vmem:[%s3124_s0 + $0x300] ss:$16 sps:$4 sm:$0xff]  }
  0x82   :  { %1175 = vmatprep.mubr.bf16.mxu1 %v2181_v3  ;;  %v2277_v3 = vld [vmem:[%s3124_s0 + $0x324] ss:$16 sps:$4 sm:$0xff]  }
  0x86   :  { %1481 = vmatmul.mubr.bf16.gmra.mrb[44].mxu0 %v2195_v8  ;;  %v2283_v8 = vld [vmem:[%s3124_s0 + $0x344] ss:$16 sps:$4 sm:$0xff]  }
  0x87   :  { %1949 = vmatprep.mubr.msk.bf16.mxu0 %vm974_vm0, %v2197_v9 }
  0x89   :  { %1176 = vmatmul.mubr.bf16.gmra.mrb[36].mxu1 %v2184_v6  ;;  %v2280_v6 = vld [vmem:[%s3124_s0 + $0x320] ss:$16 sps:$4 sm:$0xff]  }
  0x8a   :  { %1183 = vmatprep.mubr.bf16.mxu1 %v2187_v7 }
  0x8e   :  { %1489 = vmatmul.mubr.bf16.gmra.mrb[48].mxu0 %v2201_v12  ;;  %v2293_v12 = vld [vmem:[%s3124_s0 + $0x38c] ss:$16 sps:$4 sm:$0xff]  }
  0x8f   :  { %1950 = vmatprep.mubr.msk.bf16.mxu0 %vm974_vm0, %v2203_v13 }
  0x91   :  { %1184 = vmatmul.mubr.bf16.gmra.mrb[40].mxu1 %v2190_v10  ;;  %v2291_v10 = vld [vmem:[%s3124_s0 + $0x368] ss:$16 sps:$4 sm:$0xff]  }
  0x92   :  { %1191 = vmatprep.mubr.bf16.mxu1 %v2193_v11 }
  0x96   :  { %1497 = vmatmul.mubr.bf16.gmra.mrb[52].mxu0 %v2207_v16  ;;  %v2289_v16 = vld [vmem:[%s3124_s0 + $0x364] ss:$16 sps:$4 sm:$0xff]  }
  0x97   :  { %1951 = vmatprep.mubr.msk.bf16.mxu0 %vm974_vm0, %v2209_v17 }
  0x99   :  { %1192 = vmatmul.mubr.bf16.gmra.mrb[44].mxu1 %v2196_v14  ;;  %v2286_v14 = vld [vmem:[%s3124_s0 + $0x340] ss:$16 sps:$4 sm:$0xff]  }
  0x9a   :  { %1199 = vmatprep.mubr.bf16.mxu1 %v2199_v15 }
  0x9e   :  { %1505 = vmatmul.mubr.bf16.gmra.mrb[56].mxu0 %v2213_v20  ;;  %v2299_v20 = vld [vmem:[%s3124_s0 + $0x3ac] ss:$16 sps:$4 sm:$0xff]  }
  0x9f   :  { %1952 = vmatprep.mubr.msk.bf16.mxu0 %vm974_vm0, %v2215_v21 }
  0xa1   :  { %1200 = vmatmul.mubr.bf16.gmra.mrb[48].mxu1 %v2202_v18  ;;  %v2297_v18 = vld [vmem:[%s3124_s0 + $0x388] ss:$16 sps:$4 sm:$0xff]  }
  0xa2   :  { %1207 = vmatprep.mubr.bf16.mxu1 %v2205_v19 }
  0xa6   :  { %1513 = vmatmul.mubr.bf16.gmra.mrb[60].mxu0 %v2219_v24 }
  0xa7   :  { %1953 = vmatprep.mubr.msk.bf16.mxu0 %vm974_vm0, %v2221_v25 }
  0xa9   :  { %1208 = vmatmul.mubr.bf16.gmra.mrb[52].mxu1 %v2208_v22  ;;  %v2821_v22 = vld [vmem:[%s3125_s2] ss:$0 sm:$0xff] }
  0xaa   :  { %1215 = vmatprep.mubr.bf16.mxu1 %v2211_v23 }
  0xae   :  { %1521 = vmatmul.mubr.bf16.gmra.mrb[64].mxu0 %v2225_v28 }
  0xaf   :  { %1954 = vmatprep.mubr.msk.bf16.mxu0 %vm974_vm0, %v2227_v29  ;;  %v2295_v29 = vld [vmem:[%s3124_s0 + $0x384] ss:$16 sps:$4 sm:$0xff]  }
  0xb1   :  { %1216 = vmatmul.mubr.bf16.gmra.mrb[56].mxu1 %v2214_v26  ;;  %v2292_v26 = vld [vmem:[%s3124_s0 + $0x360] ss:$16 sps:$4 sm:$0xff]  }
  0xb2   :  { %1223 = vmatprep.mubr.bf16.mxu1 %v2217_v27 }
  0xb6   :  { %1529 = vmatmul.mubr.bf16.gmra.mrb[68].mxu0 %v2231_v32 }
  0xb7   :  { %1955 = vmatprep.mubr.msk.bf16.mxu0 %vm974_vm0, %v2233_v33 }
  0xb9   :  { %1224 = vmatmul.mubr.bf16.gmra.mrb[60].mxu1 %v2220_v30 }
  0xba   :  { %1231 = vmatprep.mubr.bf16.mxu1 %v2223_v31  ;;  %v2303_v31 = vld [vmem:[%s3124_s0 + $0x3a8] ss:$16 sps:$4 sm:$0xff]  }
  0xbe   :  { %1537 = vmatmul.mubr.bf16.gmra.mrb[72].mxu0 %v2237_v36  ;;  %v2305_v36 = vld [vmem:[%s3124_s0 + $0x3cc] ss:$16 sps:$4 sm:$0xff]  }
  0xbf   :  { %1956 = vmatprep.mubr.msk.bf16.mxu0 %vm974_vm0, %v2239_v37 }
  0xc1   :  { %1232 = vmatmul.mubr.bf16.gmra.mrb[64].mxu1 %v2226_v34 }
  0xc2   :  { %1239 = vmatprep.mubr.bf16.mxu1 %v2229_v35 }
  0xc6   :  { %1545 = vmatmul.mubr.bf16.gmra.mrb[76].mxu0 %v2243_v40 }
  0xc7   :  { %1957 = vmatprep.mubr.msk.bf16.mxu0 %vm974_vm0, %v2245_v41 }
  0xc9   :  { %1240 = vmatmul.mubr.bf16.gmra.mrb[68].mxu1 %v2232_v38 }
  0xca   :  { %1247 = vmatprep.mubr.bf16.mxu1 %v2235_v39 }
  0xce   :  { %1553 = vmatmul.mubr.bf16.gmra.mrb[80].mxu0 %v2249_v44  ;;  %v2298_v44 = vld [vmem:[%s3124_s0 + $0x380] ss:$16 sps:$4 sm:$0xff]  }
  0xcf   :  { %1958 = vmatprep.mubr.msk.bf16.mxu0 %vm974_vm0, %v2251_v45 }
  0xd1   :  { %1248 = vmatmul.mubr.bf16.gmra.mrb[72].mxu1 %v2238_v42 }
  0xd2   :  { %1255 = vmatprep.mubr.bf16.mxu1 %v2241_v43 }
  0xd6   :  { %1561 = vmatmul.mubr.bf16.gmra.mrb[84].mxu0 %v2255_v48 }
  0xd7   :  { %1959 = vmatprep.mubr.msk.bf16.mxu0 %vm974_vm0, %v2257_v49  ;;  %v2309_v49 = vld [vmem:[%s3124_s0 + $0x3c8] ss:$16 sps:$4 sm:$0xff]  }
  0xd9   :  { %1256 = vmatmul.mubr.bf16.gmra.mrb[76].mxu1 %v2244_v46 }
  0xda   :  { %1263 = vmatprep.mubr.bf16.mxu1 %v2247_v47  ;;  %v2301_v47 = vld [vmem:[%s3124_s0 + $0x3a4] ss:$16 sps:$4 sm:$0xff]  }
  0xde   :  { %1569 = vmatmul.mubr.bf16.gmra.mrb[88].mxu0 %v2261_v52 }
  0xdf   :  { %1960 = vmatprep.mubr.msk.bf16.mxu0 %vm974_vm0, %v2263_v53 }
  0xe1   :  { %1264 = vmatmul.mubr.bf16.gmra.mrb[80].mxu1 %v2250_v50 }
  0xe2   :  { %1271 = vmatprep.mubr.bf16.mxu1 %v2253_v51 }
  0xe6   :  { %1577 = vmatmul.mubr.bf16.gmra.mrb[92].mxu0 %v2267_v56 }
  0xe7   :  { %1961 = vmatprep.mubr.msk.bf16.mxu0 %vm974_vm0, %v2269_v57 }
  0xe9   :  { %1272 = vmatmul.mubr.bf16.gmra.mrb[84].mxu1 %v2256_v54  ;;  %v2311_v54 = vld [vmem:[%s3124_s0 + $0x3ec] ss:$16 sps:$4 sm:$0xff]  }
  0xea   :  { %1279 = vmatprep.mubr.bf16.mxu1 %v2259_v55 }
  0xee   :  { %1585 = vmatmul.mubr.bf16.gmra.mrb[96].mxu0 %v2273_v60 }
  0xef   :  { %1962 = vmatprep.mubr.msk.bf16.mxu0 %vm974_vm0, %v2275_v61 }
  0xf1   :  { %1280 = vmatmul.mubr.bf16.gmra.mrb[88].mxu1 %v2262_v58 }
  0xf2   :  { %1287 = vmatprep.mubr.bf16.mxu1 %v2265_v59 }
  0xf6   :  { %1593 = vmatmul.mubr.bf16.gmra.mrb[100].mxu0 %v2279_v0 }
  0xf7   :  { %1963 = vmatprep.mubr.msk.bf16.mxu0 %vm974_vm0, %v2281_v1  ;;  %v2307_v1 = vld [vmem:[%s3124_s0 + $0x3c4] ss:$16 sps:$4 sm:$0xff]  }
  0xf9   :  { %1288 = vmatmul.mubr.bf16.gmra.mrb[92].mxu1 %v2268_v62  ;;  %v2304_v62 = vld [vmem:[%s3124_s0 + $0x3a0] ss:$16 sps:$4 sm:$0xff]  }
  0xfa   :  { %1295 = vmatprep.mubr.bf16.mxu1 %v2271_v63 }
  0xfe   :  { %1601 = vmatmul.mubr.bf16.gmra.mrb[104].mxu0 %v2285_v4 }
  0xff   :  { %1964 = vmatprep.mubr.msk.bf16.mxu0 %vm974_vm0, %v2287_v5 }
 0x101   :  { %1296 = vmatmul.mubr.bf16.gmra.mrb[96].mxu1 %v2274_v2  ;;  %v1394_v7 = vpop.f32.mrb[0].mxu0 }
 0x102   :  { %1303 = vmatprep.mubr.bf16.mxu1 %v2277_v3  ;;  %v1396_v9 = vpop.f32.mrb[1].mxu0  ;;  %v2315_v3 = vld [vmem:[%s3124_s0 + $0x3e8] ss:$16 sps:$4 sm:$0xff]  }
 0x103   :  { %v1397_v11 = vpop.f32.mrb[2].mxu0 }
 0x104   :  { %v1399_v13 = vpop.f32.mrb[3].mxu0 }
 0x106   :  { %1609 = vmatmul.mubr.bf16.gmra.mrb[108].mxu0 %v2291_v10 }
 0x107   :  { %1965 = vmatprep.mubr.msk.bf16.mxu0 %vm974_vm0, %v2293_v12 }
 0x109   :  { %1304 = vmatmul.mubr.bf16.gmra.mrb[100].mxu1 %v2280_v6  ;;  %v1402_v15 = vpop.f32.mrb[4].mxu0 }
 0x10a   :  { %1311 = vmatprep.mubr.bf16.mxu1 %v2283_v8  ;;  %v1404_v17 = vpop.f32.mrb[5].mxu0 }
 0x10b   :  { %v1405_v19 = vpop.f32.mrb[6].mxu0 }
 0x10c   :  { %v1407_v21 = vpop.f32.mrb[7].mxu0 }
 0x10e   :  { %1617 = vmatmul.mubr.bf16.gmra.mrb[112].mxu0 %v2297_v18  ;;  %v2313_v18 = vld [vmem:[%s3124_s0 + $0x3e4] ss:$16 sps:$4 sm:$0xff]  }
 0x10f   :  { %1966 = vmatprep.mubr.msk.bf16.mxu0 %vm974_vm0, %v2299_v20 }
 0x111   :  { %1312 = vmatmul.mubr.bf16.gmra.mrb[104].mxu1 %v2286_v14  ;;  %v1410_v27 = vpop.f32.mrb[8].mxu0 }
 0x112   :  { %1319 = vmatprep.mubr.bf16.mxu1 %v2289_v16  ;;  %v1412_v30 = vpop.f32.mrb[9].mxu0 }
 0x113   :  { %v1413_v35 = vpop.f32.mrb[10].mxu0 }
 0x114   :  { %v1105_v23 = vpop.f32.mrb[0].mxu1  ;;  %v1415_v37 = vpop.f32.mrb[11].mxu0 }
 0x115   :  { %v1106_v24 = vadd.f32 %v2821_v22, %v1105_v23  ;;  %v1107_v25 = vpop.f32.mrb[1].mxu1 }
 0x116   :  { %v1108_v28 = vpop.f32.mrb[2].mxu1  ;;  %1625 = vmatmul.mubr.bf16.gmra.mrb[116].mxu0 %v2303_v31 }
 0x117   :  { %v1395_v32 = vadd.f32 %v1394_v7, %v1106_v24  ;;  %v1109_v33 = vadd.f32 %v2821_v22, %v1108_v28  ;;  %v1110_v34 = vpop.f32.mrb[3].mxu1  ;;  %1967 = vmatprep.mubr.msk.bf16.mxu0 %vm974_vm0, %v2305_v36 }
 0x119   :  { %v1649_v38 = vmax.f32 %v1395_v32, 0.0  ;;  %v1398_v39 = vadd.f32 %v1397_v11, %v1109_v33  ;;  %1320 = vmatmul.mubr.bf16.gmra.mrb[108].mxu1 %v2292_v26  ;;  %v1418_v45 = vpop.f32.mrb[12].mxu0  ;;  %v2316_v32 = vld [vmem:[%s3124_s0 + $0x3e0] ss:$16 sps:$4 sm:$0xff]  }
 0x11a   :  { %1327 = vmatprep.mubr.bf16.mxu1 %v2295_v29  ;;  %v1420_v48 = vpop.f32.mrb[13].mxu0 }
 0x11b   :  { %1713 = vst [vmem:[%s3126_s3] sm:$0xff] %v1649_v38  ;;  %v1650_v40 = vmax.f32 %v1398_v39, 0.0  ;;  %v1421_v53 = vpop.f32.mrb[14].mxu0 }
 0x11c   :  { %v1113_v41 = vpop.f32.mrb[4].mxu1  ;;  %v1423_v55 = vpop.f32.mrb[15].mxu0 }
 0x11d   :  { %1714 = vst [vmem:[%s3126_s3 + $0x8] sm:$0xff] %v1650_v40  ;;  %v1114_v42 = vadd.f32 %v2821_v22, %v1113_v41  ;;  %v1115_v43 = vpop.f32.mrb[5].mxu1 }
 0x11e   :  { %v1116_v46 = vpop.f32.mrb[6].mxu1  ;;  %1633 = vmatmul.mubr.bf16.gmra.mrb[120].mxu0 %v2309_v49 }
 0x11f   :  { %v1403_v50 = vadd.f32 %v1402_v15, %v1114_v42  ;;  %v1117_v51 = vadd.f32 %v2821_v22, %v1116_v46  ;;  %v1118_v52 = vpop.f32.mrb[7].mxu1  ;;  %1968 = vmatprep.mubr.msk.bf16.mxu0 %vm974_vm0, %v2311_v54  ;;  %v2310_v15 = vld [vmem:[%s3124_s0 + $0x3c0] ss:$16 sps:$4 sm:$0xff]  }
 0x121   :  { %v1651_v56 = vmax.f32 %v1403_v50, 0.0  ;;  %v1406_v57 = vadd.f32 %v1405_v19, %v1117_v51  ;;  %1328 = vmatmul.mubr.bf16.gmra.mrb[112].mxu1 %v2298_v44  ;;  %v1426_v63 = vpop.f32.mrb[16].mxu0 }
 0x122   :  { %1335 = vmatprep.mubr.bf16.mxu1 %v2301_v47  ;;  %v1428_v2 = vpop.f32.mrb[17].mxu0 }
 0x123   :  { %1715 = vst [vmem:[%s3126_s3 + $0x10] sm:$0xff] %v1651_v56  ;;  %v1652_v58 = vmax.f32 %v1406_v57, 0.0  ;;  %v1429_v7 = vpop.f32.mrb[18].mxu0 }
 0x124   :  { %v1121_v59 = vpop.f32.mrb[8].mxu1  ;;  %v1431_v8 = vpop.f32.mrb[19].mxu0 }
 0x125   :  { %1716 = vst [vmem:[%s3126_s3 + $0x18] sm:$0xff] %v1652_v58  ;;  %v1122_v60 = vadd.f32 %v2821_v22, %v1121_v59  ;;  %v1123_v61 = vpop.f32.mrb[9].mxu1 }
 0x126   :  { %v1124_v0 = vpop.f32.mrb[10].mxu1  ;;  %1641 = vmatmul.mubr.bf16.gmra.mrb[124].mxu0 %v2315_v3 }
 0x127   :  { %v1411_v4 = vadd.f32 %v1410_v27, %v1122_v60  ;;  %v1125_v5 = vadd.f32 %v2821_v22, %v1124_v0  ;;  %v1126_v6 = vpop.f32.mrb[11].mxu1 }
 0x129   :  { %v1653_v9 = vmax.f32 %v1411_v4, 0.0  ;;  %v1414_v10 = vadd.f32 %v1413_v35, %v1125_v5  ;;  %1336 = vmatmul.mubr.bf16.gmra.mrb[116].mxu1 %v2304_v62  ;;  %v1434_v16 = vpop.f32.mrb[20].mxu0 }
 0x12a   :  { %1343 = vmatprep.mubr.bf16.mxu1 %v2307_v1  ;;  %v1436_v19 = vpop.f32.mrb[21].mxu0 }
 0x12b   :  { %1717 = vst [vmem:[%s3126_s3 + $0x20] sm:$0xff] %v1653_v9  ;;  %v1654_v11 = vmax.f32 %v1414_v10, 0.0  ;;  %v1437_v24 = vpop.f32.mrb[22].mxu0 }
 0x12c   :  { %v1129_v12 = vpop.f32.mrb[12].mxu1  ;;  %v1439_v25 = vpop.f32.mrb[23].mxu0 }
 0x12d   :  { %1718 = vst [vmem:[%s3126_s3 + $0x28] sm:$0xff] %v1654_v11  ;;  %v1130_v13 = vadd.f32 %v2821_v22, %v1129_v12  ;;  %v1131_v14 = vpop.f32.mrb[13].mxu1 }
 0x12e   :  { %v1132_v17 = vpop.f32.mrb[14].mxu1 }
 0x12f   :  { %v1419_v20 = vadd.f32 %v1418_v45, %v1130_v13  ;;  %v1133_v21 = vadd.f32 %v2821_v22, %v1132_v17  ;;  %v1134_v23 = vpop.f32.mrb[15].mxu1 }
 0x131   :  { %v1655_v26 = vmax.f32 %v1419_v20, 0.0  ;;  %v1422_v27 = vadd.f32 %v1421_v53, %v1133_v21  ;;  %1344 = vmatmul.mubr.bf16.gmra.mrb[120].mxu1 %v2310_v15  ;;  %v1442_v33 = vpop.f32.mrb[24].mxu0 }
 0x132   :  { %1351 = vmatprep.mubr.bf16.mxu1 %v2313_v18  ;;  %v1444_v35 = vpop.f32.mrb[25].mxu0 }
 0x133   :  { %1719 = vst [vmem:[%s3126_s3 + $0x30] sm:$0xff] %v1655_v26  ;;  %v1656_v28 = vmax.f32 %v1422_v27, 0.0  ;;  %v1445_v39 = vpop.f32.mrb[26].mxu0 }
 0x134   :  { %v1137_v29 = vpop.f32.mrb[16].mxu1  ;;  %v1447_v40 = vpop.f32.mrb[27].mxu0 }
 0x135   :  { %1720 = vst [vmem:[%s3126_s3 + $0x38] sm:$0xff] %v1656_v28  ;;  %v1138_v30 = vadd.f32 %v2821_v22, %v1137_v29  ;;  %v1139_v31 = vpop.f32.mrb[17].mxu1 }
 0x136   :  { %v1140_v34 = vpop.f32.mrb[18].mxu1 }
 0x137   :  { %v1427_v36 = vadd.f32 %v1426_v63, %v1138_v30  ;;  %v1141_v37 = vadd.f32 %v2821_v22, %v1140_v34  ;;  %v1142_v38 = vpop.f32.mrb[19].mxu1 }
 0x139   :  { %v1657_v41 = vmax.f32 %v1427_v36, 0.0  ;;  %v1430_v42 = vadd.f32 %v1429_v7, %v1141_v37  ;;  %1352 = vmatmul.mubr.bf16.gmra.mrb[124].mxu1 %v2316_v32  ;;  %v1450_v47 = vpop.f32.mrb[28].mxu0 }
 0x13a   :  { %v1452_v49 = vpop.f32.mrb[29].mxu0 }
 0x13b   :  { %1721 = vst [vmem:[%s3126_s3 + $0x40] sm:$0xff] %v1657_v41  ;;  %v1658_v43 = vmax.f32 %v1430_v42, 0.0  ;;  %v1453_v53 = vpop.f32.mrb[30].mxu0 }
 0x13c   :  { %v1145_v44 = vpop.f32.mrb[20].mxu1  ;;  %v1455_v54 = vpop.f32.mrb[31].mxu0 }
 0x13d   :  { %1722 = vst [vmem:[%s3126_s3 + $0x48] sm:$0xff] %v1658_v43  ;;  %v1146_v45 = vadd.f32 %v2821_v22, %v1145_v44  ;;  %v1147_v46 = vpop.f32.mrb[21].mxu1 }
 0x13e   :  { %v1148_v48 = vpop.f32.mrb[22].mxu1 }
 0x13f   :  { %v1435_v50 = vadd.f32 %v1434_v16, %v1146_v45  ;;  %v1149_v51 = vadd.f32 %v2821_v22, %v1148_v48  ;;  %v1150_v52 = vpop.f32.mrb[23].mxu1 }
 0x141   :  { %v1659_v55 = vmax.f32 %v1435_v50, 0.0  ;;  %v1438_v56 = vadd.f32 %v1437_v24, %v1149_v51  ;;  %v1458_v61 = vpop.f32.mrb[32].mxu0 }
 0x142   :  { %v1460_v63 = vpop.f32.mrb[33].mxu0 }
 0x143   :  { %1723 = vst [vmem:[%s3126_s3 + $0x50] sm:$0xff] %v1659_v55  ;;  %v1660_v57 = vmax.f32 %v1438_v56, 0.0  ;;  %v1461_v3 = vpop.f32.mrb[34].mxu0 }
 0x144   :  { %v1153_v58 = vpop.f32.mrb[24].mxu1  ;;  %v1463_v4 = vpop.f32.mrb[35].mxu0 }
 0x145   :  { %1724 = vst [vmem:[%s3126_s3 + $0x58] sm:$0xff] %v1660_v57  ;;  %v1154_v59 = vadd.f32 %v2821_v22, %v1153_v58  ;;  %v1155_v60 = vpop.f32.mrb[25].mxu1 }
 0x146   :  { %v1156_v62 = vpop.f32.mrb[26].mxu1 }
 0x147   :  { %v1443_v0 = vadd.f32 %v1442_v33, %v1154_v59  ;;  %v1157_v1 = vadd.f32 %v2821_v22, %v1156_v62  ;;  %v1158_v2 = vpop.f32.mrb[27].mxu1 }
 0x149   :  { %v1661_v5 = vmax.f32 %v1443_v0, 0.0  ;;  %v1446_v6 = vadd.f32 %v1445_v39, %v1157_v1  ;;  %v1466_v11 = vpop.f32.mrb[36].mxu0 }
 0x14a   :  { %v1468_v13 = vpop.f32.mrb[37].mxu0 }
 0x14b   :  { %1725 = vst [vmem:[%s3126_s3 + $0x60] sm:$0xff] %v1661_v5  ;;  %v1662_v7 = vmax.f32 %v1446_v6, 0.0  ;;  %v1469_v17 = vpop.f32.mrb[38].mxu0 }
 0x14c   :  { %v1161_v8 = vpop.f32.mrb[28].mxu1  ;;  %v1471_v18 = vpop.f32.mrb[39].mxu0 }
 0x14d   :  { %1726 = vst [vmem:[%s3126_s3 + $0x68] sm:$0xff] %v1662_v7  ;;  %v1162_v9 = vadd.f32 %v2821_v22, %v1161_v8  ;;  %v1163_v10 = vpop.f32.mrb[29].mxu1 }
 0x14e   :  { %v1164_v12 = vpop.f32.mrb[30].mxu1 }
 0x14f   :  { %v1451_v14 = vadd.f32 %v1450_v47, %v1162_v9  ;;  %v1165_v15 = vadd.f32 %v2821_v22, %v1164_v12  ;;  %v1166_v16 = vpop.f32.mrb[31].mxu1 }
 0x151   :  { %v1663_v19 = vmax.f32 %v1451_v14, 0.0  ;;  %v1454_v20 = vadd.f32 %v1453_v53, %v1165_v15  ;;  %v1474_v26 = vpop.f32.mrb[40].mxu0 }
 0x152   :  { %v1476_v28 = vpop.f32.mrb[41].mxu0 }
 0x153   :  { %1727 = vst [vmem:[%s3126_s3 + $0x70] sm:$0xff] %v1663_v19  ;;  %v1664_v21 = vmax.f32 %v1454_v20, 0.0  ;;  %v1477_v32 = vpop.f32.mrb[42].mxu0 }
 0x154   :  { %v1169_v23 = vpop.f32.mrb[32].mxu1  ;;  %v1479_v33 = vpop.f32.mrb[43].mxu0 }
 0x155   :  { %1728 = vst [vmem:[%s3126_s3 + $0x78] sm:$0xff] %v1664_v21  ;;  %v1170_v24 = vadd.f32 %v2821_v22, %v1169_v23  ;;  %v1171_v25 = vpop.f32.mrb[33].mxu1 }
 0x156   :  { %v1172_v27 = vpop.f32.mrb[34].mxu1 }
 0x157   :  { %v1459_v29 = vadd.f32 %v1458_v61, %v1170_v24  ;;  %v1173_v30 = vadd.f32 %v2821_v22, %v1172_v27  ;;  %v1174_v31 = vpop.f32.mrb[35].mxu1 }
 0x159   :  { %v1665_v34 = vmax.f32 %v1459_v29, 0.0  ;;  %v1462_v35 = vadd.f32 %v1461_v3, %v1173_v30  ;;  %v1482_v40 = vpop.f32.mrb[44].mxu0 }
 0x15a   :  { %v1484_v42 = vpop.f32.mrb[45].mxu0 }
 0x15b   :  { %1729 = vst [vmem:[%s3126_s3 + $0x80] sm:$0xff] %v1665_v34  ;;  %v1666_v36 = vmax.f32 %v1462_v35, 0.0  ;;  %v1485_v46 = vpop.f32.mrb[46].mxu0 }
 0x15c   :  { %v1177_v37 = vpop.f32.mrb[36].mxu1  ;;  %v1487_v47 = vpop.f32.mrb[47].mxu0 }
 0x15d   :  { %1730 = vst [vmem:[%s3126_s3 + $0x88] sm:$0xff] %v1666_v36  ;;  %v1178_v38 = vadd.f32 %v2821_v22, %v1177_v37  ;;  %v1179_v39 = vpop.f32.mrb[37].mxu1 }
 0x15e   :  { %v1180_v41 = vpop.f32.mrb[38].mxu1 }
 0x15f   :  { %v1467_v43 = vadd.f32 %v1466_v11, %v1178_v38  ;;  %v1181_v44 = vadd.f32 %v2821_v22, %v1180_v41  ;;  %v1182_v45 = vpop.f32.mrb[39].mxu1 }
 0x161   :  { %v1667_v48 = vmax.f32 %v1467_v43, 0.0  ;;  %v1470_v49 = vadd.f32 %v1469_v17, %v1181_v44  ;;  %v1490_v54 = vpop.f32.mrb[48].mxu0 }
 0x162   :  { %v1492_v56 = vpop.f32.mrb[49].mxu0 }
 0x163   :  { %1731 = vst [vmem:[%s3126_s3 + $0x90] sm:$0xff] %v1667_v48  ;;  %v1668_v50 = vmax.f32 %v1470_v49, 0.0  ;;  %v1493_v60 = vpop.f32.mrb[50].mxu0 }
 0x164   :  { %v1185_v51 = vpop.f32.mrb[40].mxu1  ;;  %v1495_v61 = vpop.f32.mrb[51].mxu0 }
 0x165   :  { %1732 = vst [vmem:[%s3126_s3 + $0x98] sm:$0xff] %v1668_v50  ;;  %v1186_v52 = vadd.f32 %v2821_v22, %v1185_v51  ;;  %v1187_v53 = vpop.f32.mrb[41].mxu1 }
 0x166   :  { %v1188_v55 = vpop.f32.mrb[42].mxu1 }
 0x167   :  { %v1475_v57 = vadd.f32 %v1474_v26, %v1186_v52  ;;  %v1189_v58 = vadd.f32 %v2821_v22, %v1188_v55  ;;  %v1190_v59 = vpop.f32.mrb[43].mxu1 }
 0x169   :  { %v1669_v62 = vmax.f32 %v1475_v57, 0.0  ;;  %v1478_v63 = vadd.f32 %v1477_v32, %v1189_v58  ;;  %v1498_v4 = vpop.f32.mrb[52].mxu0 }
 0x16a   :  { %v1500_v6 = vpop.f32.mrb[53].mxu0 }
 0x16b   :  { %1733 = vst [vmem:[%s3126_s3 + $0xa0] sm:$0xff] %v1669_v62  ;;  %v1670_v0 = vmax.f32 %v1478_v63, 0.0  ;;  %v1501_v10 = vpop.f32.mrb[54].mxu0 }
 0x16c   :  { %v1193_v1 = vpop.f32.mrb[44].mxu1  ;;  %v1503_v11 = vpop.f32.mrb[55].mxu0 }
 0x16d   :  { %1734 = vst [vmem:[%s3126_s3 + $0xa8] sm:$0xff] %v1670_v0  ;;  %v1194_v2 = vadd.f32 %v2821_v22, %v1193_v1  ;;  %v1195_v3 = vpop.f32.mrb[45].mxu1 }
 0x16e   :  { %v1196_v5 = vpop.f32.mrb[46].mxu1 }
 0x16f   :  { %v1483_v7 = vadd.f32 %v1482_v40, %v1194_v2  ;;  %v1197_v8 = vadd.f32 %v2821_v22, %v1196_v5  ;;  %v1198_v9 = vpop.f32.mrb[47].mxu1 }
 0x171   :  { %v1671_v12 = vmax.f32 %v1483_v7, 0.0  ;;  %v1486_v13 = vadd.f32 %v1485_v46, %v1197_v8  ;;  %v1506_v18 = vpop.f32.mrb[56].mxu0 }
 0x172   :  { %v1508_v20 = vpop.f32.mrb[57].mxu0 }
 0x173   :  { %1735 = vst [vmem:[%s3126_s3 + $0xb0] sm:$0xff] %v1671_v12  ;;  %v1672_v14 = vmax.f32 %v1486_v13, 0.0  ;;  %v1509_v25 = vpop.f32.mrb[58].mxu0 }
 0x174   :  { %v1201_v15 = vpop.f32.mrb[48].mxu1  ;;  %v1511_v26 = vpop.f32.mrb[59].mxu0 }
 0x175   :  { %1736 = vst [vmem:[%s3126_s3 + $0xb8] sm:$0xff] %v1672_v14  ;;  %v1202_v16 = vadd.f32 %v2821_v22, %v1201_v15  ;;  %v1203_v17 = vpop.f32.mrb[49].mxu1 }
 0x176   :  { %v1204_v19 = vpop.f32.mrb[50].mxu1 }
 0x177   :  { %v1491_v21 = vadd.f32 %v1490_v54, %v1202_v16  ;;  %v1205_v23 = vadd.f32 %v2821_v22, %v1204_v19  ;;  %v1206_v24 = vpop.f32.mrb[51].mxu1 }
 0x179   :  { %v1673_v27 = vmax.f32 %v1491_v21, 0.0  ;;  %v1494_v28 = vadd.f32 %v1493_v60, %v1205_v23  ;;  %v1514_v33 = vpop.f32.mrb[60].mxu0 }
 0x17a   :  { %v1516_v35 = vpop.f32.mrb[61].mxu0 }
 0x17b   :  { %1737 = vst [vmem:[%s3126_s3 + $0xc0] sm:$0xff] %v1673_v27  ;;  %v1674_v29 = vmax.f32 %v1494_v28, 0.0  ;;  %v1517_v39 = vpop.f32.mrb[62].mxu0 }
 0x17c   :  { %v1209_v30 = vpop.f32.mrb[52].mxu1  ;;  %v1519_v40 = vpop.f32.mrb[63].mxu0 }
 0x17d   :  { %1738 = vst [vmem:[%s3126_s3 + $0xc8] sm:$0xff] %v1674_v29  ;;  %v1210_v31 = vadd.f32 %v2821_v22, %v1209_v30  ;;  %v1211_v32 = vpop.f32.mrb[53].mxu1 }
 0x17e   :  { %v1212_v34 = vpop.f32.mrb[54].mxu1 }
 0x17f   :  { %v1499_v36 = vadd.f32 %v1498_v4, %v1210_v31  ;;  %v1213_v37 = vadd.f32 %v2821_v22, %v1212_v34  ;;  %v1214_v38 = vpop.f32.mrb[55].mxu1 }
 0x181   :  { %v1675_v41 = vmax.f32 %v1499_v36, 0.0  ;;  %v1502_v42 = vadd.f32 %v1501_v10, %v1213_v37  ;;  %v1522_v47 = vpop.f32.mrb[64].mxu0 }
 0x182   :  { %v1524_v49 = vpop.f32.mrb[65].mxu0 }
 0x183   :  { %1739 = vst [vmem:[%s3126_s3 + $0xd0] sm:$0xff] %v1675_v41  ;;  %v1676_v43 = vmax.f32 %v1502_v42, 0.0  ;;  %v1525_v53 = vpop.f32.mrb[66].mxu0 }
 0x184   :  { %v1217_v44 = vpop.f32.mrb[56].mxu1  ;;  %v1527_v54 = vpop.f32.mrb[67].mxu0 }
 0x185   :  { %1740 = vst [vmem:[%s3126_s3 + $0xd8] sm:$0xff] %v1676_v43  ;;  %v1218_v45 = vadd.f32 %v2821_v22, %v1217_v44  ;;  %v1219_v46 = vpop.f32.mrb[57].mxu1 }
 0x186   :  { %v1220_v48 = vpop.f32.mrb[58].mxu1 }
 0x187   :  { %v1507_v50 = vadd.f32 %v1506_v18, %v1218_v45  ;;  %v1221_v51 = vadd.f32 %v2821_v22, %v1220_v48  ;;  %v1222_v52 = vpop.f32.mrb[59].mxu1 }
 0x189   :  { %v1677_v55 = vmax.f32 %v1507_v50, 0.0  ;;  %v1510_v56 = vadd.f32 %v1509_v25, %v1221_v51  ;;  %v1530_v61 = vpop.f32.mrb[68].mxu0 }
 0x18a   :  { %v1532_v63 = vpop.f32.mrb[69].mxu0 }
 0x18b   :  { %1741 = vst [vmem:[%s3126_s3 + $0xe0] sm:$0xff] %v1677_v55  ;;  %v1678_v57 = vmax.f32 %v1510_v56, 0.0  ;;  %v1533_v3 = vpop.f32.mrb[70].mxu0 }
 0x18c   :  { %v1225_v58 = vpop.f32.mrb[60].mxu1  ;;  %v1535_v4 = vpop.f32.mrb[71].mxu0 }
 0x18d   :  { %1742 = vst [vmem:[%s3126_s3 + $0xe8] sm:$0xff] %v1678_v57  ;;  %v1226_v59 = vadd.f32 %v2821_v22, %v1225_v58  ;;  %v1227_v60 = vpop.f32.mrb[61].mxu1 }
 0x18e   :  { %v1228_v62 = vpop.f32.mrb[62].mxu1 }
 0x18f   :  { %v1515_v0 = vadd.f32 %v1514_v33, %v1226_v59  ;;  %v1229_v1 = vadd.f32 %v2821_v22, %v1228_v62  ;;  %v1230_v2 = vpop.f32.mrb[63].mxu1 }
 0x191   :  { %v1679_v5 = vmax.f32 %v1515_v0, 0.0  ;;  %v1518_v6 = vadd.f32 %v1517_v39, %v1229_v1  ;;  %v1538_v11 = vpop.f32.mrb[72].mxu0 }
 0x192   :  { %v1540_v13 = vpop.f32.mrb[73].mxu0 }
 0x193   :  { %1743 = vst [vmem:[%s3126_s3 + $0xf0] sm:$0xff] %v1679_v5  ;;  %v1680_v7 = vmax.f32 %v1518_v6, 0.0  ;;  %v1541_v17 = vpop.f32.mrb[74].mxu0 }
 0x194   :  { %v1233_v8 = vpop.f32.mrb[64].mxu1  ;;  %v1543_v18 = vpop.f32.mrb[75].mxu0 }
 0x195   :  { %1744 = vst [vmem:[%s3126_s3 + $0xf8] sm:$0xff] %v1680_v7  ;;  %v1234_v9 = vadd.f32 %v2821_v22, %v1233_v8  ;;  %v1235_v10 = vpop.f32.mrb[65].mxu1 }
 0x196   :  { %v1236_v12 = vpop.f32.mrb[66].mxu1 }
 0x197   :  { %v1523_v14 = vadd.f32 %v1522_v47, %v1234_v9  ;;  %v1237_v15 = vadd.f32 %v2821_v22, %v1236_v12  ;;  %v1238_v16 = vpop.f32.mrb[67].mxu1 }
 0x199   :  { %v1681_v19 = vmax.f32 %v1523_v14, 0.0  ;;  %v1526_v20 = vadd.f32 %v1525_v53, %v1237_v15  ;;  %v1546_v26 = vpop.f32.mrb[76].mxu0 }
 0x19a   :  { %v1548_v28 = vpop.f32.mrb[77].mxu0 }
 0x19b   :  { %1745 = vst [vmem:[%s3126_s3 + $0x100] sm:$0xff] %v1681_v19  ;;  %v1682_v21 = vmax.f32 %v1526_v20, 0.0  ;;  %v1549_v32 = vpop.f32.mrb[78].mxu0 }
 0x19c   :  { %v1241_v23 = vpop.f32.mrb[68].mxu1  ;;  %v1551_v33 = vpop.f32.mrb[79].mxu0 }
 0x19d   :  { %1746 = vst [vmem:[%s3126_s3 + $0x108] sm:$0xff] %v1682_v21  ;;  %v1242_v24 = vadd.f32 %v2821_v22, %v1241_v23  ;;  %v1243_v25 = vpop.f32.mrb[69].mxu1 }
 0x19e   :  { %v1244_v27 = vpop.f32.mrb[70].mxu1 }
 0x19f   :  { %v1531_v29 = vadd.f32 %v1530_v61, %v1242_v24  ;;  %v1245_v30 = vadd.f32 %v2821_v22, %v1244_v27  ;;  %v1246_v31 = vpop.f32.mrb[71].mxu1 }
 0x1a1   :  { %v1683_v34 = vmax.f32 %v1531_v29, 0.0  ;;  %v1534_v35 = vadd.f32 %v1533_v3, %v1245_v30  ;;  %v1554_v40 = vpop.f32.mrb[80].mxu0 }
 0x1a2   :  { %v1556_v42 = vpop.f32.mrb[81].mxu0 }
 0x1a3   :  { %1747 = vst [vmem:[%s3126_s3 + $0x110] sm:$0xff] %v1683_v34  ;;  %v1684_v36 = vmax.f32 %v1534_v35, 0.0  ;;  %v1557_v46 = vpop.f32.mrb[82].mxu0 }
 0x1a4   :  { %v1249_v37 = vpop.f32.mrb[72].mxu1  ;;  %v1559_v47 = vpop.f32.mrb[83].mxu0 }
 0x1a5   :  { %1748 = vst [vmem:[%s3126_s3 + $0x118] sm:$0xff] %v1684_v36  ;;  %v1250_v38 = vadd.f32 %v2821_v22, %v1249_v37  ;;  %v1251_v39 = vpop.f32.mrb[73].mxu1 }
 0x1a6   :  { %v1252_v41 = vpop.f32.mrb[74].mxu1 }
 0x1a7   :  { %v1539_v43 = vadd.f32 %v1538_v11, %v1250_v38  ;;  %v1253_v44 = vadd.f32 %v2821_v22, %v1252_v41  ;;  %v1254_v45 = vpop.f32.mrb[75].mxu1 }
 0x1a9   :  { %v1685_v48 = vmax.f32 %v1539_v43, 0.0  ;;  %v1542_v49 = vadd.f32 %v1541_v17, %v1253_v44  ;;  %v1562_v54 = vpop.f32.mrb[84].mxu0 }
 0x1aa   :  { %v1564_v56 = vpop.f32.mrb[85].mxu0 }
 0x1ab   :  { %1749 = vst [vmem:[%s3126_s3 + $0x120] sm:$0xff] %v1685_v48  ;;  %v1686_v50 = vmax.f32 %v1542_v49, 0.0  ;;  %v1565_v60 = vpop.f32.mrb[86].mxu0 }
 0x1ac   :  { %v1257_v51 = vpop.f32.mrb[76].mxu1  ;;  %v1567_v61 = vpop.f32.mrb[87].mxu0 }
 0x1ad   :  { %1750 = vst [vmem:[%s3126_s3 + $0x128] sm:$0xff] %v1686_v50  ;;  %v1258_v52 = vadd.f32 %v2821_v22, %v1257_v51  ;;  %v1259_v53 = vpop.f32.mrb[77].mxu1 }
 0x1ae   :  { %v1260_v55 = vpop.f32.mrb[78].mxu1 }
 0x1af   :  { %v1547_v57 = vadd.f32 %v1546_v26, %v1258_v52  ;;  %v1261_v58 = vadd.f32 %v2821_v22, %v1260_v55  ;;  %v1262_v59 = vpop.f32.mrb[79].mxu1 }
 0x1b1   :  { %v1687_v62 = vmax.f32 %v1547_v57, 0.0  ;;  %v1550_v63 = vadd.f32 %v1549_v32, %v1261_v58  ;;  %v1570_v4 = vpop.f32.mrb[88].mxu0 }
 0x1b2   :  { %v1572_v6 = vpop.f32.mrb[89].mxu0 }
 0x1b3   :  { %1751 = vst [vmem:[%s3126_s3 + $0x130] sm:$0xff] %v1687_v62  ;;  %v1688_v0 = vmax.f32 %v1550_v63, 0.0  ;;  %v1573_v10 = vpop.f32.mrb[90].mxu0 }
 0x1b4   :  { %v1265_v1 = vpop.f32.mrb[80].mxu1  ;;  %v1575_v11 = vpop.f32.mrb[91].mxu0 }
 0x1b5   :  { %1752 = vst [vmem:[%s3126_s3 + $0x138] sm:$0xff] %v1688_v0  ;;  %v1266_v2 = vadd.f32 %v2821_v22, %v1265_v1  ;;  %v1267_v3 = vpop.f32.mrb[81].mxu1 }
 0x1b6   :  { %v1268_v5 = vpop.f32.mrb[82].mxu1 }
 0x1b7   :  { %v1555_v7 = vadd.f32 %v1554_v40, %v1266_v2  ;;  %v1269_v8 = vadd.f32 %v2821_v22, %v1268_v5  ;;  %v1270_v9 = vpop.f32.mrb[83].mxu1 }
 0x1b9   :  { %v1689_v12 = vmax.f32 %v1555_v7, 0.0  ;;  %v1558_v13 = vadd.f32 %v1557_v46, %v1269_v8  ;;  %v1578_v18 = vpop.f32.mrb[92].mxu0 }
 0x1ba   :  { %v1580_v20 = vpop.f32.mrb[93].mxu0 }
 0x1bb   :  { %1753 = vst [vmem:[%s3126_s3 + $0x140] sm:$0xff] %v1689_v12  ;;  %v1690_v14 = vmax.f32 %v1558_v13, 0.0  ;;  %v1581_v25 = vpop.f32.mrb[94].mxu0 }
 0x1bc   :  { %v1273_v15 = vpop.f32.mrb[84].mxu1  ;;  %v1583_v26 = vpop.f32.mrb[95].mxu0 }
 0x1bd   :  { %1754 = vst [vmem:[%s3126_s3 + $0x148] sm:$0xff] %v1690_v14  ;;  %v1274_v16 = vadd.f32 %v2821_v22, %v1273_v15  ;;  %v1275_v17 = vpop.f32.mrb[85].mxu1 }
 0x1be   :  { %v1276_v19 = vpop.f32.mrb[86].mxu1 }
 0x1bf   :  { %v1563_v21 = vadd.f32 %v1562_v54, %v1274_v16  ;;  %v1277_v23 = vadd.f32 %v2821_v22, %v1276_v19  ;;  %v1278_v24 = vpop.f32.mrb[87].mxu1 }
 0x1c1   :  { %v1691_v27 = vmax.f32 %v1563_v21, 0.0  ;;  %v1566_v28 = vadd.f32 %v1565_v60, %v1277_v23  ;;  %v1586_v33 = vpop.f32.mrb[96].mxu0 }
 0x1c2   :  { %v1588_v35 = vpop.f32.mrb[97].mxu0 }
 0x1c3   :  { %1755 = vst [vmem:[%s3126_s3 + $0x150] sm:$0xff] %v1691_v27  ;;  %v1692_v29 = vmax.f32 %v1566_v28, 0.0  ;;  %v1589_v39 = vpop.f32.mrb[98].mxu0 }
 0x1c4   :  { %v1281_v30 = vpop.f32.mrb[88].mxu1  ;;  %v1591_v40 = vpop.f32.mrb[99].mxu0 }
 0x1c5   :  { %1756 = vst [vmem:[%s3126_s3 + $0x158] sm:$0xff] %v1692_v29  ;;  %v1282_v31 = vadd.f32 %v2821_v22, %v1281_v30  ;;  %v1283_v32 = vpop.f32.mrb[89].mxu1 }
 0x1c6   :  { %v1284_v34 = vpop.f32.mrb[90].mxu1 }
 0x1c7   :  { %v1571_v36 = vadd.f32 %v1570_v4, %v1282_v31  ;;  %v1285_v37 = vadd.f32 %v2821_v22, %v1284_v34  ;;  %v1286_v38 = vpop.f32.mrb[91].mxu1 }
 0x1c9   :  { %v1693_v41 = vmax.f32 %v1571_v36, 0.0  ;;  %v1574_v42 = vadd.f32 %v1573_v10, %v1285_v37  ;;  %v1594_v47 = vpop.f32.mrb[100].mxu0 }
 0x1ca   :  { %v1596_v49 = vpop.f32.mrb[101].mxu0 }
 0x1cb   :  { %1757 = vst [vmem:[%s3126_s3 + $0x160] sm:$0xff] %v1693_v41  ;;  %v1694_v43 = vmax.f32 %v1574_v42, 0.0  ;;  %v1597_v53 = vpop.f32.mrb[102].mxu0 }
 0x1cc   :  { %v1289_v44 = vpop.f32.mrb[92].mxu1  ;;  %v1599_v54 = vpop.f32.mrb[103].mxu0 }
 0x1cd   :  { %1758 = vst [vmem:[%s3126_s3 + $0x168] sm:$0xff] %v1694_v43  ;;  %v1290_v45 = vadd.f32 %v2821_v22, %v1289_v44  ;;  %v1291_v46 = vpop.f32.mrb[93].mxu1 }
 0x1ce   :  { %v1292_v48 = vpop.f32.mrb[94].mxu1 }
 0x1cf   :  { %v1579_v50 = vadd.f32 %v1578_v18, %v1290_v45  ;;  %v1293_v51 = vadd.f32 %v2821_v22, %v1292_v48  ;;  %v1294_v52 = vpop.f32.mrb[95].mxu1 }
 0x1d1   :  { %v1695_v55 = vmax.f32 %v1579_v50, 0.0  ;;  %v1582_v56 = vadd.f32 %v1581_v25, %v1293_v51  ;;  %v1602_v61 = vpop.f32.mrb[104].mxu0 }
 0x1d2   :  { %v1604_v63 = vpop.f32.mrb[105].mxu0 }
 0x1d3   :  { %1759 = vst [vmem:[%s3126_s3 + $0x170] sm:$0xff] %v1695_v55  ;;  %v1696_v57 = vmax.f32 %v1582_v56, 0.0  ;;  %v1605_v3 = vpop.f32.mrb[106].mxu0 }
 0x1d4   :  { %v1297_v58 = vpop.f32.mrb[96].mxu1  ;;  %v1607_v4 = vpop.f32.mrb[107].mxu0 }
 0x1d5   :  { %1760 = vst [vmem:[%s3126_s3 + $0x178] sm:$0xff] %v1696_v57  ;;  %v1298_v59 = vadd.f32 %v2821_v22, %v1297_v58  ;;  %v1299_v60 = vpop.f32.mrb[97].mxu1 }
 0x1d6   :  { %v1300_v62 = vpop.f32.mrb[98].mxu1 }
 0x1d7   :  { %v1587_v0 = vadd.f32 %v1586_v33, %v1298_v59  ;;  %v1301_v1 = vadd.f32 %v2821_v22, %v1300_v62  ;;  %v1302_v2 = vpop.f32.mrb[99].mxu1 }
 0x1d9   :  { %v1697_v5 = vmax.f32 %v1587_v0, 0.0  ;;  %v1590_v6 = vadd.f32 %v1589_v39, %v1301_v1  ;;  %v1610_v11 = vpop.f32.mrb[108].mxu0 }
 0x1da   :  { %v1612_v13 = vpop.f32.mrb[109].mxu0 }
 0x1db   :  { %1761 = vst [vmem:[%s3126_s3 + $0x180] sm:$0xff] %v1697_v5  ;;  %v1698_v7 = vmax.f32 %v1590_v6, 0.0  ;;  %v1613_v17 = vpop.f32.mrb[110].mxu0 }
 0x1dc   :  { %v1305_v8 = vpop.f32.mrb[100].mxu1  ;;  %v1615_v18 = vpop.f32.mrb[111].mxu0 }
 0x1dd   :  { %1762 = vst [vmem:[%s3126_s3 + $0x188] sm:$0xff] %v1698_v7  ;;  %v1306_v9 = vadd.f32 %v2821_v22, %v1305_v8  ;;  %v1307_v10 = vpop.f32.mrb[101].mxu1 }
 0x1de   :  { %v1308_v12 = vpop.f32.mrb[102].mxu1 }
 0x1df   :  { %v1595_v14 = vadd.f32 %v1594_v47, %v1306_v9  ;;  %v1309_v15 = vadd.f32 %v2821_v22, %v1308_v12  ;;  %v1310_v16 = vpop.f32.mrb[103].mxu1 }
 0x1e0   :  { %v2317_v16 = vld [vmem:[%s3125_s2] ss:$0 sm:$0xff] }
 0x1e1   :  { %v1699_v19 = vmax.f32 %v1595_v14, 0.0  ;;  %v1598_v20 = vadd.f32 %v1597_v53, %v1309_v15  ;;  %v1618_v26 = vpop.f32.mrb[112].mxu0 }
 0x1e2   :  { %v1620_v28 = vpop.f32.mrb[113].mxu0 }
 0x1e3   :  { %1763 = vst [vmem:[%s3126_s3 + $0x190] sm:$0xff] %v1699_v19  ;;  %v1700_v21 = vmax.f32 %v1598_v20, 0.0  ;;  %v1621_v32 = vpop.f32.mrb[114].mxu0 }
 0x1e4   :  { %v1313_v23 = vpop.f32.mrb[104].mxu1  ;;  %v1623_v33 = vpop.f32.mrb[115].mxu0 }
 0x1e5   :  { %1764 = vst [vmem:[%s3126_s3 + $0x198] sm:$0xff] %v1700_v21  ;;  %v1314_v24 = vadd.f32 %v2821_v22, %v1313_v23  ;;  %v1315_v25 = vpop.f32.mrb[105].mxu1 }
 0x1e6   :  { %v1316_v27 = vpop.f32.mrb[106].mxu1 }
 0x1e7   :  { %v1603_v29 = vadd.f32 %v1602_v61, %v1314_v24  ;;  %v1317_v30 = vadd.f32 %v2821_v22, %v1316_v27  ;;  %v1318_v31 = vpop.f32.mrb[107].mxu1 }
 0x1e9   :  { %v1701_v34 = vmax.f32 %v1603_v29, 0.0  ;;  %v1606_v35 = vadd.f32 %v1605_v3, %v1317_v30  ;;  %v1626_v40 = vpop.f32.mrb[116].mxu0 }
 0x1ea   :  { %v1628_v42 = vpop.f32.mrb[117].mxu0 }
 0x1eb   :  { %1765 = vst [vmem:[%s3126_s3 + $0x1a0] sm:$0xff] %v1701_v34  ;;  %v1702_v36 = vmax.f32 %v1606_v35, 0.0  ;;  %v1629_v46 = vpop.f32.mrb[118].mxu0 }
 0x1ec   :  { %v1321_v37 = vpop.f32.mrb[108].mxu1  ;;  %v1631_v47 = vpop.f32.mrb[119].mxu0 }
 0x1ed   :  { %1766 = vst [vmem:[%s3126_s3 + $0x1a8] sm:$0xff] %v1702_v36  ;;  %v1322_v38 = vadd.f32 %v2821_v22, %v1321_v37  ;;  %v1323_v39 = vpop.f32.mrb[109].mxu1 }
 0x1ee   :  { %v1324_v41 = vpop.f32.mrb[110].mxu1 }
 0x1ef   :  { %v1611_v43 = vadd.f32 %v1610_v11, %v1322_v38  ;;  %v1325_v44 = vadd.f32 %v2821_v22, %v1324_v41  ;;  %v1326_v45 = vpop.f32.mrb[111].mxu1 }
 0x1f1   :  { %v1703_v48 = vmax.f32 %v1611_v43, 0.0  ;;  %v1614_v49 = vadd.f32 %v1613_v17, %v1325_v44  ;;  %v1634_v54 = vpop.f32.mrb[120].mxu0 }
 0x1f2   :  { %v1636_v56 = vpop.f32.mrb[121].mxu0 }
 0x1f3   :  { %1767 = vst [vmem:[%s3126_s3 + $0x1b0] sm:$0xff] %v1703_v48  ;;  %v1704_v50 = vmax.f32 %v1614_v49, 0.0  ;;  %v1637_v60 = vpop.f32.mrb[122].mxu0 }
 0x1f4   :  { %v1329_v51 = vpop.f32.mrb[112].mxu1  ;;  %v1639_v61 = vpop.f32.mrb[123].mxu0 }
 0x1f5   :  { %1768 = vst [vmem:[%s3126_s3 + $0x1b8] sm:$0xff] %v1704_v50  ;;  %v1330_v52 = vadd.f32 %v2821_v22, %v1329_v51  ;;  %v1331_v53 = vpop.f32.mrb[113].mxu1 }
 0x1f6   :  { %v1332_v55 = vpop.f32.mrb[114].mxu1 }
 0x1f7   :  { %v1619_v57 = vadd.f32 %v1618_v26, %v1330_v52  ;;  %v1333_v58 = vadd.f32 %v2821_v22, %v1332_v55  ;;  %v1334_v59 = vpop.f32.mrb[115].mxu1 }
 0x1f9   :  { %v1705_v62 = vmax.f32 %v1619_v57, 0.0  ;;  %v1622_v63 = vadd.f32 %v1621_v32, %v1333_v58  ;;  %v1642_v4 = vpop.f32.mrb[124].mxu0 }
 0x1fa   :  { %v1644_v6 = vpop.f32.mrb[125].mxu0 }
 0x1fb   :  { %1769 = vst [vmem:[%s3126_s3 + $0x1c0] sm:$0xff] %v1705_v62  ;;  %v1706_v0 = vmax.f32 %v1622_v63, 0.0  ;;  %v1645_v10 = vpop.f32.mrb[126].mxu0 }
 0x1fc   :  { %v1337_v1 = vpop.f32.mrb[116].mxu1  ;;  %v1647_v11 = vpop.f32.mrb[127].mxu0 }
 0x1fd   :  { %1770 = vst [vmem:[%s3126_s3 + $0x1c8] sm:$0xff] %v1706_v0  ;;  %v1338_v2 = vadd.f32 %v2821_v22, %v1337_v1  ;;  %v1339_v3 = vpop.f32.mrb[117].mxu1 }
 0x1fe   :  { %v1340_v5 = vpop.f32.mrb[118].mxu1 }
 0x1ff   :  { %v1627_v7 = vadd.f32 %v1626_v40, %v1338_v2  ;;  %v1341_v8 = vadd.f32 %v2821_v22, %v1340_v5  ;;  %v1342_v9 = vpop.f32.mrb[119].mxu1 }
 0x201   :  { %v1707_v12 = vmax.f32 %v1627_v7, 0.0  ;;  %v1630_v13 = vadd.f32 %v1629_v46, %v1341_v8 }
 0x203   :  { %1771 = vst [vmem:[%s3126_s3 + $0x1d0] sm:$0xff] %v1707_v12  ;;  %v1708_v14 = vmax.f32 %v1630_v13, 0.0 }
 0x204   :  { %v1345_v15 = vpop.f32.mrb[120].mxu1 }
 0x205   :  { %1772 = vst [vmem:[%s3126_s3 + $0x1d8] sm:$0xff] %v1708_v14  ;;  %v1346_v22 = vadd.f32 %v2317_v16, %v1345_v15  ;;  %v1347_v17 = vpop.f32.mrb[121].mxu1 }
 0x206   :  { %v1348_v18 = vpop.f32.mrb[122].mxu1 }
 0x207   :  { %v1635_v19 = vadd.f32 %v1634_v54, %v1346_v22  ;;  %v1349_v20 = vadd.f32 %v2317_v16, %v1348_v18  ;;  %v1350_v21 = vpop.f32.mrb[123].mxu1 }
 0x209   :  { %v1709_v23 = vmax.f32 %v1635_v19, 0.0  ;;  %v1638_v24 = vadd.f32 %v1637_v60, %v1349_v20 }
 0x20b   :  { %1773 = vst [vmem:[%s3126_s3 + $0x1e0] sm:$0xff] %v1709_v23  ;;  %v1710_v25 = vmax.f32 %v1638_v24, 0.0 }
 0x20c   :  { %v1353_v26 = vpop.f32.mrb[124].mxu1 }
 0x20d   :  { %1774 = vst [vmem:[%s3126_s3 + $0x1e8] sm:$0xff] %v1710_v25  ;;  %v1354_v27 = vadd.f32 %v2317_v16, %v1353_v26  ;;  %v1355_v28 = vpop.f32.mrb[125].mxu1 }
 0x20e   :  { %v1356_v29 = vpop.f32.mrb[126].mxu1 }
 0x20f   :  { %v1643_v30 = vadd.f32 %v1642_v4, %v1354_v27  ;;  %v1357_v31 = vadd.f32 %v2317_v16, %v1356_v29  ;;  %v1358_v32 = vpop.f32.mrb[127].mxu1 }
 0x211   :  { %v1711_v33 = vmax.f32 %v1643_v30, 0.0  ;;  %v1646_v34 = vadd.f32 %v1645_v10, %v1357_v31 }
 0x213   :  { %1775 = vst [vmem:[%s3126_s3 + $0x1f0] sm:$0xff] %v1711_v33  ;;  %v1712_v35 = vmax.f32 %v1646_v34, 0.0 }
 0x215   :  { %1776 = vst [vmem:[%s3126_s3 + $0x1f8] sm:$0xff] %v1712_v35 }

// kernel: baseline_forward.27
= control target key start
LH: loop header
LB: loop body
LE: loop exit
PB: predicated region body
PF: predicated region fallthrough
CT: control target
= control target key end

     0   :  { %s589_s6 = smov 0   ;;  %s723_s0 = inlined_call_operand.vmem [shape: f32[4,32,32], index: 0, kind: input, shape index: {}]   ;;  %s724_s1 = inlined_call_operand.vmem [shape: f32[8,128], index: 1, kind: output, shape index: {}]  }
   0x1 LB: > { %s595_s7 = sadd.s32 4294967295, %s573_s6   ;;  %p548_p0 = scmp.ge.s32.totalorder %s573_s6, 1  ;;  %s573_s6 = sphi %s589_s6, %s11_s6  }
   0x2   : > { %p82_p1 = scmp.lt.s32.totalorder %s573_s6, 5 }
   0x4   : > { %p83_p2 = pnand %p548_p0, %p82_p1 }
   0x5   : > { %p97_p3 = scmp.lt.s32.totalorder (!%p83_p2), %s595_s7, 3  ;;  %vm126_vm0 = vcmask (!%p83_p2), 1040384   ;;  %s575_s13 = smov (!%p83_p2), 1   ;;  %vm232_vm1 = vcmask (!%p83_p2), 252928   ;;  %vm263_vm2 = vcmask (!%p83_p2), 261120   ;;  %vm259_vm3 = vcmask (!%p83_p2), 261121  }
   0x6   : > { %86 = sbr.rel (%p83_p2) target bundleno = 555 (0x22b), region = 24  ;;  %s576_s14 = smov (!%p83_p2), 127   ;;  %vm468_vm4 = vcmask (!%p83_p2), 261122   ;;  %vm365_vm5 = vcmask (!%p83_p2), 252929   ;;  %vm321_vm6 = vcmask (!%p83_p2), 244736   ;;  %vm277_vm7 = vcmask (!%p83_p2), 1046528  }
   0x7   : > { %s577_s15 = smov (!%p83_p2), 126   ;;  %vm485_vm8 = vcmask (!%p83_p2), 1045504   ;;  %p551_p4 = scmp.ne.s32.totalorder (!%p83_p2), %s595_s7, 0 }
   0xd   : > { %s98_s8 = scalar_select %p97_p3, %s595_s7, 3 }
   0xf   : > { %s554_s9 = sshll.u32 %s98_s8, 5 }
  0x10   : > { %s101_s12 = scalar_lea.vmem %s723_s0, %s554_s9 }
  0x11   : > { %v102_v0 = vld [vmem:[%s101_s12] sm:$0xff]  ;;  %v103_v1 = vld [vmem:[%s101_s12 + $0x8] sm:$0xff]  ;;  %v104_v2 = vld [vmem:[%s101_s12 + $0x10] sm:$0xff] }
  0x12   : > { %110 = vrot.lane.b32.xlu0 %v102_v0, %s575_s13  ;;  %v127_v3 = vrot.slane %v102_v0, 7  ;;  %v128_v4 = vrot.slane %v103_v1, 7  ;;  %114 = vrot.lane.b32.xlu1 %v104_v2, %s575_s13  ;;  %v130_v5 = vrot.slane %v104_v2, 7  ;;  %v105_v6 = vld [vmem:[%s101_s12 + $0x18] sm:$0xff] }
  0x13   : > { %v132_v12 = vrot.slane %v105_v6, 7 }
  0x14   : > { %v129_v7 = vsel %vm126_vm0, %v127_v3, %v128_v4  ;;  %v607_v8 = vsub.f32 %v102_v0, %v127_v3  ;;  %v131_v10 = vsel %vm126_vm0, %v128_v4, %v130_v5 }
  0x15   : > { %v610_v9 = vsub.f32 %v103_v1, %v129_v7  ;;  %v614_v11 = vsub.f32 %v104_v2, %v131_v10  ;;  %v133_v13 = vsel %vm126_vm0, %v130_v5, %v132_v12 }
  0x16   : > { %112 = vrot.lane.b32.xlu0 %v103_v1, %s575_s13  ;;  %116 = vrot.lane.b32.xlu1 %v105_v6, %s575_s13  ;;  %v625_v17 = vsub.f32 %v105_v6, %v133_v13 }
  0x17   : > { %v198_v7 = vrot.slane %v610_v9, 7  ;;  %v256_v12 = vand.u32 2147483647, %v610_v9 }
  0x1a   : > { %181 = vrot.lane.b32.xlu0 %v607_v8, %s575_s13  ;;  %183 = vrot.lane.b32.xlu1 %v610_v9, %s575_s13 }
  0x1e   : > { %185 = vrot.lane.b32.xlu0 %v614_v11, %s575_s13 }
  0x84   : > { %v111_v14 = vpop.permute.xlu0 %110  ;;  %v115_v16 = vpop.permute.xlu1 %114 }
  0x85   : > { %v623_v15 = vsub.f32 %v102_v0, %v111_v14  ;;  %v124_v20 = vsub.f32 %v104_v2, %v115_v16  ;;  %v255_v14 = vand.u32 2147483647, %v607_v8 }
  0x87   : > { %146 = vrot.lane.b32.xlu0 %v623_v15, %s575_s13  ;;  %v212_v22 = vand.u32 2147483647, %v623_v15  ;;  %v214_v25 = vand.u32 2147483647, %v124_v20  ;;  %v162_v26 = vrot.slane %v623_v15, 7  ;;  %v165_v31 = vrot.slane %v124_v20, 7 }
  0x88   : > { %v113_v18 = vpop.permute.xlu0 %112  ;;  %v117_v21 = vpop.permute.xlu1 %116 }
  0x89   : > { %v123_v19 = vsub.f32 %v103_v1, %v113_v18  ;;  %v125_v23 = vsub.f32 %v105_v6, %v117_v21  ;;  %v173_v34 = vsub.f32 %v623_v15, %v162_v26  ;;  %v197_v6 = vrot.slane %v607_v8, 7 }
  0x8a   : > { %v258_v21 = vand.u32 2147483647, %v625_v17 }
  0x8b   : > { %187 = vrot.lane.b32.xlu0 %v625_v17, %s575_s13  ;;  %148 = vrot.lane.b32.xlu1 %v123_v19, %s575_s13  ;;  %v163_v24 = vrot.slane %v123_v19, 7  ;;  %v167_v28 = vrot.slane %v125_v23, 7  ;;  %v215_v29 = vand.u32 2147483647, %v125_v23  ;;  %v213_v32 = vand.u32 2147483647, %v123_v19 }
  0x8c   : > { %v182_v30 = vpop.permute.xlu0 %181  ;;  %v184_v37 = vpop.permute.xlu1 %183  ;;  %v345_v39 = vand.u32 2147483647, %v173_v34  ;;  %v199_v18 = vsel %vm126_vm0, %v197_v6, %v198_v7 }
  0x8d   : > { %v164_v27 = vsel %vm126_vm0, %v162_v26, %v163_v24  ;;  %v168_v35 = vsel %vm126_vm0, %v165_v31, %v167_v28  ;;  %v193_v36 = vsub.f32 %v607_v8, %v182_v30  ;;  %v166_v41 = vsel %vm126_vm0, %v163_v24, %v165_v31 }
  0x8e   : > { %v174_v33 = vsub.f32 %v123_v19, %v164_v27  ;;  %v176_v40 = vsub.f32 %v125_v23, %v168_v35  ;;  %v194_v43 = vsub.f32 %v610_v9, %v184_v37  ;;  %v175_v46 = vsub.f32 %v124_v20, %v166_v41 }
  0x8f   : > { %220 = vrot.lane.b32.xlu0 %v212_v22, %s576_s14  ;;  %150 = vrot.lane.b32.xlu1 %v124_v20, %s575_s13  ;;  %v405_v42 = vand.u32 2147483647, %v193_v36  ;;  %v208_v22 = vsub.f32 %v607_v8, %v197_v6  ;;  %v257_v24 = vand.u32 2147483647, %v614_v11  ;;  %v270_v28 = vsel %vm263_vm2, %v258_v21, 0.0 }
  0x90   : > { %v346_v38 = vand.u32 2147483647, %v174_v33  ;;  %v186_v44 = vpop.permute.xlu0 %185  ;;  %v348_v45 = vand.u32 2147483647, %v176_v40  ;;  %v406_v48 = vand.u32 2147483647, %v194_v43 }
  0x91   : > { %v195_v47 = vsub.f32 %v614_v11, %v186_v44  ;;  %v347_v49 = vand.u32 2147483647, %v175_v46  ;;  %v267_v31 = vsel %vm263_vm2, %v257_v24, 0.0 }
  0x93   : > { %224 = vrot.lane.b32.xlu0 %v214_v25, %s576_s14  ;;  %152 = vrot.lane.b32.xlu1 %v125_v23, %s575_s13  ;;  %v407_v50 = vand.u32 2147483647, %v195_v47  ;;  %v209_v25 = vsub.f32 %v610_v9, %v199_v18  ;;  %v202_v47 = vrot.slane %v625_v17, 7 }
  0x97   : > { %226 = vrot.lane.b32.xlu0 %v215_v29, %s576_s14  ;;  %222 = vrot.lane.b32.xlu1 %v213_v32, %s576_s14  ;;  %v464_v29 = vand.u32 2147483647, %v208_v22  ;;  %v465_v32 = vand.u32 2147483647, %v209_v25 }
  0x99   : > { %v469_v33 = vsel %vm468_vm4, %v464_v29, 0.0  ;;  %v472_v9 = vsel %vm263_vm2, %v465_v32, 0.0 }
  0x9b   : > { %355 = vrot.lane.b32.xlu0 %v346_v38, %s576_s14  ;;  %353 = vrot.lane.b32.xlu1 %v345_v39, %s576_s14 }
  0x9f   : > { %359 = vrot.lane.b32.xlu0 %v348_v45, %s576_s14  ;;  %413 = vrot.lane.b32.xlu1 %v405_v42, %s576_s14 }
  0xa3   : > { %357 = vrot.lane.b32.xlu1 %v347_v49, %s576_s14  ;;  %415 = vrot.lane.b32.xlu0 %v406_v48, %s576_s14 }
  0xa7   : > { %417 = vrot.lane.b32.xlu1 %v407_v50, %s576_s14 }
  0xf9   : > { %v147_v51 = vpop.permute.xlu0 %146 }
  0xfa   : > { %v158_v56 = vsub.f32 %v623_v15, %v147_v51  ;;  %v200_v15 = vrot.slane %v614_v11, 7 }
  0xfc   : > { %v301_v61 = vand.u32 2147483647, %v158_v56  ;;  %v201_v26 = vsel %vm126_vm0, %v198_v7, %v200_v15  ;;  %v203_v48 = vsel %vm126_vm0, %v200_v15, %v202_v47 }
  0xfd   : > { %v188_v52 = vpop.permute.xlu0 %187  ;;  %v149_v53 = vpop.permute.xlu1 %148  ;;  %v210_v30 = vsub.f32 %v614_v11, %v201_v26  ;;  %v211_v49 = vsub.f32 %v625_v17, %v203_v48 }
  0xfe   : > { %v196_v54 = vsub.f32 %v625_v17, %v188_v52  ;;  %v159_v55 = vsub.f32 %v123_v19, %v149_v53 }
  0xff   : > { %v466_v34 = vand.u32 2147483647, %v210_v30  ;;  %v467_v53 = vand.u32 2147483647, %v211_v49 }
 0x100   : > { %v408_v57 = vand.u32 2147483647, %v196_v54  ;;  %v302_v58 = vand.u32 2147483647, %v159_v55 }
 0x101   : > { %v151_v59 = vpop.permute.xlu1 %150  ;;  %v221_v2 = vpop.permute.xlu0 %220  ;;  %v475_v35 = vsel %vm263_vm2, %v466_v34, 0.0 }
 0x102   : > { %v160_v60 = vsub.f32 %v124_v20, %v151_v59  ;;  %419 = vrot.lane.b32.xlu0 %v408_v57, %s576_s14  ;;  %311 = vrot.lane.b32.xlu1 %v302_v58, %s577_s15  ;;  %v233_v3 = vsel %vm232_vm1, %v221_v2, 0.0  ;;  %v264_v20 = vsel %vm263_vm2, %v256_v12, 0.0  ;;  %v478_v58 = vsel %vm263_vm2, %v467_v53, 0.0 }
 0x104   : > { %v303_v62 = vand.u32 2147483647, %v160_v60 }
 0x105   : > { %v153_v63 = vpop.permute.xlu1 %152  ;;  %v225_v4 = vpop.permute.xlu0 %224 }
 0x106   : > { %v161_v0 = vsub.f32 %v125_v23, %v153_v63  ;;  %309 = vrot.lane.b32.xlu0 %v301_v61, %s577_s15  ;;  %313 = vrot.lane.b32.xlu1 %v303_v62, %s577_s15  ;;  %v239_v5 = vsel %vm232_vm1, %v225_v4, 0.0  ;;  %v260_v23 = vsel %vm259_vm3, %v255_v14, 0.0 }
 0x108   : > { %v304_v1 = vand.u32 2147483647, %v161_v0 }
 0x109   : > { %v223_v10 = vpop.permute.xlu1 %222  ;;  %v227_v13 = vpop.permute.xlu0 %226 }
 0x10a   : > { %315 = vrot.lane.b32.xlu1 %v304_v1, %s577_s15  ;;  %v242_v16 = vsel %vm232_vm1, %v227_v13, 0.0  ;;  %v236_v19 = vsel %vm232_vm1, %v223_v10, 0.0 }
 0x10d   : > { %v354_v27 = vpop.permute.xlu1 %353  ;;  %v356_v38 = vpop.permute.xlu0 %355 }
 0x10e   : > { %v366_v11 = vsel %vm365_vm5, %v354_v27, 0.0  ;;  %v369_v40 = vsel %vm232_vm1, %v356_v38, 0.0 }
 0x111   : > { %v414_v8 = vpop.permute.xlu1 %413  ;;  %v360_v41 = vpop.permute.xlu0 %359 }
 0x112   : > { %v425_v36 = vsel %vm365_vm5, %v414_v8, 0.0  ;;  %v375_v45 = vsel %vm232_vm1, %v360_v41, 0.0 }
 0x115   : > { %v358_v37 = vpop.permute.xlu1 %357  ;;  %v416_v44 = vpop.permute.xlu0 %415 }
 0x116   : > { %v372_v43 = vsel %vm232_vm1, %v358_v37, 0.0  ;;  %v428_v46 = vsel %vm232_vm1, %v416_v44, 0.0 }
 0x119   : > { %v418_v39 = vpop.permute.xlu1 %417 }
 0x11a   : > { %v431_v42 = vsel %vm232_vm1, %v418_v39, 0.0 }
 0x125   : > { %234 = vadd.xlane.f32.xlu0 %v233_v3 }
 0x129   : > { %240 = vadd.xlane.f32.xlu0 %v239_v5 }
 0x12d   : > { %243 = vadd.xlane.f32.xlu0 %v242_v16 }
 0x12e   : > { %237 = vadd.xlane.f32.xlu1 %v236_v19 }
 0x131   : > { %265 = vadd.xlane.f32.xlu0 %v264_v20 }
 0x132   : > { %261 = vadd.xlane.f32.xlu1 %v260_v23 }
 0x135   : > { %271 = vadd.xlane.f32.xlu0 %v270_v28 }
 0x136   : > { %268 = vadd.xlane.f32.xlu1 %v267_v31 }
 0x139   : > { %470 = vadd.xlane.f32.xlu0 %v469_v33 }
 0x13a   : > { %473 = vadd.xlane.f32.xlu1 %v472_v9 }
 0x13d   : > { %476 = vadd.xlane.f32.xlu0 %v475_v35 }
 0x13e   : > { %426 = vadd.xlane.f32.xlu1 %v425_v36 }
 0x141   : > { %367 = vadd.xlane.f32.xlu0 %v366_v11 }
 0x142   : > { %370 = vadd.xlane.f32.xlu1 %v369_v40 }
 0x145   : > { %373 = vadd.xlane.f32.xlu0 %v372_v43 }
 0x146   : > { %432 = vadd.xlane.f32.xlu1 %v431_v42 }
 0x149   : > { %376 = vadd.xlane.f32.xlu0 %v375_v45 }
 0x14d   : > { %429 = vadd.xlane.f32.xlu0 %v428_v46 }
 0x174   : > { %v420_v50 = vpop.permute.xlu0 %419  ;;  %v312_v51 = vpop.permute.xlu1 %311 }
 0x175   : > { %v434_v52 = vsel %vm232_vm1, %v420_v50, 0.0  ;;  %v325_v59 = vsel %vm321_vm6, %v312_v51, 0.0 }
 0x176   : > { %435 = vadd.xlane.f32.xlu1 %v434_v52 }
 0x178   : > { %v310_v54 = vpop.permute.xlu0 %309  ;;  %v314_v55 = vpop.permute.xlu1 %313 }
 0x179   : > { %v328_v56 = vsel %vm321_vm6, %v314_v55, 0.0  ;;  %v322_v57 = vsel %vm321_vm6, %v310_v54, 0.0 }
 0x17a   : > { %329 = vadd.xlane.f32.xlu0 %v328_v56  ;;  %323 = vadd.xlane.f32.xlu1 %v322_v57 }
 0x17c   : > { %v316_v60 = vpop.permute.xlu1 %315 }
 0x17d   : > { %v331_v17 = vsel %vm321_vm6, %v316_v60, 0.0 }
 0x17e   : > { %479 = vadd.xlane.f32.xlu0 %v478_v58  ;;  %326 = vadd.xlane.f32.xlu1 %v325_v59 }
 0x182   : > { %332 = vadd.xlane.f32.xlu1 %v331_v17 }
 0x1b2   : > { %v235_v61 = vpop.xlane.xlu0 %234 }
 0x1b6   : > { %v241_v62 = vpop.xlane.xlu0 %240 }
 0x1ba   : > { %v244_v63 = vpop.xlane.xlu0 %243 }
 0x1bb   : > { %v238_v1 = vpop.xlane.xlu1 %237 }
 0x1bc   : > { %v245_v26 = vadd.f32 %v238_v1, %v235_v61 }
 0x1be   : > { %v266_v0 = vpop.xlane.xlu0 %265  ;;  %v246_v34 = vadd.f32 %v245_v26, %v241_v62 }
 0x1bf   : > { %v262_v3 = vpop.xlane.xlu1 %261  ;;  %v279_v12 = vrot.slane %v266_v0, 1 }
 0x1c0   : > { %v278_v13 = vrot.slane %v262_v3, 1  ;;  %v247_v40 = vadd.f32 %v246_v34, %v244_v63 }
 0x1c2   : > { %v272_v2 = vpop.xlane.xlu0 %271  ;;  %v280_v18 = vsel %vm277_vm7, %v278_v13, %v279_v12  ;;  %v248_v47 = vrot.slane %v247_v40, 4 }
 0x1c3   : > { %v269_v5 = vpop.xlane.xlu1 %268  ;;  %v283_v19 = vrot.slane %v272_v2, 1 }
 0x1c4   : > { %v281_v14 = vrot.slane %v269_v5, 1  ;;  %v249_v59 = vadd.f32 %v248_v47, %v247_v40 }
 0x1c5   : > { %v291_v31 = vsel %vm277_vm7, %v283_v19, 0.0 }
 0x1c6   : > { %v688_v4 = vpop.xlane.xlu0 %470  ;;  %v282_v20 = vsel %vm277_vm7, %v279_v12, %v281_v14  ;;  %v284_v22 = vsel %vm277_vm7, %v281_v14, %v283_v19 }
 0x1c7   : > { %v474_v7 = vpop.xlane.xlu1 %473  ;;  %v289_v21 = vadd.f32 %v282_v20, %v280_v18  ;;  %v486_v52 = vrot.slane %v688_v4, 2  ;;  %v250_v4 = vrot.slane %v249_v59, 2 }
 0x1c8   : > { %v487_v53 = vrot.slane %v474_v7, 2 }
 0x1c9   : > { %v290_v27 = vadd.f32 %v289_v21, %v284_v22  ;;  %v251_v20 = vadd.f32 %v250_v4, %v249_v59 }
 0x1ca   : > { %v690_v6 = vpop.xlane.xlu0 %476  ;;  %v488_v63 = vsel %vm485_vm8, %v486_v52, %v487_v53 }
 0x1cb   : > { %v427_v15 = vpop.xlane.xlu1 %426  ;;  %v292_v9 = vadd.f32 %v291_v31, %v290_v27  ;;  %v489_v54 = vrot.slane %v690_v6, 2 }
 0x1cc   : > { %v441_v37 = vrot.slane %v427_v15, 1 }
 0x1cd   : > { %v293_v42 = vrot.slane %v292_v9, 4  ;;  %v490_v0 = vsel %vm485_vm8, %v487_v53, %v489_v54 }
 0x1ce   : > { %v368_v10 = vpop.xlane.xlu0 %367  ;;  %v497_v12 = vadd.f32 %v490_v0, %v488_v63 }
 0x1cf   : > { %v371_v23 = vpop.xlane.xlu1 %370  ;;  %v382_v28 = vrot.slane %v368_v10, 1  ;;  %v294_v50 = vadd.f32 %v293_v42, %v292_v9 }
 0x1d0   : > { %v383_v29 = vrot.slane %v371_v23, 1 }
 0x1d1   : > { %v295_v61 = vrot.slane %v294_v50, 2 }
 0x1d2   : > { %v374_v16 = vpop.xlane.xlu0 %373  ;;  %v384_v35 = vsel %vm277_vm7, %v382_v28, %v383_v29  ;;  %v252_v28 = vrot.slane %v251_v20, 1 }
 0x1d3   : > { %v385_v25 = vrot.slane %v374_v16, 1  ;;  %v433_v33 = vpop.xlane.xlu1 %432  ;;  %v296_v10 = vadd.f32 %v295_v61, %v294_v50 }
 0x1d4   : > { %v444_v39 = vrot.slane %v433_v33, 1  ;;  %v253_v9 = vadd.f32 %v252_v28, %v251_v20 }
 0x1d5   : > { %v386_v32 = vsel %vm277_vm7, %v383_v29, %v385_v25 }
 0x1d6   : > { %v377_v24 = vpop.xlane.xlu0 %376  ;;  %v393_v38 = vadd.f32 %v386_v32, %v384_v35  ;;  %v254_v40 = vmul.f32 0.00025201612, %v253_v9 }
 0x1d7   : > { %v387_v30 = vrot.slane %v377_v24, 1  ;;  %v297_v24 = vrot.slane %v296_v10, 1 }
 0x1d9   : > { %v388_v36 = vsel %vm277_vm7, %v385_v25, %v387_v30  ;;  %v395_v45 = vsel %vm277_vm7, %v387_v30, 0.0 }
 0x1da   : > { %v430_v8 = vpop.xlane.xlu0 %429  ;;  %v394_v41 = vadd.f32 %v393_v38, %v388_v36 }
 0x1db   : > { %v442_v11 = vrot.slane %v430_v8, 1  ;;  %v298_v8 = vadd.f32 %v297_v24, %v296_v10 }
 0x1dc   : > { %v396_v48 = vadd.f32 %v395_v45, %v394_v41 }
 0x1dd   : > { %v443_v43 = vsel %vm277_vm7, %v441_v37, %v442_v11  ;;  %v445_v44 = vsel %vm277_vm7, %v442_v11, %v444_v39  ;;  %v299_v11 = vmul.f32 0.00025201612, %v298_v8 }
 0x1de   : > { %v452_v51 = vadd.f32 %v445_v44, %v443_v43  ;;  %v397_v60 = vrot.slane %v396_v48, 4 }
 0x1df   : > { %v300_v45 = vadd.f32 %v299_v11, %v254_v40 }
 0x1e0   : > { %v398_v5 = vadd.f32 %v397_v60, %v396_v48 }
 0x1e2   : > { %v399_v21 = vrot.slane %v398_v5, 2 }
 0x1e4   : > { %v400_v29 = vadd.f32 %v399_v21, %v398_v5 }
 0x1e6   : > { %v401_v35 = vrot.slane %v400_v29, 1 }
 0x1e8   : > { %v402_v41 = vadd.f32 %v401_v35, %v400_v29 }
 0x1ea   : > { %v403_v47 = vmul.f32 0.0002601457, %v402_v41 }
 0x203   : > { %v436_v46 = vpop.xlane.xlu1 %435 }
 0x204   : > { %v446_v49 = vrot.slane %v436_v46, 1 }
 0x206   : > { %v447_v55 = vsel %vm277_vm7, %v444_v39, %v446_v49  ;;  %v454_v17 = vsel %vm277_vm7, %v446_v49, 0.0 }
 0x207   : > { %v453_v56 = vadd.f32 %v452_v51, %v447_v55  ;;  %v330_v57 = vpop.xlane.xlu0 %329  ;;  %v324_v58 = vpop.xlane.xlu1 %323  ;;  %v578_v55 = vmov (!%p551_p4), 0.0  }
 0x208   : > { %513 = vst [vmem:[%s724_s1] sm:$0xff] (!%p551_p4), %v578_v55 }
 0x209   : > { %v455_v62 = vadd.f32 %v454_v17, %v453_v56 }
 0x20b   : > { %v456_v1 = vrot.slane %v455_v62, 4  ;;  %v480_v2 = vpop.xlane.xlu0 %479  ;;  %v327_v3 = vpop.xlane.xlu1 %326 }
 0x20c   : > { %v491_v6 = vrot.slane %v480_v2, 2  ;;  %v334_v7 = vadd.f32 %v327_v3, %v324_v58 }
 0x20d   : > { %v457_v13 = vadd.f32 %v456_v1, %v455_v62 }
 0x20e   : > { %v492_v14 = vsel %vm485_vm8, %v489_v54, %v491_v6  ;;  %v499_v15 = vsel %vm485_vm8, %v491_v6, 0.0  ;;  %v335_v16 = vadd.f32 %v334_v7, %v330_v57 }
 0x20f   : > { %v498_v18 = vadd.f32 %v497_v12, %v492_v14  ;;  %v333_v19 = vpop.xlane.xlu1 %332  ;;  %v458_v25 = vrot.slane %v457_v13, 2 }
 0x210   : > { %v336_v22 = vadd.f32 %v335_v16, %v333_v19 }
 0x211   : > { %v500_v23 = vadd.f32 %v499_v15, %v498_v18  ;;  %v459_v32 = vadd.f32 %v458_v25, %v457_v13 }
 0x212   : > { %v337_v26 = vrot.slane %v336_v22, 4 }
 0x213   : > { %v501_v27 = vrot.slane %v500_v23, 4  ;;  %v460_v38 = vrot.slane %v459_v32, 1 }
 0x214   : > { %v338_v30 = vadd.f32 %v337_v26, %v336_v22 }
 0x215   : > { %v502_v31 = vadd.f32 %v501_v27, %v500_v23  ;;  %v461_v44 = vadd.f32 %v460_v38, %v459_v32 }
 0x216   : > { %v339_v33 = vrot.slane %v338_v30, 2 }
 0x217   : > { %v503_v34 = vrot.slane %v502_v31, 2  ;;  %v462_v50 = vmul.f32 0.0002601457, %v461_v44 }
 0x218   : > { %v340_v36 = vadd.f32 %v339_v33, %v338_v30 }
 0x219   : > { %v504_v37 = vadd.f32 %v503_v34, %v502_v31 }
 0x21a   : > { %v341_v39 = vrot.slane %v340_v36, 1 }
 0x21b   : > { %v505_v42 = vrot.slane %v504_v37, 1 }
 0x21c   : > { %v342_v43 = vadd.f32 %v341_v39, %v340_v36 }
 0x21d   : > { %v506_v48 = vadd.f32 %v505_v42, %v504_v37 }
 0x21e   : > { %v343_v46 = vmul.f32 0.00026041668, %v342_v43 }
 0x21f   : > { %v507_v52 = vmul.f32 0.00026041668, %v506_v48 }
 0x220   : > { %v344_v49 = vadd.f32 %v343_v46, %v300_v45  ;;  %512 = sbr.rel (%p551_p4) target bundleno = 551 (0x227), region = 28 }
 0x222   : > { %v404_v51 = vadd.f32 %v403_v47, %v344_v49 }
 0x224   : > { %v463_v53 = vadd.f32 %v462_v50, %v404_v51 }
 0x226   : > { %v508_v54 = vadd.f32 %v507_v52, %v463_v53 }
 0x227 PF: > { %v514_v56 = vld [vmem:[%s724_s1] sm:$0xff] }
 0x228   : > { %v515_v57 = vadd.f32 %v514_v56, %v508_v54 }
 0x22a   : > { %516 = vst [vmem:[%s724_s1] sm:$0xff] %v515_v57 }
 0x22b PF: > { %s11_s6 = sadd.s32 1, %s573_s6  }
 0x22c   : > { %p8_p5 = scmp.ge.s32.totalorder %s11_s6, 6  }
 0x22e   :  { %10 = sbr.rel (!%p8_p5) target bundleno = 1 (0x1), region = 54 }

// kernel: baseline_forward.28
= control target key start
LH: loop header
LB: loop body
LE: loop exit
PB: predicated region body
PF: predicated region fallthrough
CT: control target
= control target key end

     0   :  { %vm389_vm4 = vcmask 261120   ;;  %s788_s0 = inlined_call_operand.vmem [shape: f32[64,32], index: 0, kind: input, shape index: {}]   ;;  %s789_s1 = inlined_call_operand.vmem [shape: f32[64,32], index: 1, kind: input, shape index: {}]   ;;  %s790_s2 = inlined_call_operand.vmem [shape: f32[64,32], index: 2, kind: input, shape index: {}]   ;;  %s791_s3 = inlined_call_operand.vmem [shape: f32[64,32], index: 3, kind: input, shape index: {}]   ;;  %s792_s4 = inlined_call_operand.vmem [shape: f32[64,32], index: 4, kind: input, shape index: {}]   ;;  %s793_s5 = inlined_call_operand.vmem [shape: f32[64,32], index: 5, kind: input, shape index: {}]   ;;  %s794_s6 = inlined_call_operand.vmem [shape: f32[64,32], index: 6, kind: input, shape index: {}]   ;;  %s795_s7 = inlined_call_operand.vmem [shape: f32[8,128], index: 7, kind: output, shape index: {}]  }
   0x1   :  { %v26_v0 = vld [vmem:[%s788_s0] sm:$0xff]  ;;  %v28_v12 = vld [vmem:[%s788_s0 + $0x10] sm:$0xff]  ;;  %v43_v33 = vld [vmem:[%s790_s2 + $0x8] sm:$0xff] }
   0x2   :  { %v34_v1 = vld [vmem:[%s789_s1] sm:$0xff]  ;;  %v36_v13 = vld [vmem:[%s789_s1 + $0x10] sm:$0xff]  ;;  %v51_v40 = vld [vmem:[%s791_s3 + $0x8] sm:$0xff]  ;;  %v67_v42 = vmul.f32 %v43_v33, %v43_v33 }
   0x3   :  { %v42_v2 = vld [vmem:[%s790_s2] sm:$0xff]  ;;  %v130_v7 = vsub.f32 %v26_v0, %v34_v1  ;;  %v44_v16 = vld [vmem:[%s790_s2 + $0x10] sm:$0xff]  ;;  %v132_v27 = vsub.f32 %v28_v12, %v36_v13  ;;  %v59_v41 = vld [vmem:[%s792_s4 + $0x8] sm:$0xff]  ;;  %v91_v54 = vmul.f32 %v51_v40, %v51_v40  ;;  %v115_v62 = vmul.f32 %v51_v40, %v43_v33 }
   0x4   :  { %v50_v3 = vld [vmem:[%s791_s3] sm:$0xff]  ;;  %v66_v5 = vmul.f32 %v42_v2, %v42_v2  ;;  %v210_v11 = vmul.f32 2.0, %v42_v2  ;;  %v52_v17 = vld [vmem:[%s791_s3 + $0x10] sm:$0xff]  ;;  %v68_v22 = vmul.f32 %v44_v16, %v44_v16  ;;  %v212_v45 = vmul.f32 2.0, %v44_v16  ;;  %v83_v49 = vld [vmem:[%s793_s5 + $0x8] sm:$0xff] }
   0x5   :  { %v58_v4 = vld [vmem:[%s792_s4] sm:$0xff]  ;;  %v90_v8 = vmul.f32 %v50_v3, %v50_v3  ;;  %v114_v10 = vmul.f32 %v50_v3, %v42_v2  ;;  %v138_v15 = vmul.f32 %v130_v7, %v130_v7  ;;  %v60_v18 = vld [vmem:[%s792_s4 + $0x10] sm:$0xff]  ;;  %v92_v25 = vmul.f32 %v52_v17, %v52_v17  ;;  %v27_v51 = vld [vmem:[%s788_s0 + $0x8] sm:$0xff] }
   0x6   :  { %v82_v6 = vld [vmem:[%s793_s5] sm:$0xff]  ;;  %v74_v14 = vsub.f32 %v58_v4, %v66_v5  ;;  %v84_v24 = vld [vmem:[%s793_s5 + $0x10] sm:$0xff]  ;;  %v116_v26 = vmul.f32 %v52_v17, %v44_v16  ;;  %v218_v28 = vmul.f32 %v210_v11, %v50_v3  ;;  %v76_v31 = vsub.f32 %v60_v18, %v68_v22  ;;  %v35_v52 = vld [vmem:[%s789_s1 + $0x8] sm:$0xff] }
   0x7   :  { %v106_v9 = vld [vmem:[%s794_s6] sm:$0xff]  ;;  %v98_v19 = vsub.f32 %v82_v6, %v90_v8  ;;  %v258_v21 = vadd.f32 %v90_v8, %v66_v5  ;;  %v549_v23 = vadd.f32 1e-06, %v138_v15  ;;  %v108_v32 = vld [vmem:[%s794_s6 + $0x10] sm:$0xff]  ;;  %v100_v36 = vsub.f32 %v84_v24, %v92_v25  ;;  %v107_v57 = vld [vmem:[%s794_s6 + $0x8] sm:$0xff] }
   0x8   :  { %v122_v20 = vsub.f32 %v106_v9, %v114_v10  ;;  %v124_v37 = vsub.f32 %v108_v32, %v116_v26  ;;  %v140_v38 = vmul.f32 %v132_v27, %v132_v27  ;;  %v260_v39 = vadd.f32 %v92_v25, %v68_v22  ;;  %v45_v58 = vld [vmem:[%s790_s2 + $0x18] sm:$0xff] }
   0x9   :  { %v266_v29 = vadd.f32 0.0001, %v258_v21  ;;  %v274_v30 = vadd.f32 %v98_v19, %v74_v14  ;;  %441 = vrsqrt.f32 %v549_v23  ;;  %v226_v43 = vadd.f32 0.0001, %v218_v28  ;;  %v589_v2 = vld [vmem:[%s791_s3 + $0x18] sm:$0xff] }
   0xa   :  { %v234_v34 = vmul.f32 2.0, %v122_v20  ;;  %v276_v46 = vadd.f32 %v100_v36, %v76_v31  ;;  %v567_v47 = vadd.f32 1e-06, %v140_v38  ;;  %v268_v48 = vadd.f32 0.0001, %v260_v39  ;;  %v29_v5 = vld [vmem:[%s788_s0 + $0x18] sm:$0xff] }
   0xb   :  { %v282_v35 = vadd.f32 0.0009, %v274_v30  ;;  %v75_v53 = vsub.f32 %v59_v41, %v67_v42  ;;  %v236_v56 = vmul.f32 2.0, %v124_v37  ;;  %v220_v59 = vmul.f32 %v212_v45, %v52_v17  ;;  %v37_v6 = vld [vmem:[%s789_s1 + $0x18] sm:$0xff] }
   0xc   :  { %v284_v50 = vadd.f32 0.0009, %v276_v46  ;;  %v242_v55 = vadd.f32 0.0009, %v234_v34  ;;  %v99_v61 = vsub.f32 %v83_v49, %v91_v54  ;;  %vm156_vm0 = vcmp.eq.f32.partialorder %v549_v23, inf  ;;  %v61_v13 = vld [vmem:[%s792_s4 + $0x18] sm:$0xff] }
   0xd   :  { %v290_v44 = vmul.f32 %v282_v35, %v266_v29  ;;  %v131_v63 = vsub.f32 %v27_v51, %v35_v52  ;;  %v211_v0 = vmul.f32 2.0, %v43_v33  ;;  %v259_v1 = vadd.f32 %v91_v54, %v67_v42  ;;  %v85_v14 = vld [vmem:[%s793_s5 + $0x18] sm:$0xff]  ;;  %v46_v51 = vld [vmem:[%s790_s2 + $0x20] sm:$0xff] }
   0xe   :  { %v292_v60 = vmul.f32 %v284_v50, %v268_v48  ;;  %v123_v3 = vsub.f32 %v107_v57, %v115_v62  ;;  %v275_v4 = vadd.f32 %v99_v61, %v75_v53  ;;  %v69_v7 = vmul.f32 %v45_v58, %v45_v58  ;;  %v109_v28 = vld [vmem:[%s794_s6 + $0x18] sm:$0xff] }
   0xf   :  { %443 = vrcp.f32 %v290_v44  ;;  %v250_v9 = vmul.f32 %v242_v55, %v226_v43  ;;  %v244_v10 = vadd.f32 0.0009, %v236_v56  ;;  %v139_v11 = vmul.f32 %v131_v63, %v131_v63  ;;  %v30_v55 = vld [vmem:[%s788_s0 + $0x20] sm:$0xff] }
  0x10   :  { %445 = vrsqrt.f32 %v567_v47  ;;  %v267_v12 = vadd.f32 0.0001, %v259_v1  ;;  %v228_v16 = vadd.f32 0.0001, %v220_v59  ;;  %v283_v17 = vadd.f32 0.0009, %v275_v4 }
  0x11   :  { %447 = vrcp.f32 %v292_v60  ;;  %v93_v18 = vmul.f32 %v589_v2, %v589_v2  ;;  %v606_v19 = vadd.f32 1e-06, %v139_v11  ;;  %v219_v20 = vmul.f32 %v211_v0, %v51_v40  ;;  %v54_v56 = vld [vmem:[%s791_s3 + $0x20] sm:$0xff] }
  0x12   :  { %v117_v21 = vmul.f32 %v589_v2, %v45_v58  ;;  %v133_v22 = vsub.f32 %v29_v5, %v37_v6  ;;  %v235_v24 = vmul.f32 2.0, %v123_v3  ;;  %v291_v25 = vmul.f32 %v283_v17, %v267_v12  ;;  %v110_v0 = vld [vmem:[%s794_s6 + $0x20] sm:$0xff] }
  0x13   :  { %v442_v8 = vpop.eup %441  ;;  %v77_v26 = vsub.f32 %v61_v13, %v69_v7  ;;  %v101_v27 = vsub.f32 %v85_v14, %v93_v18  ;;  %vm158_vm1 = vcmp.eq.f32.partialorder %v549_v23, 0.0  ;;  %v159_v29 = vand.u32 2147483648, %v549_v23 }
  0x14   :  { %v155_v15 = vmul.f32 %v442_v8, %v549_v23  ;;  %449 = vrsqrt.f32 %v606_v19  ;;  %vm170_vm2 = vcmp.eq.f32.partialorder %v567_v47, inf  ;;  %v252_v32 = vmul.f32 %v244_v10, %v228_v16  ;;  %v86_v10 = vld [vmem:[%s793_s5 + $0x20] sm:$0xff] }
  0x15   :  { %451 = vrcp.f32 %v291_v25  ;;  %vm172_vm3 = vcmp.eq.f32.partialorder %v567_v47, 0.0  ;;  %v125_v35 = vsub.f32 %v109_v28, %v117_v21  ;;  %v141_v36 = vmul.f32 %v133_v22, %v133_v22 }
  0x16   :  { %v157_v31 = vsel %vm156_vm0, %v549_v23, %v155_v15  ;;  %v261_v37 = vadd.f32 %v93_v18, %v69_v7  ;;  %v227_v38 = vadd.f32 0.0001, %v219_v20  ;;  %v243_v39 = vadd.f32 0.0009, %v235_v24  ;;  %v38_v23 = vld [vmem:[%s789_s1 + $0x20] sm:$0xff] }
  0x17   :  { %v213_v40 = vmul.f32 2.0, %v45_v58  ;;  %v277_v41 = vadd.f32 %v101_v27, %v77_v26  ;;  %v173_v43 = vand.u32 2147483648, %v567_v47  ;;  %v621_v44 = vadd.f32 1e-06, %v141_v36 }
  0x18   :  { %v269_v45 = vadd.f32 0.0001, %v261_v37  ;;  %v160_v48 = vsel %vm158_vm1, %v159_v29, %v157_v31  ;;  %vm163_vm5 = vcmp.eq.f32.partialorder %v606_v19, inf  ;;  %v237_v54 = vmul.f32 2.0, %v125_v35  ;;  %v47_v29 = vld [vmem:[%s790_s2 + $0x28] sm:$0xff] }
  0x19   :  { %v444_v30 = vpop.eup %443  ;;  %v285_v50 = vadd.f32 0.0009, %v277_v41  ;;  %453 = vrsqrt.f32 %v621_v44  ;;  %vm165_vm6 = vcmp.eq.f32.partialorder %v606_v19, 0.0  ;;  %v166_v57 = vand.u32 2147483648, %v606_v19 }
  0x1a   :  { %v446_v33 = vpop.eup %445  ;;  %v299_v34 = vmul.f32 %v444_v30, %v250_v9  ;;  %v251_v58 = vmul.f32 %v243_v39, %v227_v38  ;;  %v221_v59 = vmul.f32 %v213_v40, %v589_v2  ;;  %v70_v63 = vmul.f32 %v46_v51, %v46_v51  ;;  %v62_v2 = vld [vmem:[%s792_s4 + $0x20] sm:$0xff]  ;;  %v666_v30 = vld [vmem:[%s791_s3 + $0x28] sm:$0xff] }
  0x1b   :  { %v448_v46 = vpop.eup %447  ;;  %v169_v49 = vmul.f32 %v446_v33, %v567_v47  ;;  %v293_v62 = vmul.f32 %v285_v50, %v269_v45  ;;  %v94_v3 = vmul.f32 %v54_v56, %v54_v56  ;;  %v118_v4 = vmul.f32 %v54_v56, %v46_v51  ;;  %v63_v39 = vld [vmem:[%s792_s4 + $0x28] sm:$0xff] }
  0x1c   :  { %v314_v42 = vsub.f32 1.0, %v299_v34  ;;  %v303_v53 = vmul.f32 %v448_v46, %v252_v32  ;;  %v134_v5 = vsub.f32 %v30_v55, %v38_v23  ;;  %v245_v9 = vadd.f32 0.0009, %v237_v54  ;;  %v87_v40 = vld [vmem:[%s793_s5 + $0x28] sm:$0xff] }
  0x1d   :  { %v171_v1 = vsel %vm170_vm2, %v567_v47, %v169_v49  ;;  %455 = vrcp.f32 %v293_v62  ;;  %v229_v13 = vadd.f32 0.0001, %v221_v59  ;;  %v126_v14 = vsub.f32 %v110_v0, %v118_v4  ;;  %v39_v45 = vld [vmem:[%s789_s1 + $0x28] sm:$0xff]  ;;  %v48_v0 = vld [vmem:[%s790_s2 + $0x30] sm:$0xff] }
  0x1e   :  { %v322_v52 = vmul.f32 0.5, %v314_v42  ;;  %v316_v61 = vsub.f32 1.0, %v303_v53  ;;  %v450_v6 = vpop.eup %449  ;;  %v214_v15 = vmul.f32 2.0, %v46_v51  ;;  %v142_v20 = vmul.f32 %v134_v5, %v134_v5 }
  0x1f   :  { %v452_v11 = vpop.eup %451  ;;  %v162_v12 = vmul.f32 %v450_v6, %v606_v19  ;;  %v174_v21 = vsel %vm172_vm3, %v173_v43, %v171_v1  ;;  %v78_v22 = vsub.f32 %v62_v2, %v70_v63  ;;  %v102_v24 = vsub.f32 %v86_v10, %v94_v3  ;;  %v31_v43 = vld [vmem:[%s788_s0 + $0x28] sm:$0xff]  ;;  %v56_v6 = vld [vmem:[%s791_s3 + $0x30] sm:$0xff] }
  0x20   :  { %v330_v60 = vmax.f32 %v322_v52, 0.0  ;;  %v324_v8 = vmul.f32 0.5, %v316_v61  ;;  %v301_v18 = vmul.f32 %v452_v11, %v251_v58  ;;  %v262_v25 = vadd.f32 %v94_v3, %v70_v63  ;;  %v111_v52 = vld [vmem:[%s794_s6 + $0x28] sm:$0xff] }
  0x21   :  { %vm177_vm7 = vcmp.eq.f32.partialorder %v621_v44, inf  ;;  %v164_v47 = vsel %vm163_vm5, %v606_v19, %v162_v12  ;;  %v180_v31 = vand.u32 2147483648, %v621_v44  ;;  %v253_v32 = vmul.f32 %v245_v9, %v229_v13 }
  0x22   :  { %v338_v7 = vmin.f32 %v330_v60, 1.0  ;;  %v332_v17 = vmax.f32 %v324_v8, 0.0  ;;  %v315_v28 = vsub.f32 1.0, %v301_v18  ;;  %v222_v33 = vmul.f32 %v214_v15, %v54_v56 }
  0x23   :  { %v454_v34 = vpop.eup %453  ;;  %vm179_vm8 = vcmp.eq.f32.partialorder %v621_v44, 0.0  ;;  %v673_v37 = vadd.f32 1e-06, %v142_v20  ;;  %v238_v38 = vmul.f32 2.0, %v126_v14  ;;  %v270_v41 = vadd.f32 0.0001, %v262_v25 }
  0x24   :  { %v346_v16 = vadd.f32 %v338_v7, %v160_v48  ;;  %v340_v27 = vmin.f32 %v332_v17, 1.0  ;;  %v323_v36 = vmul.f32 0.5, %v315_v28  ;;  %v278_v42 = vadd.f32 %v102_v24, %v78_v22  ;;  %v88_v17 = vld [vmem:[%s793_s5 + $0x30] sm:$0xff] }
  0x25   :  { %v71_v46 = vmul.f32 %v47_v29, %v47_v29  ;;  %v95_v48 = vmul.f32 %v666_v30, %v666_v30  ;;  %v167_v50 = vsel %vm165_vm6, %v166_v57, %v164_v47  ;;  %v119_v53 = vmul.f32 %v666_v30, %v47_v29  ;;  %v32_v20 = vld [vmem:[%s788_s0 + $0x30] sm:$0xff] }
  0x26   :  { %v390_v26 = vsel %vm389_vm4, %v346_v16, 0.0  ;;  %v348_v35 = vadd.f32 %v340_v27, %v174_v21  ;;  %v331_v51 = vmax.f32 %v323_v36, 0.0  ;;  %v176_v54 = vmul.f32 %v454_v34, %v621_v44  ;;  %v64_v16 = vld [vmem:[%s792_s4 + $0x30] sm:$0xff] }
  0x27   :  { %391 = vadd.xlane.f32.xlu0 %v390_v26  ;;  %v286_v55 = vadd.f32 0.0009, %v278_v42  ;;  %v79_v23 = vsub.f32 %v63_v39, %v71_v46  ;;  %v103_v56 = vsub.f32 %v87_v40, %v95_v48  ;;  %v456_v58 = vpop.eup %455  ;;  %457 = vrsqrt.f32 %v673_v37  ;;  %v40_v21 = vld [vmem:[%s789_s1 + $0x30] sm:$0xff] }
  0x28   :  { %v396_v49 = vsel %vm389_vm4, %v348_v35, 0.0  ;;  %v339_v59 = vmin.f32 %v331_v51, 1.0  ;;  %v230_v60 = vadd.f32 0.0001, %v222_v33  ;;  %v135_v19 = vsub.f32 %v31_v43, %v39_v45  ;;  %v112_v27 = vld [vmem:[%s794_s6 + $0x30] sm:$0xff]  ;;  %v49_v33 = vld [vmem:[%s790_s2 + $0x38] sm:$0xff] }
  0x29   :  { %397 = vadd.xlane.f32.xlu1 %v396_v49  ;;  %v305_v57 = vmul.f32 %v456_v58, %v253_v32  ;;  %v294_v61 = vmul.f32 %v286_v55, %v270_v41  ;;  %v127_v62 = vsub.f32 %v111_v52, %v119_v53  ;;  %v263_v63 = vadd.f32 %v95_v48, %v71_v46  ;;  %v65_v43 = vld [vmem:[%s792_s4 + $0x38] sm:$0xff] }
  0x2a   :  { %v347_v1 = vadd.f32 %v339_v59, %v167_v50  ;;  %v246_v3 = vadd.f32 0.0009, %v238_v38  ;;  %v143_v4 = vmul.f32 %v135_v19, %v135_v19  ;;  %v279_v5 = vadd.f32 %v103_v56, %v79_v23  ;;  %v89_v46 = vld [vmem:[%s793_s5 + $0x38] sm:$0xff] }
  0x2b   :  { %v178_v7 = vsel %vm177_vm7, %v621_v44, %v176_v54  ;;  %v317_v8 = vsub.f32 1.0, %v305_v57  ;;  %459 = vrcp.f32 %v294_v61  ;;  %v271_v9 = vadd.f32 0.0001, %v263_v63  ;;  %v735_v44 = vld [vmem:[%s791_s3 + $0x38] sm:$0xff] }
  0x2c   :  { %v393_v2 = vsel %vm389_vm4, %v347_v1, 0.0  ;;  %v708_v10 = vadd.f32 1e-06, %v143_v4  ;;  %v215_v11 = vmul.f32 2.0, %v47_v29  ;;  %v72_v12 = vmul.f32 %v48_v0, %v48_v0  ;;  %v33_v58 = vld [vmem:[%s788_s0 + $0x38] sm:$0xff] }
  0x2d   :  { %394 = vadd.xlane.f32.xlu0 %v393_v2  ;;  %v325_v13 = vmul.f32 0.5, %v317_v8  ;;  %v239_v14 = vmul.f32 2.0, %v127_v62  ;;  %v287_v15 = vadd.f32 0.0009, %v279_v5  ;;  %v96_v18 = vmul.f32 %v56_v6, %v56_v6  ;;  %v41_v59 = vld [vmem:[%s789_s1 + $0x38] sm:$0xff] }
  0x2e   :  { %461 = vrsqrt.f32 %v708_v10  ;;  %v181_v22 = vsel %vm179_vm8, %v180_v31, %v178_v7  ;;  %v254_v25 = vmul.f32 %v246_v3, %v230_v60  ;;  %v223_v28 = vmul.f32 %v215_v11, %v666_v30 }
  0x2f   :  { %v333_v24 = vmax.f32 %v325_v13, 0.0  ;;  %v295_v26 = vmul.f32 %v287_v15, %v271_v9  ;;  %v80_v29 = vsub.f32 %v64_v16, %v72_v12  ;;  %v104_v47 = vsub.f32 %v88_v17, %v96_v18 }
  0x30   :  { %v120_v32 = vmul.f32 %v56_v6, %v48_v0  ;;  %v247_v34 = vadd.f32 0.0009, %v239_v14  ;;  %v136_v35 = vsub.f32 %v32_v20, %v40_v21  ;;  %v216_v39 = vmul.f32 2.0, %v48_v0 }
  0x31   :  { %v341_v31 = vmin.f32 %v333_v24, 1.0  ;;  %463 = vrcp.f32 %v295_v26  ;;  %v458_v36 = vpop.eup %457  ;;  %v264_v30 = vadd.f32 %v96_v18, %v72_v12  ;;  %v280_v40 = vadd.f32 %v104_v47, %v80_v29 }
  0x32   :  { %v128_v38 = vsub.f32 %v112_v27, %v120_v32  ;;  %v144_v42 = vmul.f32 %v136_v35, %v136_v35  ;;  %v73_v45 = vmul.f32 %v49_v33, %v49_v33  ;;  %v97_v48 = vmul.f32 %v735_v44, %v735_v44 }
  0x33   :  { %v349_v41 = vadd.f32 %v341_v31, %v181_v22  ;;  %v231_v49 = vadd.f32 0.0001, %v223_v28  ;;  %v272_v50 = vadd.f32 0.0001, %v264_v30  ;;  %v288_v51 = vadd.f32 0.0009, %v280_v40 }
  0x34   :  { %v183_v54 = vmul.f32 %v458_v36, %v673_v37  ;;  %vm184_vm9 = vcmp.eq.f32.partialorder %v673_v37, inf  ;;  %v748_v55 = vadd.f32 1e-06, %v144_v42  ;;  %v81_v60 = vsub.f32 %v65_v43, %v73_v45 }
  0x35   :  { %v460_v52 = vpop.eup %459  ;;  %v399_v53 = vsel %vm389_vm4, %v349_v41, 0.0  ;;  %v296_v56 = vmul.f32 %v288_v51, %v272_v50  ;;  %v105_v19 = vsub.f32 %v89_v46, %v97_v48  ;;  %vm186_vm10 = vcmp.eq.f32.partialorder %v673_v37, 0.0 }
  0x36   :  { %400 = vadd.xlane.f32.xlu1 %v399_v53  ;;  %v307_v23 = vmul.f32 %v460_v52, %v254_v25  ;;  %465 = vrsqrt.f32 %v748_v55  ;;  %v224_v57 = vmul.f32 %v216_v39, %v56_v6  ;;  %v240_v61 = vmul.f32 2.0, %v128_v38  ;;  %v113_v6 = vld [vmem:[%s794_s6 + $0x38] sm:$0xff] }
  0x37   :  { %v187_v63 = vand.u32 2147483648, %v673_v37  ;;  %v255_v1 = vmul.f32 %v247_v34, %v231_v49  ;;  %467 = vrcp.f32 %v296_v56  ;;  %v185_v3 = vsel %vm184_vm9, %v673_v37, %v183_v54 }
  0x38   :  { %v462_v62 = vpop.eup %461  ;;  %v318_v0 = vsub.f32 1.0, %v307_v23  ;;  %v121_v4 = vmul.f32 %v735_v44, %v49_v33  ;;  %v137_v5 = vsub.f32 %v33_v58, %v41_v59  ;;  %v265_v7 = vadd.f32 %v97_v48, %v73_v45 }
  0x39   :  { %vm191_vm11 = vcmp.eq.f32.partialorder %v708_v10, inf  ;;  %v281_v9 = vadd.f32 %v105_v19, %v81_v60  ;;  %v190_v11 = vmul.f32 %v462_v62, %v708_v10  ;;  %v232_v12 = vadd.f32 0.0001, %v224_v57 }
  0x3a   :  { %v326_v8 = vmul.f32 0.5, %v318_v0  ;;  %v248_v13 = vadd.f32 0.0009, %v240_v61  ;;  %v145_v14 = vmul.f32 %v137_v5, %v137_v5  ;;  %v188_v15 = vsel %vm186_vm10, %v187_v63, %v185_v3 }
  0x3b   :  { %v464_v2 = vpop.eup %463  ;;  %v273_v18 = vadd.f32 0.0001, %v265_v7  ;;  %v129_v20 = vsub.f32 %v113_v6, %v121_v4  ;;  %v217_v22 = vmul.f32 2.0, %v49_v33  ;;  %v289_v24 = vadd.f32 0.0009, %v281_v9 }
  0x3c   :  { %v334_v16 = vmax.f32 %v326_v8, 0.0  ;;  %v309_v17 = vmul.f32 %v464_v2, %v255_v1  ;;  %v153_v21 = vadd.f32 1e-06, %v145_v14  ;;  %v192_v27 = vsel %vm191_vm11, %v708_v10, %v190_v11 }
  0x3d   :  { %vm193_vm12 = vcmp.eq.f32.partialorder %v708_v10, 0.0  ;;  %v194_v28 = vand.u32 2147483648, %v708_v10  ;;  %v256_v29 = vmul.f32 %v248_v13, %v232_v12  ;;  %v297_v32 = vmul.f32 %v289_v24, %v273_v18 }
  0x3e   :  { %v342_v25 = vmin.f32 %v334_v16, 1.0  ;;  %v319_v26 = vsub.f32 1.0, %v309_v17  ;;  %469 = vrsqrt.f32 %v153_v21  ;;  %v225_v34 = vmul.f32 %v217_v22, %v735_v44 }
  0x3f   :  { %v241_v33 = vmul.f32 2.0, %v129_v20  ;;  %471 = vrcp.f32 %v297_v32  ;;  %v195_v39 = vsel %vm193_vm12, %v194_v28, %v192_v27  ;;  %vm198_vm13 = vcmp.eq.f32.partialorder %v748_v55, inf }
  0x40   :  { %v350_v37 = vadd.f32 %v342_v25, %v188_v15  ;;  %v327_v47 = vmul.f32 0.5, %v319_v26  ;;  %v466_v31 = vpop.eup %465  ;;  %v233_v42 = vadd.f32 0.0001, %v225_v34  ;;  %v201_v44 = vand.u32 2147483648, %v748_v55 }
  0x41   :  { %v468_v35 = vpop.eup %467  ;;  %v197_v30 = vmul.f32 %v466_v31, %v748_v55  ;;  %v249_v43 = vadd.f32 0.0009, %v241_v33  ;;  %vm200_vm14 = vcmp.eq.f32.partialorder %v748_v55, 0.0  ;;  %vm205_vm15 = vcmp.eq.f32.partialorder %v153_v21, inf }
  0x42   :  { %v402_v36 = vsel %vm389_vm4, %v350_v37, 0.0  ;;  %v335_v38 = vmax.f32 %v327_v47, 0.0  ;;  %v311_v40 = vmul.f32 %v468_v35, %v256_v29  ;;  %v208_v57 = vand.u32 2147483648, %v153_v21 }
  0x43   :  { %403 = vadd.xlane.f32.xlu0 %v402_v36  ;;  %v199_v46 = vsel %vm198_vm13, %v748_v55, %v197_v30  ;;  %v257_v51 = vmul.f32 %v249_v43, %v233_v42  ;;  %vm207_vm0 = vcmp.eq.f32.partialorder %v153_v21, 0.0 }
  0x44   :  { %v343_v10 = vmin.f32 %v335_v38, 1.0  ;;  %v320_v41 = vsub.f32 1.0, %v311_v40  ;;  %v202_v53 = vsel %vm200_vm14, %v201_v44, %v199_v46 }
  0x46   :  { %v351_v45 = vadd.f32 %v343_v10, %v195_v39  ;;  %v328_v48 = vmul.f32 0.5, %v320_v41 }
  0x48   :  { %v405_v49 = vsel %vm389_vm4, %v351_v45, 0.0  ;;  %v336_v50 = vmax.f32 %v328_v48, 0.0  ;;  %v470_v52 = vpop.eup %469 }
  0x49   :  { %406 = vadd.xlane.f32.xlu1 %v405_v49  ;;  %v472_v23 = vpop.eup %471  ;;  %v204_v58 = vmul.f32 %v470_v52, %v153_v21 }
  0x4a   :  { %v344_v54 = vmin.f32 %v336_v50, 1.0  ;;  %v313_v59 = vmul.f32 %v472_v23, %v257_v51 }
  0x4b   :  { %v206_v55 = vsel %vm205_vm15, %v153_v21, %v204_v58 }
  0x4c   :  { %v352_v56 = vadd.f32 %v344_v54, %v202_v53  ;;  %v321_v19 = vsub.f32 1.0, %v313_v59  ;;  %v209_v63 = vsel %vm207_vm0, %v208_v57, %v206_v55 }
  0x4e   :  { %v408_v60 = vsel %vm389_vm4, %v352_v56, 0.0  ;;  %v329_v61 = vmul.f32 0.5, %v321_v19 }
  0x4f   :  { %409 = vadd.xlane.f32.xlu0 %v408_v60 }
  0x50   :  { %v337_v62 = vmax.f32 %v329_v61, 0.0 }
  0x52   :  { %v345_v0 = vmin.f32 %v337_v62, 1.0 }
  0x54   :  { %v353_v1 = vadd.f32 %v345_v0, %v209_v63 }
  0x56   :  { %v411_v3 = vsel %vm389_vm4, %v353_v1, 0.0 }
  0x57   :  { %412 = vadd.xlane.f32.xlu1 %v411_v3 }
  0xb4   :  { %v392_v4 = vpop.xlane.xlu0 %391 }
  0xb6   :  { %v398_v7 = vpop.xlane.xlu1 %397 }
  0xba   :  { %v395_v5 = vpop.xlane.xlu0 %394 }
  0xbb   :  { %v414_v8 = vadd.f32 %v395_v5, %v392_v4 }
  0xbd   :  { %v415_v6 = vadd.f32 %v414_v8, %v398_v7 }
  0xc3   :  { %v401_v9 = vpop.xlane.xlu1 %400 }
  0xc4   :  { %v416_v2 = vadd.f32 %v415_v6, %v401_v9 }
  0xd0   :  { %v404_v11 = vpop.xlane.xlu0 %403 }
  0xd1   :  { %v417_v12 = vadd.f32 %v416_v2, %v404_v11 }
  0xd6   :  { %v407_v13 = vpop.xlane.xlu1 %406 }
  0xd7   :  { %v418_v14 = vadd.f32 %v417_v12, %v407_v13 }
  0xdc   :  { %v410_v15 = vpop.xlane.xlu0 %409 }
  0xdd   :  { %v419_v16 = vadd.f32 %v418_v14, %v410_v15 }
  0xe4   :  { %v413_v17 = vpop.xlane.xlu1 %412 }
  0xe5   :  { %v420_v18 = vadd.f32 %v419_v16, %v413_v17 }
  0xe7   :  { %v421_v20 = vrot.slane %v420_v18, 4 }
  0xe9   :  { %v422_v21 = vadd.f32 %v421_v20, %v420_v18 }
  0xeb   :  { %v423_v22 = vrot.slane %v422_v21, 2 }
  0xed   :  { %v424_v24 = vadd.f32 %v423_v22, %v422_v21 }
  0xef   :  { %v425_v25 = vrot.slane %v424_v24, 1 }
  0xf1   :  { %v426_v26 = vadd.f32 %v425_v25, %v424_v24 }
  0xf3   :  { %v427_v27 = vmul.f32 0.00048828125, %v426_v26 }
  0xf5   :  { %435 = vst [vmem:[%s795_s7] sm:$0xff] %v427_v27 }

</bundles_post_ra>
